<compile_context>
chip_gen: v7x
topology: tpu7x:2x2x1
jax: 0.10.0
libtpu: 0.0.40
codegen_flags: <defaults>
</compile_context>

<pallas_src>
import functools

import jax
import jax.numpy as jnp
from jax.experimental import pallas as pl
from jax.experimental.pallas import tpu as pltpu

KERNEL_SIZE = 3
TCN_CHANNELS = [128, 128, 96, 96, 64]
CPAD = 128                      # lane-padded channel width for every layer


# --------------------------------------------------------------------------
# Fused kernel
# --------------------------------------------------------------------------
def make_fused_kernel(block_cfg, *, with_vae, B, T, PAD, K):
    """Build the fused TCN + VAE-head kernel (specialized at trace time)."""

    def kernel(*refs):
        i = 0
        x_ref = refs[i]; i += 1
        if with_vae:
            eps_ref = refs[i]; i += 1
        blk_refs = []
        for cfg in block_cfg:
            w1, b1, w2, b2 = refs[i:i + 4]; i += 4
            if cfg["has_down"]:
                wd, bd = refs[i:i + 2]; i += 2
            else:
                wd, bd = None, None
            blk_refs.append((w1, b1, w2, b2, wd, bd))
        wm1, bm1, wm2, bm2 = refs[i:i + 4]; i += 4
        wv1, bv1, wv2, bv2 = refs[i:i + 4]; i += 4
        o_ref = refs[i]; i += 1
        buf_x, buf_h = refs[i], refs[i + 1]

        M = B * T
        f32 = jnp.float32

        # Zero ONLY the causal left-padding rows [0, PAD); they stay zero for
        # the whole stack.  Rows [PAD, PAD+T) are fully overwritten below.
        pad_zeros = jnp.zeros((B, PAD, CPAD), f32)
        buf_x[:, :PAD, :] = pad_zeros
        buf_h[:, :PAD, :] = pad_zeros
        buf_x[:, PAD:PAD + T, :] = x_ref[...]

        def conv_input(buf, d):
            # Assemble the (B*T, K*CPAD) input slab for a dilated causal conv:
            # tap k of output t reads input row t - (K-1-k)*d.
            taps = []
            for k in range(K):
                off = PAD - (K - 1 - k) * d
                taps.append(buf[:, off:off + T, :])          # (B, T, CPAD)
            slab = jnp.concatenate(taps, axis=-1)            # (B, T, K*CPAD)
            return slab.reshape(M, K * CPAD)

        # ---- TCN: 5 temporal blocks --------------------------------------
        for cfg, (w1, b1, w2, b2, wd, bd) in zip(block_cfg, blk_refs):
            d = cfg["dilation"]
            act = buf_x[:, PAD:PAD + T, :].reshape(M, CPAD)  # block input

            # conv1 -> chomp -> ReLU   (single deep MXU dot, M = B*T)
            h = jnp.dot(conv_input(buf_x, d), w1[...],
                        preferred_element_type=f32) + b1[...]
            h = jnp.maximum(h, 0.0)
            buf_h[:, PAD:PAD + T, :] = h.reshape(B, T, CPAD)

            # conv2 -> chomp -> ReLU
            o = jnp.dot(conv_input(buf_h, d), w2[...],
                        preferred_element_type=f32) + b2[...]
            o = jnp.maximum(o, 0.0)

            # residual (1x1 conv when channel counts differ), final ReLU
            if wd is not None:
                res = jnp.dot(act, wd[...], preferred_element_type=f32) + bd[...]
            else:
                res = act
            buf_x[:, PAD:PAD + T, :] = jnp.maximum(o + res, 0.0).reshape(B, T, CPAD)

        # ---- VAE heads ----------------------------------------------------
        feat = buf_x[:, PAD:PAD + T, :].reshape(M, CPAD)     # real channels 0..63
        hm = jnp.maximum(jnp.dot(feat, wm1[...], preferred_element_type=f32)
                         + bm1[...], 0.0)
        mu = jnp.dot(hm, wm2[...], preferred_element_type=f32) + bm2[...]
        if with_vae:
            hv = jnp.maximum(jnp.dot(feat, wv1[...], preferred_element_type=f32)
                             + bv1[...], 0.0)
            logvar = jnp.dot(hv, wv2[...], preferred_element_type=f32) + bv2[...]
            z = mu + eps_ref[...] * jnp.exp(0.5 * logvar)
        else:
            z = mu
        o_ref[...] = z.astype(o_ref.dtype)                   # lane-dense store

    return kernel


def _full_vmem_spec(shape):
    nd = len(shape)
    return pl.BlockSpec(shape, lambda i: (0,) * nd)


# --------------------------------------------------------------------------
# Parameter init + padding / flattening for the fused kernel
# --------------------------------------------------------------------------
def init_params(key, audio_size, audio_hidden_size):
    blocks = []
    cin = audio_size
    for cout in TCN_CHANNELS:
        key, k1, k2, k3 = jax.random.split(key, 4)
        blk = {
            "w1": jax.random.normal(k1, (KERNEL_SIZE, cin, cout), jnp.float32)
                  * (1.0 / jnp.sqrt(KERNEL_SIZE * cin)),
            "b1": jnp.zeros((cout,), jnp.float32),
            "w2": jax.random.normal(k2, (KERNEL_SIZE, cout, cout), jnp.float32)
                  * (1.0 / jnp.sqrt(KERNEL_SIZE * cout)),
            "b2": jnp.zeros((cout,), jnp.float32),
            "wd": None, "bd": None,
        }
        if cin != cout:
            blk["wd"] = (jax.random.normal(k3, (cin, cout), jnp.float32)
                         * (1.0 / jnp.sqrt(cin)))
            blk["bd"] = jnp.zeros((cout,), jnp.float32)
        blocks.append(blk)
        cin = cout

    def head(k):
        k1, k2 = jax.random.split(k)
        return (jax.random.normal(k1, (64, 32), jnp.float32) / jnp.sqrt(64.0),
                jnp.zeros((32,), jnp.float32),
                jax.random.normal(k2, (32, audio_hidden_size), jnp.float32)
                / jnp.sqrt(32.0),
                jnp.zeros((audio_hidden_size,), jnp.float32))

    key, km, kv = jax.random.split(key, 3)
    return {"blocks": blocks, "mean": head(km), "var": head(kv)}


def _pad_conv_weight(w):                 # (K, Cin, Cout) -> (K*CPAD, CPAD)
    k, cin, cout = w.shape
    wp = jnp.zeros((k, CPAD, CPAD), w.dtype).at[:, :cin, :cout].set(w)
    return wp.reshape(k * CPAD, CPAD)


def _pad_matrix(w):                      # (Cin, Cout) -> (CPAD, CPAD)
    cin, cout = w.shape
    return jnp.zeros((CPAD, CPAD), w.dtype).at[:cin, :cout].set(w)


def _pad_bias(b):                        # (C,) -> (1, CPAD)
    return jnp.zeros((1, CPAD), b.dtype).at[0, :b.shape[0]].set(b)


def prepare_params(params):
    """Lane-pad all weights to 128 and flatten in the kernel's arg order."""
    flat, cfg = [], []
    for i, blk in enumerate(params["blocks"]):
        cfg.append({"dilation": 2 ** i, "has_down": blk["wd"] is not None})
        flat += [_pad_conv_weight(blk["w1"]), _pad_bias(blk["b1"]),
                 _pad_conv_weight(blk["w2"]), _pad_bias(blk["b2"])]
        if blk["wd"] is not None:
            flat += [_pad_matrix(blk["wd"]), _pad_bias(blk["bd"])]
    for head in (params["mean"], params["var"]):
        w1, b1, w2, b2 = head
        flat += [_pad_matrix(w1), _pad_bias(b1), _pad_matrix(w2), _pad_bias(b2)]
    return tuple(flat), tuple(cfg)


# --------------------------------------------------------------------------
# Forward: ONE pallas_call
# --------------------------------------------------------------------------
def audio_enc_forward(inputs, flat_params, *, block_cfg, audio_hidden_size,
                      with_audio_share_vae=True, noise_key=None):
    """inputs: (B, T, audio_size) -> (B, T, audio_hidden_size)."""
    B, T, Cin = inputs.shape
    K = KERNEL_SIZE
    PAD = (K - 1) * max(c["dilation"] for c in block_cfg)

    x = jnp.pad(inputs.astype(jnp.float32),
                ((0, 0), (0, 0), (0, CPAD - Cin)))           # one tiny pad

    call_inputs = [x]
    if with_audio_share_vae:
        eps = jax.random.normal(noise_key, (B * T, CPAD), jnp.float32)
        call_inputs.append(eps)
    call_inputs.extend(flat_params)

    kernel = make_fused_kernel(block_cfg, with_vae=with_audio_share_vae,
                               B=B, T=T, PAD=PAD, K=K)

    out = pl.pallas_call(
        kernel,
        out_shape=jax.ShapeDtypeStruct((B * T, CPAD), jnp.float32),
        grid=(1,),
        in_specs=[_full_vmem_spec(a.shape) for a in call_inputs],
        out_specs=pl.BlockSpec((B * T, CPAD), lambda i: (0, 0)),
        scratch_shapes=[pltpu.VMEM((B, PAD + T, CPAD), jnp.float32),
                        pltpu.VMEM((B, PAD + T, CPAD), jnp.float32)],
        compiler_params=pltpu.CompilerParams(
            dimension_semantics=("arbitrary",),
            vmem_limit_bytes=64 << 20),
    )(*call_inputs)

    return out[:, :audio_hidden_size].reshape(B, T, audio_hidden_size)


# --------------------------------------------------------------------------
# Pure-JAX reference (self-check only)
# --------------------------------------------------------------------------
def reference_forward(x, params, audio_hidden_size, noise_key):
    hp_prec = jax.lax.Precision.HIGHEST
    x = x.astype(jnp.float32)
    B, T, _ = x.shape

    def causal_conv(h, w, b, d):
        k_sz = w.shape[0]
        p = (k_sz - 1) * d
        hp = jnp.pad(h, ((0, 0), (p, 0), (0, 0)))
        out = sum(jnp.einsum("btc,cd->btd", hp[:, k * d:k * d + T, :], w[k],
                             precision=hp_prec) for k in range(k_sz))
        return out + b

    h = x
    for i, blk in enumerate(params["blocks"]):
        d = 2 ** i
        o = jax.nn.relu(causal_conv(h, blk["w1"], blk["b1"], d))
        o = jax.nn.relu(causal_conv(o, blk["w2"], blk["b2"], d))
        if blk["wd"] is not None:
            res = jnp.einsum("btc,cd->btd", h, blk["wd"],
                             precision=hp_prec) + blk["bd"]
        else:
            res = h
        h = jax.nn.relu(o + res)

    flat = h.reshape(B * T, h.shape[-1])
    wm1, bm1, wm2, bm2 = params["mean"]
    wv1, bv1, wv2, bv2 = params["var"]
    mm = lambda a, b: jnp.dot(a, b, precision=hp_prec)
    mu = mm(jax.nn.relu(mm(flat, wm1) + bm1), wm2) + bm2
    lv = mm(jax.nn.relu(mm(flat, wv1) + bv1), wv2) + bv2
    eps = jax.random.normal(noise_key, (B * T, CPAD),
                            jnp.float32)[:, :audio_hidden_size]
    z = mu + eps * jnp.exp(0.5 * lv)
    return z.reshape(B, T, audio_hidden_size)


# --------------------------------------------------------------------------
if __name__ == "__main__":
    B, T = 2, 16
    audio_size = 32
    audio_hidden_size = 16

    root = jax.random.PRNGKey(0)
    k_param, k_input, k_noise = jax.random.split(root, 3)

    params = init_params(k_param, audio_size, audio_hidden_size)
    flat_params, block_cfg = prepare_params(params)
    x = jax.random.normal(k_input, (B, T, audio_size), jnp.float32)

    fwd = jax.jit(functools.partial(audio_enc_forward,
                                    block_cfg=block_cfg,
                                    audio_hidden_size=audio_hidden_size,
                                    with_audio_share_vae=True))
    z_share = fwd(x, flat_params, noise_key=k_noise)
    jax.block_until_ready(z_share)
    assert z_share.shape == (B, T, audio_hidden_size)

    z_ref = reference_forward(x, params, audio_hidden_size, k_noise)
    assert jnp.allclose(z_share, z_ref, atol=2e-2, rtol=2e-2), (
        float(jnp.max(jnp.abs(z_share - z_ref))))

    print("KERNEL_OK")
</pallas_src>

<mosaic_0001>
module attributes {stable_mosaic.version = 11 : i64} {
  func.func @kernel(%arg0: i32, %arg1: memref<2x16x128xf32, #tpu.memory_space<vmem>>, %arg2: memref<32x128xf32, #tpu.memory_space<vmem>>, %arg3: memref<384x128xf32, #tpu.memory_space<vmem>>, %arg4: memref<1x128xf32, #tpu.memory_space<vmem>>, %arg5: memref<384x128xf32, #tpu.memory_space<vmem>>, %arg6: memref<1x128xf32, #tpu.memory_space<vmem>>, %arg7: memref<128x128xf32, #tpu.memory_space<vmem>>, %arg8: memref<1x128xf32, #tpu.memory_space<vmem>>, %arg9: memref<384x128xf32, #tpu.memory_space<vmem>>, %arg10: memref<1x128xf32, #tpu.memory_space<vmem>>, %arg11: memref<384x128xf32, #tpu.memory_space<vmem>>, %arg12: memref<1x128xf32, #tpu.memory_space<vmem>>, %arg13: memref<384x128xf32, #tpu.memory_space<vmem>>, %arg14: memref<1x128xf32, #tpu.memory_space<vmem>>, %arg15: memref<384x128xf32, #tpu.memory_space<vmem>>, %arg16: memref<1x128xf32, #tpu.memory_space<vmem>>, %arg17: memref<128x128xf32, #tpu.memory_space<vmem>>, %arg18: memref<1x128xf32, #tpu.memory_space<vmem>>, %arg19: memref<384x128xf32, #tpu.memory_space<vmem>>, %arg20: memref<1x128xf32, #tpu.memory_space<vmem>>, %arg21: memref<384x128xf32, #tpu.memory_space<vmem>>, %arg22: memref<1x128xf32, #tpu.memory_space<vmem>>, %arg23: memref<384x128xf32, #tpu.memory_space<vmem>>, %arg24: memref<1x128xf32, #tpu.memory_space<vmem>>, %arg25: memref<384x128xf32, #tpu.memory_space<vmem>>, %arg26: memref<1x128xf32, #tpu.memory_space<vmem>>, %arg27: memref<128x128xf32, #tpu.memory_space<vmem>>, %arg28: memref<1x128xf32, #tpu.memory_space<vmem>>, %arg29: memref<128x128xf32, #tpu.memory_space<vmem>>, %arg30: memref<1x128xf32, #tpu.memory_space<vmem>>, %arg31: memref<128x128xf32, #tpu.memory_space<vmem>>, %arg32: memref<1x128xf32, #tpu.memory_space<vmem>>, %arg33: memref<128x128xf32, #tpu.memory_space<vmem>>, %arg34: memref<1x128xf32, #tpu.memory_space<vmem>>, %arg35: memref<128x128xf32, #tpu.memory_space<vmem>>, %arg36: memref<1x128xf32, #tpu.memory_space<vmem>>, %arg37: memref<32x128xf32, #tpu.memory_space<vmem>>, %arg38: memref<2x48x128xf32, #tpu.memory_space<vmem>>, %arg39: memref<2x48x128xf32, #tpu.memory_space<vmem>>) attributes {dimension_semantics = [#tpu.dimension_semantics<arbitrary>], iteration_bounds = array<i64: 1>, scalar_prefetch = 0 : i64, scratch_operands = 2 : i64, tpu.core_type = #tpu.core_type<tc>, window_params = [{pipeline_mode = #tpu.pipeline_mode<synchronous>, transform_indices = @transform_0, window_bounds = array<i64: 2, 16, 128>}, {pipeline_mode = #tpu.pipeline_mode<synchronous>, transform_indices = @transform_1, window_bounds = array<i64: 32, 128>}, {pipeline_mode = #tpu.pipeline_mode<synchronous>, transform_indices = @transform_2, window_bounds = array<i64: 384, 128>}, {pipeline_mode = #tpu.pipeline_mode<synchronous>, transform_indices = @transform_3, window_bounds = array<i64: 1, 128>}, {pipeline_mode = #tpu.pipeline_mode<synchronous>, transform_indices = @transform_4, window_bounds = array<i64: 384, 128>}, {pipeline_mode = #tpu.pipeline_mode<synchronous>, transform_indices = @transform_5, window_bounds = array<i64: 1, 128>}, {pipeline_mode = #tpu.pipeline_mode<synchronous>, transform_indices = @transform_6, window_bounds = array<i64: 128, 128>}, {pipeline_mode = #tpu.pipeline_mode<synchronous>, transform_indices = @transform_7, window_bounds = array<i64: 1, 128>}, {pipeline_mode = #tpu.pipeline_mode<synchronous>, transform_indices = @transform_8, window_bounds = array<i64: 384, 128>}, {pipeline_mode = #tpu.pipeline_mode<synchronous>, transform_indices = @transform_9, window_bounds = array<i64: 1, 128>}, {pipeline_mode = #tpu.pipeline_mode<synchronous>, transform_indices = @transform_10, window_bounds = array<i64: 384, 128>}, {pipeline_mode = #tpu.pipeline_mode<synchronous>, transform_indices = @transform_11, window_bounds = array<i64: 1, 128>}, {pipeline_mode = #tpu.pipeline_mode<synchronous>, transform_indices = @transform_12, window_bounds = array<i64: 384, 128>}, {pipeline_mode = #tpu.pipeline_mode<synchronous>, transform_indices = @transform_13, window_bounds = array<i64: 1, 128>}, {pipeline_mode = #tpu.pipeline_mode<synchronous>, transform_indices = @transform_14, window_bounds = array<i64: 384, 128>}, {pipeline_mode = #tpu.pipeline_mode<synchronous>, transform_indices = @transform_15, window_bounds = array<i64: 1, 128>}, {pipeline_mode = #tpu.pipeline_mode<synchronous>, transform_indices = @transform_16, window_bounds = array<i64: 128, 128>}, {pipeline_mode = #tpu.pipeline_mode<synchronous>, transform_indices = @transform_17, window_bounds = array<i64: 1, 128>}, {pipeline_mode = #tpu.pipeline_mode<synchronous>, transform_indices = @transform_18, window_bounds = array<i64: 384, 128>}, {pipeline_mode = #tpu.pipeline_mode<synchronous>, transform_indices = @transform_19, window_bounds = array<i64: 1, 128>}, {pipeline_mode = #tpu.pipeline_mode<synchronous>, transform_indices = @transform_20, window_bounds = array<i64: 384, 128>}, {pipeline_mode = #tpu.pipeline_mode<synchronous>, transform_indices = @transform_21, window_bounds = array<i64: 1, 128>}, {pipeline_mode = #tpu.pipeline_mode<synchronous>, transform_indices = @transform_22, window_bounds = array<i64: 384, 128>}, {pipeline_mode = #tpu.pipeline_mode<synchronous>, transform_indices = @transform_23, window_bounds = array<i64: 1, 128>}, {pipeline_mode = #tpu.pipeline_mode<synchronous>, transform_indices = @transform_24, window_bounds = array<i64: 384, 128>}, {pipeline_mode = #tpu.pipeline_mode<synchronous>, transform_indices = @transform_25, window_bounds = array<i64: 1, 128>}, {pipeline_mode = #tpu.pipeline_mode<synchronous>, transform_indices = @transform_26, window_bounds = array<i64: 128, 128>}, {pipeline_mode = #tpu.pipeline_mode<synchronous>, transform_indices = @transform_27, window_bounds = array<i64: 1, 128>}, {pipeline_mode = #tpu.pipeline_mode<synchronous>, transform_indices = @transform_28, window_bounds = array<i64: 128, 128>}, {pipeline_mode = #tpu.pipeline_mode<synchronous>, transform_indices = @transform_29, window_bounds = array<i64: 1, 128>}, {pipeline_mode = #tpu.pipeline_mode<synchronous>, transform_indices = @transform_30, window_bounds = array<i64: 128, 128>}, {pipeline_mode = #tpu.pipeline_mode<synchronous>, transform_indices = @transform_31, window_bounds = array<i64: 1, 128>}, {pipeline_mode = #tpu.pipeline_mode<synchronous>, transform_indices = @transform_32, window_bounds = array<i64: 128, 128>}, {pipeline_mode = #tpu.pipeline_mode<synchronous>, transform_indices = @transform_33, window_bounds = array<i64: 1, 128>}, {pipeline_mode = #tpu.pipeline_mode<synchronous>, transform_indices = @transform_34, window_bounds = array<i64: 128, 128>}, {pipeline_mode = #tpu.pipeline_mode<synchronous>, transform_indices = @transform_35, window_bounds = array<i64: 1, 128>}, {pipeline_mode = #tpu.pipeline_mode<synchronous>, transform_indices = @transform_36, window_bounds = array<i64: 32, 128>}]} {
    %cst = arith.constant 0.000000e+00 : f32
    %0 = vector.broadcast %cst : f32 to vector<2x32x128xf32>
    %c0 = arith.constant 0 : index
    %c0_0 = arith.constant 0 : index
    %c0_1 = arith.constant 0 : index
    %1 = vector.load %arg38[%c0, %c0_0, %c0_1] : memref<2x48x128xf32, #tpu.memory_space<vmem>>, vector<2x32x128xf32>
    tpu.vector_store %arg38[%c0, %c0_0, %c0_1], %0 {strides = array<i32>} : memref<2x48x128xf32, #tpu.memory_space<vmem>>, vector<2x32x128xf32>,
    %c0_2 = arith.constant 0 : index
    %c0_3 = arith.constant 0 : index
    %c0_4 = arith.constant 0 : index
    %2 = vector.load %arg39[%c0_2, %c0_3, %c0_4] : memref<2x48x128xf32, #tpu.memory_space<vmem>>, vector<2x32x128xf32>
    tpu.vector_store %arg39[%c0_2, %c0_3, %c0_4], %0 {strides = array<i32>} : memref<2x48x128xf32, #tpu.memory_space<vmem>>, vector<2x32x128xf32>,
    %c0_5 = arith.constant 0 : index
    %c0_6 = arith.constant 0 : index
    %c0_7 = arith.constant 0 : index
    %3 = vector.load %arg1[%c0_5, %c0_6, %c0_7] : memref<2x16x128xf32, #tpu.memory_space<vmem>>, vector<2x16x128xf32>
    %c0_8 = arith.constant 0 : index
    %c32 = arith.constant 32 : index
    %c0_9 = arith.constant 0 : index
    %4 = vector.load %arg38[%c0_8, %c32, %c0_9] : memref<2x48x128xf32, #tpu.memory_space<vmem>>, vector<2x16x128xf32>
    tpu.vector_store %arg38[%c0_8, %c32, %c0_9], %3 {strides = array<i32>} : memref<2x48x128xf32, #tpu.memory_space<vmem>>, vector<2x16x128xf32>,
    %c0_10 = arith.constant 0 : index
    %c32_11 = arith.constant 32 : index
    %c0_12 = arith.constant 0 : index
    %5 = vector.load %arg38[%c0_10, %c32_11, %c0_12] : memref<2x48x128xf32, #tpu.memory_space<vmem>>, vector<2x16x128xf32>
    %6 = vector.shape_cast %5 : vector<2x16x128xf32> to vector<32x128xf32>
    %c0_13 = arith.constant 0 : index
    %c30 = arith.constant 30 : index
    %c0_14 = arith.constant 0 : index
    %7 = vector.load %arg38[%c0_13, %c30, %c0_14] : memref<2x48x128xf32, #tpu.memory_space<vmem>>, vector<2x16x128xf32>
    %c0_15 = arith.constant 0 : index
    %c31 = arith.constant 31 : index
    %c0_16 = arith.constant 0 : index
    %8 = vector.load %arg38[%c0_15, %c31, %c0_16] : memref<2x48x128xf32, #tpu.memory_space<vmem>>, vector<2x16x128xf32>
    %c0_17 = arith.constant 0 : index
    %c32_18 = arith.constant 32 : index
    %c0_19 = arith.constant 0 : index
    %9 = vector.load %arg38[%c0_17, %c32_18, %c0_19] : memref<2x48x128xf32, #tpu.memory_space<vmem>>, vector<2x16x128xf32>
    %10 = tpu.concatenate %7, %8, %9 in 2 : vector<2x16x128xf32>, vector<2x16x128xf32>, vector<2x16x128xf32> -> vector<2x16x384xf32>
    %11 = vector.shape_cast %10 : vector<2x16x384xf32> to vector<32x384xf32>
    %c0_20 = arith.constant 0 : index
    %c0_21 = arith.constant 0 : index
    %12 = vector.load %arg3[%c0_20, %c0_21] : memref<384x128xf32, #tpu.memory_space<vmem>>, vector<384x128xf32>
    %cst_22 = arith.constant dense<0.000000e+00> : vector<32x128xf32>
    %13 = tpu.matmul %11, %12, %cst_22 {dimension_numbers = #tpu.dot_dimension_numbers<[1], [0], [0], [1], [0, 0, 1, 1], [], []>} : vector<32x384xf32>, vector<384x128xf32>, vector<32x128xf32> -> vector<32x128xf32>
    %c0_23 = arith.constant 0 : index
    %c0_24 = arith.constant 0 : index
    %14 = vector.load %arg4[%c0_23, %c0_24] : memref<1x128xf32, #tpu.memory_space<vmem>>, vector<1x128xf32>
    %15 = vector.broadcast %14 : vector<1x128xf32> to vector<32x128xf32>
    %16 = arith.addf %13, %15 : vector<32x128xf32>
    %cst_25 = arith.constant 0.000000e+00 : f32
    %17 = vector.broadcast %cst_25 : f32 to vector<32x128xf32>
    %18 = arith.maximumf %16, %17 : vector<32x128xf32>
    %19 = vector.shape_cast %18 : vector<32x128xf32> to vector<2x16x128xf32>
    %c0_26 = arith.constant 0 : index
    %c32_27 = arith.constant 32 : index
    %c0_28 = arith.constant 0 : index
    %20 = vector.load %arg39[%c0_26, %c32_27, %c0_28] : memref<2x48x128xf32, #tpu.memory_space<vmem>>, vector<2x16x128xf32>
    tpu.vector_store %arg39[%c0_26, %c32_27, %c0_28], %19 {strides = array<i32>} : memref<2x48x128xf32, #tpu.memory_space<vmem>>, vector<2x16x128xf32>,
    %c0_29 = arith.constant 0 : index
    %c30_30 = arith.constant 30 : index
    %c0_31 = arith.constant 0 : index
    %21 = vector.load %arg39[%c0_29, %c30_30, %c0_31] : memref<2x48x128xf32, #tpu.memory_space<vmem>>, vector<2x16x128xf32>
    %c0_32 = arith.constant 0 : index
    %c31_33 = arith.constant 31 : index
    %c0_34 = arith.constant 0 : index
    %22 = vector.load %arg39[%c0_32, %c31_33, %c0_34] : memref<2x48x128xf32, #tpu.memory_space<vmem>>, vector<2x16x128xf32>
    %c0_35 = arith.constant 0 : index
    %c32_36 = arith.constant 32 : index
    %c0_37 = arith.constant 0 : index
    %23 = vector.load %arg39[%c0_35, %c32_36, %c0_37] : memref<2x48x128xf32, #tpu.memory_space<vmem>>, vector<2x16x128xf32>
    %24 = tpu.concatenate %21, %22, %23 in 2 : vector<2x16x128xf32>, vector<2x16x128xf32>, vector<2x16x128xf32> -> vector<2x16x384xf32>
    %25 = vector.shape_cast %24 : vector<2x16x384xf32> to vector<32x384xf32>
    %c0_38 = arith.constant 0 : index
    %c0_39 = arith.constant 0 : index
    %26 = vector.load %arg5[%c0_38, %c0_39] : memref<384x128xf32, #tpu.memory_space<vmem>>, vector<384x128xf32>
    %cst_40 = arith.constant dense<0.000000e+00> : vector<32x128xf32>
    %27 = tpu.matmul %25, %26, %cst_40 {dimension_numbers = #tpu.dot_dimension_numbers<[1], [0], [0], [1], [0, 0, 1, 1], [], []>} : vector<32x384xf32>, vector<384x128xf32>, vector<32x128xf32> -> vector<32x128xf32>
    %c0_41 = arith.constant 0 : index
    %c0_42 = arith.constant 0 : index
    %28 = vector.load %arg6[%c0_41, %c0_42] : memref<1x128xf32, #tpu.memory_space<vmem>>, vector<1x128xf32>
    %29 = vector.broadcast %28 : vector<1x128xf32> to vector<32x128xf32>
    %30 = arith.addf %27, %29 : vector<32x128xf32>
    %cst_43 = arith.constant 0.000000e+00 : f32
    %31 = vector.broadcast %cst_43 : f32 to vector<32x128xf32>
    %32 = arith.maximumf %30, %31 : vector<32x128xf32>
    %c0_44 = arith.constant 0 : index
    %c0_45 = arith.constant 0 : index
    %33 = vector.load %arg7[%c0_44, %c0_45] : memref<128x128xf32, #tpu.memory_space<vmem>>, vector<128x128xf32>
    %cst_46 = arith.constant dense<0.000000e+00> : vector<32x128xf32>
    %34 = tpu.matmul %6, %33, %cst_46 {dimension_numbers = #tpu.dot_dimension_numbers<[1], [0], [0], [1], [0, 0, 1, 1], [], []>} : vector<32x128xf32>, vector<128x128xf32>, vector<32x128xf32> -> vector<32x128xf32>
    %c0_47 = arith.constant 0 : index
    %c0_48 = arith.constant 0 : index
    %35 = vector.load %arg8[%c0_47, %c0_48] : memref<1x128xf32, #tpu.memory_space<vmem>>, vector<1x128xf32>
    %36 = vector.broadcast %35 : vector<1x128xf32> to vector<32x128xf32>
    %37 = arith.addf %34, %36 : vector<32x128xf32>
    %38 = arith.addf %32, %37 : vector<32x128xf32>
    %cst_49 = arith.constant 0.000000e+00 : f32
    %39 = vector.broadcast %cst_49 : f32 to vector<32x128xf32>
    %40 = arith.maximumf %38, %39 : vector<32x128xf32>
    %41 = vector.shape_cast %40 : vector<32x128xf32> to vector<2x16x128xf32>
    %c0_50 = arith.constant 0 : index
    %c32_51 = arith.constant 32 : index
    %c0_52 = arith.constant 0 : index
    %42 = vector.load %arg38[%c0_50, %c32_51, %c0_52] : memref<2x48x128xf32, #tpu.memory_space<vmem>>, vector<2x16x128xf32>
    tpu.vector_store %arg38[%c0_50, %c32_51, %c0_52], %41 {strides = array<i32>} : memref<2x48x128xf32, #tpu.memory_space<vmem>>, vector<2x16x128xf32>,
    %c0_53 = arith.constant 0 : index
    %c32_54 = arith.constant 32 : index
    %c0_55 = arith.constant 0 : index
    %43 = vector.load %arg38[%c0_53, %c32_54, %c0_55] : memref<2x48x128xf32, #tpu.memory_space<vmem>>, vector<2x16x128xf32>
    %44 = vector.shape_cast %43 : vector<2x16x128xf32> to vector<32x128xf32>
    %c0_56 = arith.constant 0 : index
    %c28 = arith.constant 28 : index
    %c0_57 = arith.constant 0 : index
    %45 = vector.load %arg38[%c0_56, %c28, %c0_57] : memref<2x48x128xf32, #tpu.memory_space<vmem>>, vector<2x16x128xf32>
    %c0_58 = arith.constant 0 : index
    %c30_59 = arith.constant 30 : index
    %c0_60 = arith.constant 0 : index
    %46 = vector.load %arg38[%c0_58, %c30_59, %c0_60] : memref<2x48x128xf32, #tpu.memory_space<vmem>>, vector<2x16x128xf32>
    %c0_61 = arith.constant 0 : index
    %c32_62 = arith.constant 32 : index
    %c0_63 = arith.constant 0 : index
    %47 = vector.load %arg38[%c0_61, %c32_62, %c0_63] : memref<2x48x128xf32, #tpu.memory_space<vmem>>, vector<2x16x128xf32>
    %48 = tpu.concatenate %45, %46, %47 in 2 : vector<2x16x128xf32>, vector<2x16x128xf32>, vector<2x16x128xf32> -> vector<2x16x384xf32>
    %49 = vector.shape_cast %48 : vector<2x16x384xf32> to vector<32x384xf32>
    %c0_64 = arith.constant 0 : index
    %c0_65 = arith.constant 0 : index
    %50 = vector.load %arg9[%c0_64, %c0_65] : memref<384x128xf32, #tpu.memory_space<vmem>>, vector<384x128xf32>
    %cst_66 = arith.constant dense<0.000000e+00> : vector<32x128xf32>
    %51 = tpu.matmul %49, %50, %cst_66 {dimension_numbers = #tpu.dot_dimension_numbers<[1], [0], [0], [1], [0, 0, 1, 1], [], []>} : vector<32x384xf32>, vector<384x128xf32>, vector<32x128xf32> -> vector<32x128xf32>
    %c0_67 = arith.constant 0 : index
    %c0_68 = arith.constant 0 : index
    %52 = vector.load %arg10[%c0_67, %c0_68] : memref<1x128xf32, #tpu.memory_space<vmem>>, vector<1x128xf32>
    %53 = vector.broadcast %52 : vector<1x128xf32> to vector<32x128xf32>
    %54 = arith.addf %51, %53 : vector<32x128xf32>
    %cst_69 = arith.constant 0.000000e+00 : f32
    %55 = vector.broadcast %cst_69 : f32 to vector<32x128xf32>
    %56 = arith.maximumf %54, %55 : vector<32x128xf32>
    %57 = vector.shape_cast %56 : vector<32x128xf32> to vector<2x16x128xf32>
    %c0_70 = arith.constant 0 : index
    %c32_71 = arith.constant 32 : index
    %c0_72 = arith.constant 0 : index
    %58 = vector.load %arg39[%c0_70, %c32_71, %c0_72] : memref<2x48x128xf32, #tpu.memory_space<vmem>>, vector<2x16x128xf32>
    tpu.vector_store %arg39[%c0_70, %c32_71, %c0_72], %57 {strides = array<i32>} : memref<2x48x128xf32, #tpu.memory_space<vmem>>, vector<2x16x128xf32>,
    %c0_73 = arith.constant 0 : index
    %c28_74 = arith.constant 28 : index
    %c0_75 = arith.constant 0 : index
    %59 = vector.load %arg39[%c0_73, %c28_74, %c0_75] : memref<2x48x128xf32, #tpu.memory_space<vmem>>, vector<2x16x128xf32>
    %c0_76 = arith.constant 0 : index
    %c30_77 = arith.constant 30 : index
    %c0_78 = arith.constant 0 : index
    %60 = vector.load %arg39[%c0_76, %c30_77, %c0_78] : memref<2x48x128xf32, #tpu.memory_space<vmem>>, vector<2x16x128xf32>
    %c0_79 = arith.constant 0 : index
    %c32_80 = arith.constant 32 : index
    %c0_81 = arith.constant 0 : index
    %61 = vector.load %arg39[%c0_79, %c32_80, %c0_81] : memref<2x48x128xf32, #tpu.memory_space<vmem>>, vector<2x16x128xf32>
    %62 = tpu.concatenate %59, %60, %61 in 2 : vector<2x16x128xf32>, vector<2x16x128xf32>, vector<2x16x128xf32> -> vector<2x16x384xf32>
    %63 = vector.shape_cast %62 : vector<2x16x384xf32> to vector<32x384xf32>
    %c0_82 = arith.constant 0 : index
    %c0_83 = arith.constant 0 : index
    %64 = vector.load %arg11[%c0_82, %c0_83] : memref<384x128xf32, #tpu.memory_space<vmem>>, vector<384x128xf32>
    %cst_84 = arith.constant dense<0.000000e+00> : vector<32x128xf32>
    %65 = tpu.matmul %63, %64, %cst_84 {dimension_numbers = #tpu.dot_dimension_numbers<[1], [0], [0], [1], [0, 0, 1, 1], [], []>} : vector<32x384xf32>, vector<384x128xf32>, vector<32x128xf32> -> vector<32x128xf32>
    %c0_85 = arith.constant 0 : index
    %c0_86 = arith.constant 0 : index
    %66 = vector.load %arg12[%c0_85, %c0_86] : memref<1x128xf32, #tpu.memory_space<vmem>>, vector<1x128xf32>
    %67 = vector.broadcast %66 : vector<1x128xf32> to vector<32x128xf32>
    %68 = arith.addf %65, %67 : vector<32x128xf32>
    %cst_87 = arith.constant 0.000000e+00 : f32
    %69 = vector.broadcast %cst_87 : f32 to vector<32x128xf32>
    %70 = arith.maximumf %68, %69 : vector<32x128xf32>
    %71 = arith.addf %70, %44 : vector<32x128xf32>
    %cst_88 = arith.constant 0.000000e+00 : f32
    %72 = vector.broadcast %cst_88 : f32 to vector<32x128xf32>
    %73 = arith.maximumf %71, %72 : vector<32x128xf32>
    %74 = vector.shape_cast %73 : vector<32x128xf32> to vector<2x16x128xf32>
    %c0_89 = arith.constant 0 : index
    %c32_90 = arith.constant 32 : index
    %c0_91 = arith.constant 0 : index
    %75 = vector.load %arg38[%c0_89, %c32_90, %c0_91] : memref<2x48x128xf32, #tpu.memory_space<vmem>>, vector<2x16x128xf32>
    tpu.vector_store %arg38[%c0_89, %c32_90, %c0_91], %74 {strides = array<i32>} : memref<2x48x128xf32, #tpu.memory_space<vmem>>, vector<2x16x128xf32>,
    %c0_92 = arith.constant 0 : index
    %c32_93 = arith.constant 32 : index
    %c0_94 = arith.constant 0 : index
    %76 = vector.load %arg38[%c0_92, %c32_93, %c0_94] : memref<2x48x128xf32, #tpu.memory_space<vmem>>, vector<2x16x128xf32>
    %77 = vector.shape_cast %76 : vector<2x16x128xf32> to vector<32x128xf32>
    %c0_95 = arith.constant 0 : index
    %c24 = arith.constant 24 : index
    %c0_96 = arith.constant 0 : index
    %78 = vector.load %arg38[%c0_95, %c24, %c0_96] : memref<2x48x128xf32, #tpu.memory_space<vmem>>, vector<2x16x128xf32>
    %c0_97 = arith.constant 0 : index
    %c28_98 = arith.constant 28 : index
    %c0_99 = arith.constant 0 : index
    %79 = vector.load %arg38[%c0_97, %c28_98, %c0_99] : memref<2x48x128xf32, #tpu.memory_space<vmem>>, vector<2x16x128xf32>
    %c0_100 = arith.constant 0 : index
    %c32_101 = arith.constant 32 : index
    %c0_102 = arith.constant 0 : index
    %80 = vector.load %arg38[%c0_100, %c32_101, %c0_102] : memref<2x48x128xf32, #tpu.memory_space<vmem>>, vector<2x16x128xf32>
    %81 = tpu.concatenate %78, %79, %80 in 2 : vector<2x16x128xf32>, vector<2x16x128xf32>, vector<2x16x128xf32> -> vector<2x16x384xf32>
    %82 = vector.shape_cast %81 : vector<2x16x384xf32> to vector<32x384xf32>
    %c0_103 = arith.constant 0 : index
    %c0_104 = arith.constant 0 : index
    %83 = vector.load %arg13[%c0_103, %c0_104] : memref<384x128xf32, #tpu.memory_space<vmem>>, vector<384x128xf32>
    %cst_105 = arith.constant dense<0.000000e+00> : vector<32x128xf32>
    %84 = tpu.matmul %82, %83, %cst_105 {dimension_numbers = #tpu.dot_dimension_numbers<[1], [0], [0], [1], [0, 0, 1, 1], [], []>} : vector<32x384xf32>, vector<384x128xf32>, vector<32x128xf32> -> vector<32x128xf32>
    %c0_106 = arith.constant 0 : index
    %c0_107 = arith.constant 0 : index
    %85 = vector.load %arg14[%c0_106, %c0_107] : memref<1x128xf32, #tpu.memory_space<vmem>>, vector<1x128xf32>
    %86 = vector.broadcast %85 : vector<1x128xf32> to vector<32x128xf32>
    %87 = arith.addf %84, %86 : vector<32x128xf32>
    %cst_108 = arith.constant 0.000000e+00 : f32
    %88 = vector.broadcast %cst_108 : f32 to vector<32x128xf32>
    %89 = arith.maximumf %87, %88 : vector<32x128xf32>
    %90 = vector.shape_cast %89 : vector<32x128xf32> to vector<2x16x128xf32>
    %c0_109 = arith.constant 0 : index
    %c32_110 = arith.constant 32 : index
    %c0_111 = arith.constant 0 : index
    %91 = vector.load %arg39[%c0_109, %c32_110, %c0_111] : memref<2x48x128xf32, #tpu.memory_space<vmem>>, vector<2x16x128xf32>
    tpu.vector_store %arg39[%c0_109, %c32_110, %c0_111], %90 {strides = array<i32>} : memref<2x48x128xf32, #tpu.memory_space<vmem>>, vector<2x16x128xf32>,
    %c0_112 = arith.constant 0 : index
    %c24_113 = arith.constant 24 : index
    %c0_114 = arith.constant 0 : index
    %92 = vector.load %arg39[%c0_112, %c24_113, %c0_114] : memref<2x48x128xf32, #tpu.memory_space<vmem>>, vector<2x16x128xf32>
    %c0_115 = arith.constant 0 : index
    %c28_116 = arith.constant 28 : index
    %c0_117 = arith.constant 0 : index
    %93 = vector.load %arg39[%c0_115, %c28_116, %c0_117] : memref<2x48x128xf32, #tpu.memory_space<vmem>>, vector<2x16x128xf32>
    %c0_118 = arith.constant 0 : index
    %c32_119 = arith.constant 32 : index
    %c0_120 = arith.constant 0 : index
    %94 = vector.load %arg39[%c0_118, %c32_119, %c0_120] : memref<2x48x128xf32, #tpu.memory_space<vmem>>, vector<2x16x128xf32>
    %95 = tpu.concatenate %92, %93, %94 in 2 : vector<2x16x128xf32>, vector<2x16x128xf32>, vector<2x16x128xf32> -> vector<2x16x384xf32>
    %96 = vector.shape_cast %95 : vector<2x16x384xf32> to vector<32x384xf32>
    %c0_121 = arith.constant 0 : index
    %c0_122 = arith.constant 0 : index
    %97 = vector.load %arg15[%c0_121, %c0_122] : memref<384x128xf32, #tpu.memory_space<vmem>>, vector<384x128xf32>
    %cst_123 = arith.constant dense<0.000000e+00> : vector<32x128xf32>
    %98 = tpu.matmul %96, %97, %cst_123 {dimension_numbers = #tpu.dot_dimension_numbers<[1], [0], [0], [1], [0, 0, 1, 1], [], []>} : vector<32x384xf32>, vector<384x128xf32>, vector<32x128xf32> -> vector<32x128xf32>
    %c0_124 = arith.constant 0 : index
    %c0_125 = arith.constant 0 : index
    %99 = vector.load %arg16[%c0_124, %c0_125] : memref<1x128xf32, #tpu.memory_space<vmem>>, vector<1x128xf32>
    %100 = vector.broadcast %99 : vector<1x128xf32> to vector<32x128xf32>
    %101 = arith.addf %98, %100 : vector<32x128xf32>
    %cst_126 = arith.constant 0.000000e+00 : f32
    %102 = vector.broadcast %cst_126 : f32 to vector<32x128xf32>
    %103 = arith.maximumf %101, %102 : vector<32x128xf32>
    %c0_127 = arith.constant 0 : index
    %c0_128 = arith.constant 0 : index
    %104 = vector.load %arg17[%c0_127, %c0_128] : memref<128x128xf32, #tpu.memory_space<vmem>>, vector<128x128xf32>
    %cst_129 = arith.constant dense<0.000000e+00> : vector<32x128xf32>
    %105 = tpu.matmul %77, %104, %cst_129 {dimension_numbers = #tpu.dot_dimension_numbers<[1], [0], [0], [1], [0, 0, 1, 1], [], []>} : vector<32x128xf32>, vector<128x128xf32>, vector<32x128xf32> -> vector<32x128xf32>
    %c0_130 = arith.constant 0 : index
    %c0_131 = arith.constant 0 : index
    %106 = vector.load %arg18[%c0_130, %c0_131] : memref<1x128xf32, #tpu.memory_space<vmem>>, vector<1x128xf32>
    %107 = vector.broadcast %106 : vector<1x128xf32> to vector<32x128xf32>
    %108 = arith.addf %105, %107 : vector<32x128xf32>
    %109 = arith.addf %103, %108 : vector<32x128xf32>
    %cst_132 = arith.constant 0.000000e+00 : f32
    %110 = vector.broadcast %cst_132 : f32 to vector<32x128xf32>
    %111 = arith.maximumf %109, %110 : vector<32x128xf32>
    %112 = vector.shape_cast %111 : vector<32x128xf32> to vector<2x16x128xf32>
    %c0_133 = arith.constant 0 : index
    %c32_134 = arith.constant 32 : index
    %c0_135 = arith.constant 0 : index
    %113 = vector.load %arg38[%c0_133, %c32_134, %c0_135] : memref<2x48x128xf32, #tpu.memory_space<vmem>>, vector<2x16x128xf32>
    tpu.vector_store %arg38[%c0_133, %c32_134, %c0_135], %112 {strides = array<i32>} : memref<2x48x128xf32, #tpu.memory_space<vmem>>, vector<2x16x128xf32>,
    %c0_136 = arith.constant 0 : index
    %c32_137 = arith.constant 32 : index
    %c0_138 = arith.constant 0 : index
    %114 = vector.load %arg38[%c0_136, %c32_137, %c0_138] : memref<2x48x128xf32, #tpu.memory_space<vmem>>, vector<2x16x128xf32>
    %115 = vector.shape_cast %114 : vector<2x16x128xf32> to vector<32x128xf32>
    %c0_139 = arith.constant 0 : index
    %c16 = arith.constant 16 : index
    %c0_140 = arith.constant 0 : index
    %116 = vector.load %arg38[%c0_139, %c16, %c0_140] : memref<2x48x128xf32, #tpu.memory_space<vmem>>, vector<2x16x128xf32>
    %c0_141 = arith.constant 0 : index
    %c24_142 = arith.constant 24 : index
    %c0_143 = arith.constant 0 : index
    %117 = vector.load %arg38[%c0_141, %c24_142, %c0_143] : memref<2x48x128xf32, #tpu.memory_space<vmem>>, vector<2x16x128xf32>
    %c0_144 = arith.constant 0 : index
    %c32_145 = arith.constant 32 : index
    %c0_146 = arith.constant 0 : index
    %118 = vector.load %arg38[%c0_144, %c32_145, %c0_146] : memref<2x48x128xf32, #tpu.memory_space<vmem>>, vector<2x16x128xf32>
    %119 = tpu.concatenate %116, %117, %118 in 2 : vector<2x16x128xf32>, vector<2x16x128xf32>, vector<2x16x128xf32> -> vector<2x16x384xf32>
    %120 = vector.shape_cast %119 : vector<2x16x384xf32> to vector<32x384xf32>
    %c0_147 = arith.constant 0 : index
    %c0_148 = arith.constant 0 : index
    %121 = vector.load %arg19[%c0_147, %c0_148] : memref<384x128xf32, #tpu.memory_space<vmem>>, vector<384x128xf32>
    %cst_149 = arith.constant dense<0.000000e+00> : vector<32x128xf32>
    %122 = tpu.matmul %120, %121, %cst_149 {dimension_numbers = #tpu.dot_dimension_numbers<[1], [0], [0], [1], [0, 0, 1, 1], [], []>} : vector<32x384xf32>, vector<384x128xf32>, vector<32x128xf32> -> vector<32x128xf32>
    %c0_150 = arith.constant 0 : index
    %c0_151 = arith.constant 0 : index
    %123 = vector.load %arg20[%c0_150, %c0_151] : memref<1x128xf32, #tpu.memory_space<vmem>>, vector<1x128xf32>
    %124 = vector.broadcast %123 : vector<1x128xf32> to vector<32x128xf32>
    %125 = arith.addf %122, %124 : vector<32x128xf32>
    %cst_152 = arith.constant 0.000000e+00 : f32
    %126 = vector.broadcast %cst_152 : f32 to vector<32x128xf32>
    %127 = arith.maximumf %125, %126 : vector<32x128xf32>
    %128 = vector.shape_cast %127 : vector<32x128xf32> to vector<2x16x128xf32>
    %c0_153 = arith.constant 0 : index
    %c32_154 = arith.constant 32 : index
    %c0_155 = arith.constant 0 : index
    %129 = vector.load %arg39[%c0_153, %c32_154, %c0_155] : memref<2x48x128xf32, #tpu.memory_space<vmem>>, vector<2x16x128xf32>
    tpu.vector_store %arg39[%c0_153, %c32_154, %c0_155], %128 {strides = array<i32>} : memref<2x48x128xf32, #tpu.memory_space<vmem>>, vector<2x16x128xf32>,
    %c0_156 = arith.constant 0 : index
    %c16_157 = arith.constant 16 : index
    %c0_158 = arith.constant 0 : index
    %130 = vector.load %arg39[%c0_156, %c16_157, %c0_158] : memref<2x48x128xf32, #tpu.memory_space<vmem>>, vector<2x16x128xf32>
    %c0_159 = arith.constant 0 : index
    %c24_160 = arith.constant 24 : index
    %c0_161 = arith.constant 0 : index
    %131 = vector.load %arg39[%c0_159, %c24_160, %c0_161] : memref<2x48x128xf32, #tpu.memory_space<vmem>>, vector<2x16x128xf32>
    %c0_162 = arith.constant 0 : index
    %c32_163 = arith.constant 32 : index
    %c0_164 = arith.constant 0 : index
    %132 = vector.load %arg39[%c0_162, %c32_163, %c0_164] : memref<2x48x128xf32, #tpu.memory_space<vmem>>, vector<2x16x128xf32>
    %133 = tpu.concatenate %130, %131, %132 in 2 : vector<2x16x128xf32>, vector<2x16x128xf32>, vector<2x16x128xf32> -> vector<2x16x384xf32>
    %134 = vector.shape_cast %133 : vector<2x16x384xf32> to vector<32x384xf32>
    %c0_165 = arith.constant 0 : index
    %c0_166 = arith.constant 0 : index
    %135 = vector.load %arg21[%c0_165, %c0_166] : memref<384x128xf32, #tpu.memory_space<vmem>>, vector<384x128xf32>
    %cst_167 = arith.constant dense<0.000000e+00> : vector<32x128xf32>
    %136 = tpu.matmul %134, %135, %cst_167 {dimension_numbers = #tpu.dot_dimension_numbers<[1], [0], [0], [1], [0, 0, 1, 1], [], []>} : vector<32x384xf32>, vector<384x128xf32>, vector<32x128xf32> -> vector<32x128xf32>
    %c0_168 = arith.constant 0 : index
    %c0_169 = arith.constant 0 : index
    %137 = vector.load %arg22[%c0_168, %c0_169] : memref<1x128xf32, #tpu.memory_space<vmem>>, vector<1x128xf32>
    %138 = vector.broadcast %137 : vector<1x128xf32> to vector<32x128xf32>
    %139 = arith.addf %136, %138 : vector<32x128xf32>
    %cst_170 = arith.constant 0.000000e+00 : f32
    %140 = vector.broadcast %cst_170 : f32 to vector<32x128xf32>
    %141 = arith.maximumf %139, %140 : vector<32x128xf32>
    %142 = arith.addf %141, %115 : vector<32x128xf32>
    %cst_171 = arith.constant 0.000000e+00 : f32
    %143 = vector.broadcast %cst_171 : f32 to vector<32x128xf32>
    %144 = arith.maximumf %142, %143 : vector<32x128xf32>
    %145 = vector.shape_cast %144 : vector<32x128xf32> to vector<2x16x128xf32>
    %c0_172 = arith.constant 0 : index
    %c32_173 = arith.constant 32 : index
    %c0_174 = arith.constant 0 : index
    %146 = vector.load %arg38[%c0_172, %c32_173, %c0_174] : memref<2x48x128xf32, #tpu.memory_space<vmem>>, vector<2x16x128xf32>
    tpu.vector_store %arg38[%c0_172, %c32_173, %c0_174], %145 {strides = array<i32>} : memref<2x48x128xf32, #tpu.memory_space<vmem>>, vector<2x16x128xf32>,
    %c0_175 = arith.constant 0 : index
    %c32_176 = arith.constant 32 : index
    %c0_177 = arith.constant 0 : index
    %147 = vector.load %arg38[%c0_175, %c32_176, %c0_177] : memref<2x48x128xf32, #tpu.memory_space<vmem>>, vector<2x16x128xf32>
    %148 = vector.shape_cast %147 : vector<2x16x128xf32> to vector<32x128xf32>
    %c0_178 = arith.constant 0 : index
    %c0_179 = arith.constant 0 : index
    %c0_180 = arith.constant 0 : index
    %149 = vector.load %arg38[%c0_178, %c0_179, %c0_180] : memref<2x48x128xf32, #tpu.memory_space<vmem>>, vector<2x16x128xf32>
    %c0_181 = arith.constant 0 : index
    %c16_182 = arith.constant 16 : index
    %c0_183 = arith.constant 0 : index
    %150 = vector.load %arg38[%c0_181, %c16_182, %c0_183] : memref<2x48x128xf32, #tpu.memory_space<vmem>>, vector<2x16x128xf32>
    %c0_184 = arith.constant 0 : index
    %c32_185 = arith.constant 32 : index
    %c0_186 = arith.constant 0 : index
    %151 = vector.load %arg38[%c0_184, %c32_185, %c0_186] : memref<2x48x128xf32, #tpu.memory_space<vmem>>, vector<2x16x128xf32>
    %152 = tpu.concatenate %149, %150, %151 in 2 : vector<2x16x128xf32>, vector<2x16x128xf32>, vector<2x16x128xf32> -> vector<2x16x384xf32>
    %153 = vector.shape_cast %152 : vector<2x16x384xf32> to vector<32x384xf32>
    %c0_187 = arith.constant 0 : index
    %c0_188 = arith.constant 0 : index
    %154 = vector.load %arg23[%c0_187, %c0_188] : memref<384x128xf32, #tpu.memory_space<vmem>>, vector<384x128xf32>
    %cst_189 = arith.constant dense<0.000000e+00> : vector<32x128xf32>
    %155 = tpu.matmul %153, %154, %cst_189 {dimension_numbers = #tpu.dot_dimension_numbers<[1], [0], [0], [1], [0, 0, 1, 1], [], []>} : vector<32x384xf32>, vector<384x128xf32>, vector<32x128xf32> -> vector<32x128xf32>
    %c0_190 = arith.constant 0 : index
    %c0_191 = arith.constant 0 : index
    %156 = vector.load %arg24[%c0_190, %c0_191] : memref<1x128xf32, #tpu.memory_space<vmem>>, vector<1x128xf32>
    %157 = vector.broadcast %156 : vector<1x128xf32> to vector<32x128xf32>
    %158 = arith.addf %155, %157 : vector<32x128xf32>
    %cst_192 = arith.constant 0.000000e+00 : f32
    %159 = vector.broadcast %cst_192 : f32 to vector<32x128xf32>
    %160 = arith.maximumf %158, %159 : vector<32x128xf32>
    %161 = vector.shape_cast %160 : vector<32x128xf32> to vector<2x16x128xf32>
    %c0_193 = arith.constant 0 : index
    %c32_194 = arith.constant 32 : index
    %c0_195 = arith.constant 0 : index
    %162 = vector.load %arg39[%c0_193, %c32_194, %c0_195] : memref<2x48x128xf32, #tpu.memory_space<vmem>>, vector<2x16x128xf32>
    tpu.vector_store %arg39[%c0_193, %c32_194, %c0_195], %161 {strides = array<i32>} : memref<2x48x128xf32, #tpu.memory_space<vmem>>, vector<2x16x128xf32>,
    %c0_196 = arith.constant 0 : index
    %c0_197 = arith.constant 0 : index
    %c0_198 = arith.constant 0 : index
    %163 = vector.load %arg39[%c0_196, %c0_197, %c0_198] : memref<2x48x128xf32, #tpu.memory_space<vmem>>, vector<2x16x128xf32>
    %c0_199 = arith.constant 0 : index
    %c16_200 = arith.constant 16 : index
    %c0_201 = arith.constant 0 : index
    %164 = vector.load %arg39[%c0_199, %c16_200, %c0_201] : memref<2x48x128xf32, #tpu.memory_space<vmem>>, vector<2x16x128xf32>
    %c0_202 = arith.constant 0 : index
    %c32_203 = arith.constant 32 : index
    %c0_204 = arith.constant 0 : index
    %165 = vector.load %arg39[%c0_202, %c32_203, %c0_204] : memref<2x48x128xf32, #tpu.memory_space<vmem>>, vector<2x16x128xf32>
    %166 = tpu.concatenate %163, %164, %165 in 2 : vector<2x16x128xf32>, vector<2x16x128xf32>, vector<2x16x128xf32> -> vector<2x16x384xf32>
    %167 = vector.shape_cast %166 : vector<2x16x384xf32> to vector<32x384xf32>
    %c0_205 = arith.constant 0 : index
    %c0_206 = arith.constant 0 : index
    %168 = vector.load %arg25[%c0_205, %c0_206] : memref<384x128xf32, #tpu.memory_space<vmem>>, vector<384x128xf32>
    %cst_207 = arith.constant dense<0.000000e+00> : vector<32x128xf32>
    %169 = tpu.matmul %167, %168, %cst_207 {dimension_numbers = #tpu.dot_dimension_numbers<[1], [0], [0], [1], [0, 0, 1, 1], [], []>} : vector<32x384xf32>, vector<384x128xf32>, vector<32x128xf32> -> vector<32x128xf32>
    %c0_208 = arith.constant 0 : index
    %c0_209 = arith.constant 0 : index
    %170 = vector.load %arg26[%c0_208, %c0_209] : memref<1x128xf32, #tpu.memory_space<vmem>>, vector<1x128xf32>
    %171 = vector.broadcast %170 : vector<1x128xf32> to vector<32x128xf32>
    %172 = arith.addf %169, %171 : vector<32x128xf32>
    %cst_210 = arith.constant 0.000000e+00 : f32
    %173 = vector.broadcast %cst_210 : f32 to vector<32x128xf32>
    %174 = arith.maximumf %172, %173 : vector<32x128xf32>
    %c0_211 = arith.constant 0 : index
    %c0_212 = arith.constant 0 : index
    %175 = vector.load %arg27[%c0_211, %c0_212] : memref<128x128xf32, #tpu.memory_space<vmem>>, vector<128x128xf32>
    %cst_213 = arith.constant dense<0.000000e+00> : vector<32x128xf32>
    %176 = tpu.matmul %148, %175, %cst_213 {dimension_numbers = #tpu.dot_dimension_numbers<[1], [0], [0], [1], [0, 0, 1, 1], [], []>} : vector<32x128xf32>, vector<128x128xf32>, vector<32x128xf32> -> vector<32x128xf32>
    %c0_214 = arith.constant 0 : index
    %c0_215 = arith.constant 0 : index
    %177 = vector.load %arg28[%c0_214, %c0_215] : memref<1x128xf32, #tpu.memory_space<vmem>>, vector<1x128xf32>
    %178 = vector.broadcast %177 : vector<1x128xf32> to vector<32x128xf32>
    %179 = arith.addf %176, %178 : vector<32x128xf32>
    %180 = arith.addf %174, %179 : vector<32x128xf32>
    %cst_216 = arith.constant 0.000000e+00 : f32
    %181 = vector.broadcast %cst_216 : f32 to vector<32x128xf32>
    %182 = arith.maximumf %180, %181 : vector<32x128xf32>
    %183 = vector.shape_cast %182 : vector<32x128xf32> to vector<2x16x128xf32>
    %c0_217 = arith.constant 0 : index
    %c32_218 = arith.constant 32 : index
    %c0_219 = arith.constant 0 : index
    %184 = vector.load %arg38[%c0_217, %c32_218, %c0_219] : memref<2x48x128xf32, #tpu.memory_space<vmem>>, vector<2x16x128xf32>
    tpu.vector_store %arg38[%c0_217, %c32_218, %c0_219], %183 {strides = array<i32>} : memref<2x48x128xf32, #tpu.memory_space<vmem>>, vector<2x16x128xf32>,
    %c0_220 = arith.constant 0 : index
    %c32_221 = arith.constant 32 : index
    %c0_222 = arith.constant 0 : index
    %185 = vector.load %arg38[%c0_220, %c32_221, %c0_222] : memref<2x48x128xf32, #tpu.memory_space<vmem>>, vector<2x16x128xf32>
    %186 = vector.shape_cast %185 : vector<2x16x128xf32> to vector<32x128xf32>
    %c0_223 = arith.constant 0 : index
    %c0_224 = arith.constant 0 : index
    %187 = vector.load %arg29[%c0_223, %c0_224] : memref<128x128xf32, #tpu.memory_space<vmem>>, vector<128x128xf32>
    %cst_225 = arith.constant dense<0.000000e+00> : vector<32x128xf32>
    %188 = tpu.matmul %186, %187, %cst_225 {dimension_numbers = #tpu.dot_dimension_numbers<[1], [0], [0], [1], [0, 0, 1, 1], [], []>} : vector<32x128xf32>, vector<128x128xf32>, vector<32x128xf32> -> vector<32x128xf32>
    %c0_226 = arith.constant 0 : index
    %c0_227 = arith.constant 0 : index
    %189 = vector.load %arg30[%c0_226, %c0_227] : memref<1x128xf32, #tpu.memory_space<vmem>>, vector<1x128xf32>
    %190 = vector.broadcast %189 : vector<1x128xf32> to vector<32x128xf32>
    %191 = arith.addf %188, %190 : vector<32x128xf32>
    %cst_228 = arith.constant 0.000000e+00 : f32
    %192 = vector.broadcast %cst_228 : f32 to vector<32x128xf32>
    %193 = arith.maximumf %191, %192 : vector<32x128xf32>
    %c0_229 = arith.constant 0 : index
    %c0_230 = arith.constant 0 : index
    %194 = vector.load %arg31[%c0_229, %c0_230] : memref<128x128xf32, #tpu.memory_space<vmem>>, vector<128x128xf32>
    %cst_231 = arith.constant dense<0.000000e+00> : vector<32x128xf32>
    %195 = tpu.matmul %193, %194, %cst_231 {dimension_numbers = #tpu.dot_dimension_numbers<[1], [0], [0], [1], [0, 0, 1, 1], [], []>} : vector<32x128xf32>, vector<128x128xf32>, vector<32x128xf32> -> vector<32x128xf32>
    %c0_232 = arith.constant 0 : index
    %c0_233 = arith.constant 0 : index
    %196 = vector.load %arg32[%c0_232, %c0_233] : memref<1x128xf32, #tpu.memory_space<vmem>>, vector<1x128xf32>
    %197 = vector.broadcast %196 : vector<1x128xf32> to vector<32x128xf32>
    %198 = arith.addf %195, %197 : vector<32x128xf32>
    %c0_234 = arith.constant 0 : index
    %c0_235 = arith.constant 0 : index
    %199 = vector.load %arg33[%c0_234, %c0_235] : memref<128x128xf32, #tpu.memory_space<vmem>>, vector<128x128xf32>
    %cst_236 = arith.constant dense<0.000000e+00> : vector<32x128xf32>
    %200 = tpu.matmul %186, %199, %cst_236 {dimension_numbers = #tpu.dot_dimension_numbers<[1], [0], [0], [1], [0, 0, 1, 1], [], []>} : vector<32x128xf32>, vector<128x128xf32>, vector<32x128xf32> -> vector<32x128xf32>
    %c0_237 = arith.constant 0 : index
    %c0_238 = arith.constant 0 : index
    %201 = vector.load %arg34[%c0_237, %c0_238] : memref<1x128xf32, #tpu.memory_space<vmem>>, vector<1x128xf32>
    %202 = vector.broadcast %201 : vector<1x128xf32> to vector<32x128xf32>
    %203 = arith.addf %200, %202 : vector<32x128xf32>
    %cst_239 = arith.constant 0.000000e+00 : f32
    %204 = vector.broadcast %cst_239 : f32 to vector<32x128xf32>
    %205 = arith.maximumf %203, %204 : vector<32x128xf32>
    %c0_240 = arith.constant 0 : index
    %c0_241 = arith.constant 0 : index
    %206 = vector.load %arg35[%c0_240, %c0_241] : memref<128x128xf32, #tpu.memory_space<vmem>>, vector<128x128xf32>
    %cst_242 = arith.constant dense<0.000000e+00> : vector<32x128xf32>
    %207 = tpu.matmul %205, %206, %cst_242 {dimension_numbers = #tpu.dot_dimension_numbers<[1], [0], [0], [1], [0, 0, 1, 1], [], []>} : vector<32x128xf32>, vector<128x128xf32>, vector<32x128xf32> -> vector<32x128xf32>
    %c0_243 = arith.constant 0 : index
    %c0_244 = arith.constant 0 : index
    %208 = vector.load %arg36[%c0_243, %c0_244] : memref<1x128xf32, #tpu.memory_space<vmem>>, vector<1x128xf32>
    %209 = vector.broadcast %208 : vector<1x128xf32> to vector<32x128xf32>
    %210 = arith.addf %207, %209 : vector<32x128xf32>
    %c0_245 = arith.constant 0 : index
    %c0_246 = arith.constant 0 : index
    %211 = vector.load %arg2[%c0_245, %c0_246] : memref<32x128xf32, #tpu.memory_space<vmem>>, vector<32x128xf32>
    %cst_247 = arith.constant 5.000000e-01 : f32
    %212 = vector.broadcast %cst_247 : f32 to vector<32x128xf32>
    %213 = arith.mulf %212, %210 : vector<32x128xf32>
    %214 = math.exp %213 : vector<32x128xf32>
    %215 = arith.mulf %211, %214 : vector<32x128xf32>
    %216 = arith.addf %198, %215 : vector<32x128xf32>
    %c0_248 = arith.constant 0 : index
    %c0_249 = arith.constant 0 : index
    %217 = vector.load %arg37[%c0_248, %c0_249] : memref<32x128xf32, #tpu.memory_space<vmem>>, vector<32x128xf32>
    tpu.vector_store %arg37[%c0_248, %c0_249], %216 {strides = array<i32>} : memref<32x128xf32, #tpu.memory_space<vmem>>, vector<32x128xf32>,
    return
  }
  func.func @transform_0(%arg0: i32) -> (i32, i32, i32) {
    %c0_i32 = arith.constant 0 : i32
    %c0_i32_0 = arith.constant 0 : i32
    %c0_i32_1 = arith.constant 0 : i32
    %c0_i32_2 = arith.constant 0 : i32
    return %c0_i32, %c0_i32_0, %c0_i32_1 : i32, i32, i32
  }
  func.func @transform_1(%arg0: i32) -> (i32, i32) {
    %c0_i32 = arith.constant 0 : i32
    %c0_i32_0 = arith.constant 0 : i32
    %c0_i32_1 = arith.constant 0 : i32
    return %c0_i32, %c0_i32_0 : i32, i32
  }
  func.func @transform_2(%arg0: i32) -> (i32, i32) {
    %c0_i32 = arith.constant 0 : i32
    %c0_i32_0 = arith.constant 0 : i32
    %c0_i32_1 = arith.constant 0 : i32
    return %c0_i32, %c0_i32_0 : i32, i32
  }
  func.func @transform_3(%arg0: i32) -> (i32, i32) {
    %c0_i32 = arith.constant 0 : i32
    %c0_i32_0 = arith.constant 0 : i32
    %c0_i32_1 = arith.constant 0 : i32
    return %c0_i32, %c0_i32_0 : i32, i32
  }
  func.func @transform_4(%arg0: i32) -> (i32, i32) {
    %c0_i32 = arith.constant 0 : i32
    %c0_i32_0 = arith.constant 0 : i32
    %c0_i32_1 = arith.constant 0 : i32
    return %c0_i32, %c0_i32_0 : i32, i32
  }
  func.func @transform_5(%arg0: i32) -> (i32, i32) {
    %c0_i32 = arith.constant 0 : i32
    %c0_i32_0 = arith.constant 0 : i32
    %c0_i32_1 = arith.constant 0 : i32
    return %c0_i32, %c0_i32_0 : i32, i32
  }
  func.func @transform_6(%arg0: i32) -> (i32, i32) {
    %c0_i32 = arith.constant 0 : i32
    %c0_i32_0 = arith.constant 0 : i32
    %c0_i32_1 = arith.constant 0 : i32
    return %c0_i32, %c0_i32_0 : i32, i32
  }
  func.func @transform_7(%arg0: i32) -> (i32, i32) {
    %c0_i32 = arith.constant 0 : i32
    %c0_i32_0 = arith.constant 0 : i32
    %c0_i32_1 = arith.constant 0 : i32
    return %c0_i32, %c0_i32_0 : i32, i32
  }
  func.func @transform_8(%arg0: i32) -> (i32, i32) {
    %c0_i32 = arith.constant 0 : i32
    %c0_i32_0 = arith.constant 0 : i32
    %c0_i32_1 = arith.constant 0 : i32
    return %c0_i32, %c0_i32_0 : i32, i32
  }
  func.func @transform_9(%arg0: i32) -> (i32, i32) {
    %c0_i32 = arith.constant 0 : i32
    %c0_i32_0 = arith.constant 0 : i32
    %c0_i32_1 = arith.constant 0 : i32
    return %c0_i32, %c0_i32_0 : i32, i32
  }
  func.func @transform_10(%arg0: i32) -> (i32, i32) {
    %c0_i32 = arith.constant 0 : i32
    %c0_i32_0 = arith.constant 0 : i32
    %c0_i32_1 = arith.constant 0 : i32
    return %c0_i32, %c0_i32_0 : i32, i32
  }
  func.func @transform_11(%arg0: i32) -> (i32, i32) {
    %c0_i32 = arith.constant 0 : i32
    %c0_i32_0 = arith.constant 0 : i32
    %c0_i32_1 = arith.constant 0 : i32
    return %c0_i32, %c0_i32_0 : i32, i32
  }
  func.func @transform_12(%arg0: i32) -> (i32, i32) {
    %c0_i32 = arith.constant 0 : i32
    %c0_i32_0 = arith.constant 0 : i32
    %c0_i32_1 = arith.constant 0 : i32
    return %c0_i32, %c0_i32_0 : i32, i32
  }
  func.func @transform_13(%arg0: i32) -> (i32, i32) {
    %c0_i32 = arith.constant 0 : i32
    %c0_i32_0 = arith.constant 0 : i32
    %c0_i32_1 = arith.constant 0 : i32
    return %c0_i32, %c0_i32_0 : i32, i32
  }
  func.func @transform_14(%arg0: i32) -> (i32, i32) {
    %c0_i32 = arith.constant 0 : i32
    %c0_i32_0 = arith.constant 0 : i32
    %c0_i32_1 = arith.constant 0 : i32
    return %c0_i32, %c0_i32_0 : i32, i32
  }
  func.func @transform_15(%arg0: i32) -> (i32, i32) {
    %c0_i32 = arith.constant 0 : i32
    %c0_i32_0 = arith.constant 0 : i32
    %c0_i32_1 = arith.constant 0 : i32
    return %c0_i32, %c0_i32_0 : i32, i32
  }
  func.func @transform_16(%arg0: i32) -> (i32, i32) {
    %c0_i32 = arith.constant 0 : i32
    %c0_i32_0 = arith.constant 0 : i32
    %c0_i32_1 = arith.constant 0 : i32
    return %c0_i32, %c0_i32_0 : i32, i32
  }
  func.func @transform_17(%arg0: i32) -> (i32, i32) {
    %c0_i32 = arith.constant 0 : i32
    %c0_i32_0 = arith.constant 0 : i32
    %c0_i32_1 = arith.constant 0 : i32
    return %c0_i32, %c0_i32_0 : i32, i32
  }
  func.func @transform_18(%arg0: i32) -> (i32, i32) {
    %c0_i32 = arith.constant 0 : i32
    %c0_i32_0 = arith.constant 0 : i32
    %c0_i32_1 = arith.constant 0 : i32
    return %c0_i32, %c0_i32_0 : i32, i32
  }
  func.func @transform_19(%arg0: i32) -> (i32, i32) {
    %c0_i32 = arith.constant 0 : i32
    %c0_i32_0 = arith.constant 0 : i32
    %c0_i32_1 = arith.constant 0 : i32
    return %c0_i32, %c0_i32_0 : i32, i32
  }
  func.func @transform_20(%arg0: i32) -> (i32, i32) {
    %c0_i32 = arith.constant 0 : i32
    %c0_i32_0 = arith.constant 0 : i32
    %c0_i32_1 = arith.constant 0 : i32
    return %c0_i32, %c0_i32_0 : i32, i32
  }
  func.func @transform_21(%arg0: i32) -> (i32, i32) {
    %c0_i32 = arith.constant 0 : i32
    %c0_i32_0 = arith.constant 0 : i32
    %c0_i32_1 = arith.constant 0 : i32
    return %c0_i32, %c0_i32_0 : i32, i32
  }
  func.func @transform_22(%arg0: i32) -> (i32, i32) {
    %c0_i32 = arith.constant 0 : i32
    %c0_i32_0 = arith.constant 0 : i32
    %c0_i32_1 = arith.constant 0 : i32
    return %c0_i32, %c0_i32_0 : i32, i32
  }
  func.func @transform_23(%arg0: i32) -> (i32, i32) {
    %c0_i32 = arith.constant 0 : i32
    %c0_i32_0 = arith.constant 0 : i32
    %c0_i32_1 = arith.constant 0 : i32
    return %c0_i32, %c0_i32_0 : i32, i32
  }
  func.func @transform_24(%arg0: i32) -> (i32, i32) {
    %c0_i32 = arith.constant 0 : i32
    %c0_i32_0 = arith.constant 0 : i32
    %c0_i32_1 = arith.constant 0 : i32
    return %c0_i32, %c0_i32_0 : i32, i32
  }
  func.func @transform_25(%arg0: i32) -> (i32, i32) {
    %c0_i32 = arith.constant 0 : i32
    %c0_i32_0 = arith.constant 0 : i32
    %c0_i32_1 = arith.constant 0 : i32
    return %c0_i32, %c0_i32_0 : i32, i32
  }
  func.func @transform_26(%arg0: i32) -> (i32, i32) {
    %c0_i32 = arith.constant 0 : i32
    %c0_i32_0 = arith.constant 0 : i32
    %c0_i32_1 = arith.constant 0 : i32
    return %c0_i32, %c0_i32_0 : i32, i32
  }
  func.func @transform_27(%arg0: i32) -> (i32, i32) {
    %c0_i32 = arith.constant 0 : i32
    %c0_i32_0 = arith.constant 0 : i32
    %c0_i32_1 = arith.constant 0 : i32
    return %c0_i32, %c0_i32_0 : i32, i32
  }
  func.func @transform_28(%arg0: i32) -> (i32, i32) {
    %c0_i32 = arith.constant 0 : i32
    %c0_i32_0 = arith.constant 0 : i32
    %c0_i32_1 = arith.constant 0 : i32
    return %c0_i32, %c0_i32_0 : i32, i32
  }
  func.func @transform_29(%arg0: i32) -> (i32, i32) {
    %c0_i32 = arith.constant 0 : i32
    %c0_i32_0 = arith.constant 0 : i32
    %c0_i32_1 = arith.constant 0 : i32
    return %c0_i32, %c0_i32_0 : i32, i32
  }
  func.func @transform_30(%arg0: i32) -> (i32, i32) {
    %c0_i32 = arith.constant 0 : i32
    %c0_i32_0 = arith.constant 0 : i32
    %c0_i32_1 = arith.constant 0 : i32
    return %c0_i32, %c0_i32_0 : i32, i32
  }
  func.func @transform_31(%arg0: i32) -> (i32, i32) {
    %c0_i32 = arith.constant 0 : i32
    %c0_i32_0 = arith.constant 0 : i32
    %c0_i32_1 = arith.constant 0 : i32
    return %c0_i32, %c0_i32_0 : i32, i32
  }
  func.func @transform_32(%arg0: i32) -> (i32, i32) {
    %c0_i32 = arith.constant 0 : i32
    %c0_i32_0 = arith.constant 0 : i32
    %c0_i32_1 = arith.constant 0 : i32
    return %c0_i32, %c0_i32_0 : i32, i32
  }
  func.func @transform_33(%arg0: i32) -> (i32, i32) {
    %c0_i32 = arith.constant 0 : i32
    %c0_i32_0 = arith.constant 0 : i32
    %c0_i32_1 = arith.constant 0 : i32
    return %c0_i32, %c0_i32_0 : i32, i32
  }
  func.func @transform_34(%arg0: i32) -> (i32, i32) {
    %c0_i32 = arith.constant 0 : i32
    %c0_i32_0 = arith.constant 0 : i32
    %c0_i32_1 = arith.constant 0 : i32
    return %c0_i32, %c0_i32_0 : i32, i32
  }
  func.func @transform_35(%arg0: i32) -> (i32, i32) {
    %c0_i32 = arith.constant 0 : i32
    %c0_i32_0 = arith.constant 0 : i32
    %c0_i32_1 = arith.constant 0 : i32
    return %c0_i32, %c0_i32_0 : i32, i32
  }
  func.func @transform_36(%arg0: i32) -> (i32, i32) {
    %c0_i32 = arith.constant 0 : i32
    %c0_i32_0 = arith.constant 0 : i32
    %c0_i32_1 = arith.constant 0 : i32
    return %c0_i32, %c0_i32_0 : i32, i32
  }
}

</mosaic_0001>

<bundles_post_ra>
// kernel: audio_enc_forward.1
= control target key start
LH: loop header
LB: loop body
LE: loop exit
PB: predicated region body
PF: predicated region fallthrough
CT: control target
= control target key end

     0   :  { %s7244_s6 = smov 1   ;;  %s7245_s10 = smov 2   ;;  %s7949_s0 = inlined_call_operand.smem [shape: u32[37], index: -1, kind: input, shape index: {}] }
   0x1   :  { %s7328_s5 = sld [smem:[%s7949_s0]]   ;;  %s7246_s14 = smov 3  }
   0x2   :  { %s7333_s9 = sld [smem:[%s7949_s0 + %s7244_s6]]   ;;  %s7247_s18 = smov 4  }
   0x3   :  { %s7338_s13 = sld [smem:[%s7949_s0 + %s7245_s10]]   ;;  %s7248_s22 = smov 5  }
   0x4   :  { %s7343_s17 = sld [smem:[%s7949_s0 + %s7246_s14]]   ;;  %s7249_s26 = smov 6  }
   0x5   :  { %s7348_s21 = sld [smem:[%s7949_s0 + %s7247_s18]]   ;;  %s7250_s30 = smov 7  }
   0x6   :  { %s7353_s25 = sld [smem:[%s7949_s0 + %s7248_s22]]   ;;  %s7251_s4 = smov 8  }
   0x7   :  { %7969 = sst [smem:[#allocation81_spill]] %s7328_s5  ;;  %s7252_s10 = smov 9  }
   0x8   :  { %s7358_s29 = sld [smem:[%s7949_s0 + %s7249_s26]]   ;;  %s7253_s15 = smov 10  }
   0x9   :  { %7970 = sst [smem:[#allocation82_spill]] %s7338_s13  ;;  %s7254_s20 = smov 11  }
   0xa   :  { %s7363_s3 = sld [smem:[%s7949_s0 + %s7250_s30]]   ;;  %s7255_s26 = smov 12  }
   0xb   :  { %7971 = sst [smem:[#allocation83_spill]] %s7348_s21  ;;  %s7256_s1 = smov 13  }
   0xc   :  { %s7368_s8 = sld [smem:[%s7949_s0 + %s7251_s4]]   ;;  %s7257_s7 = smov 14  }
   0xd   :  { %s7373_s14 = sld [smem:[%s7949_s0 + %s7252_s10]]   ;;  %s7259_s22 = smov 16  }
   0xe   :  { %7972 = sst [smem:[#allocation84_spill]] %s7358_s29  ;;  %s7260_s28 = smov 17  }
   0xf   :  { %s7378_s19 = sld [smem:[%s7949_s0 + %s7253_s15]]   ;;  %s7258_s15 = smov 15  }
  0x10   :  { %s7383_s24 = sld [smem:[%s7949_s0 + %s7254_s20]]  }
  0x11   :  { %s7388_s30 = sld [smem:[%s7949_s0 + %s7255_s26]]  }
  0x12   :  { %7973 = sst [smem:[#allocation85_spill]] %s7368_s8 }
  0x13   :  { %s7393_s6 = sld [smem:[%s7949_s0 + %s7256_s1]]  }
  0x14   :  { %s7398_s12 = sld [smem:[%s7949_s0 + %s7257_s7]]   ;;  %s7261_s7 = smov 18  }
  0x15   :  { %7974 = sst [smem:[#allocation86_spill]] %s7378_s19 }
  0x16   :  { %s7403_s20 = sld [smem:[%s7949_s0 + %s7258_s15]]   ;;  %s7262_s15 = smov 19  }
  0x17   :  { %7975 = sst [smem:[#allocation87_spill]] %s7388_s30 }
  0x18   :  { %s7408_s27 = sld [smem:[%s7949_s0 + %s7259_s22]]   ;;  %s7263_s22 = smov 20  }
  0x19   :  { %s7413_s4 = sld [smem:[%s7949_s0 + %s7260_s28]]   ;;  %s7264_s28 = smov 21  }
  0x1a   :  { %7976 = sst [smem:[#allocation88_spill]] %s7398_s12 }
  0x1b   :  { %s7418_s12 = sld [smem:[%s7949_s0 + %s7261_s7]]   ;;  %s7265_s7 = smov 22  }
  0x1c   :  { %s7423_s30 = sld [smem:[%s7949_s0 + %s7262_s15]]   ;;  %s7266_s15 = smov 23  }
  0x1d   :  { %s7433_s19 = sld [smem:[%s7949_s0 + %s7264_s28]]   ;;  %s7268_s28 = smov 25  }
  0x1e   :  { %7977 = sst [smem:[#allocation89_spill]] %s7408_s27 }
  0x1f   :  { %s7428_s27 = sld [smem:[%s7949_s0 + %s7263_s22]]   ;;  %s7267_s22 = smov 24  }
  0x20   :  { %s7443_s8 = sld [smem:[%s7949_s0 + %s7266_s15]]   ;;  %s7270_s15 = smov 27  }
  0x21   :  { %7978 = sst [smem:[#allocation90_spill]] %s7418_s12 }
  0x22   :  { %s7438_s12 = sld [smem:[%s7949_s0 + %s7265_s7]]   ;;  %s7269_s7 = smov 26  }
  0x23   :  { %s7453_s29 = sld [smem:[%s7949_s0 + %s7268_s28]]   ;;  %s7272_s28 = smov 29  }
  0x24   :  { %s7463_s21 = sld [smem:[%s7949_s0 + %s7270_s15]]   ;;  %s7274_s15 = smov 31  }
  0x25   :  { %7979 = sst [smem:[#allocation91_spill]] %s7428_s27 }
  0x26   :  { %s7448_s27 = sld [smem:[%s7949_s0 + %s7267_s22]]   ;;  %s7271_s22 = smov 28  }
  0x27   :  { %s7473_s13 = sld [smem:[%s7949_s0 + %s7272_s28]]   ;;  %s7276_s28 = smov 33  }
  0x28   :  { %7980 = sst [smem:[#allocation92_spill]] %s7438_s12 }
  0x29   :  { %s7458_s12 = sld [smem:[%s7949_s0 + %s7269_s7]]   ;;  %s7273_s7 = smov 30  }
  0x2a   :  { %s7483_s5 = sld [smem:[%s7949_s0 + %s7274_s15]]   ;;  %s7278_s15 = smov 35  }
  0x2c   :  { %7981 = sst [smem:[#allocation93_spill]] %s7448_s27 }
  0x2d   :  { %s7468_s27 = sld [smem:[%s7949_s0 + %s7271_s22]]   ;;  %s7275_s22 = smov 32  }
  0x2e   :  { %7984 = sst [smem:[#allocation96_spill]] %s7473_s13 }
  0x2f   :  { %7982 = sst [smem:[#allocation94_spill]] %s7458_s12 }
  0x30   :  { %s7478_s12 = sld [smem:[%s7949_s0 + %s7273_s7]]   ;;  %s7277_s7 = smov 34  }
  0x31   :  { %7986 = sst [smem:[#allocation98_spill]] %s7483_s5 }
  0x32   :  { %s7493_s13 = sld [smem:[%s7949_s0 + %s7276_s28]]  }
  0x33   :  { %7983 = sst [smem:[#allocation95_spill]] %s7468_s27 }
  0x34   :  { %s7488_s27 = sld [smem:[%s7949_s0 + %s7275_s22]]   ;;  %s7279_s22 = smov 36  }
  0x35   :  { %s7503_s5 = sld [smem:[%s7949_s0 + %s7278_s15]]  }
  0x36   :  { %7985 = sst [smem:[#allocation97_spill]] %s7478_s12 }
  0x37   :  { %s7498_s12 = sld [smem:[%s7949_s0 + %s7277_s7]]  }
  0x3a   :  { %7987 = sst [smem:[#allocation99_spill]] %s7488_s27 }
  0x3b   :  { %s7508_s27 = sld [smem:[%s7949_s0 + %s7279_s22]]  }
  0x3c   :  { %78 = vsyncpa [#allocation5], 0 }
  0x3d   :  { %79 = vsyncpa [#allocation8], 0 }
  0x3e   :  { %80 = vsyncpa [#allocation11], 0 }
  0x3f   :  { %81 = vsyncpa [#allocation14], 0 }
  0x40   :  { %82 = vsyncpa [#allocation17], 0 }
  0x41   :  { %83 = vsyncpa [#allocation20], 0 }
  0x42   :  { %84 = vsyncpa [#allocation23], 0 }
  0x43   :  { %85 = vsyncpa [#allocation26], 0 }
  0x44   :  { %86 = vsyncpa [#allocation29], 0 }
  0x45   :  { %87 = vsyncpa [#allocation32], 0 }
  0x46   :  { %88 = vsyncpa [#allocation35], 0 }
  0x47   :  { %89 = vsyncpa [#allocation38], 0 }
  0x48   :  { %90 = vsyncpa [#allocation41], 0 }
  0x49   :  { %91 = vsyncpa [#allocation44], 0 }
  0x4a   :  { %92 = vsyncpa [#allocation47], 0 }
  0x4b   :  { %93 = vsyncpa [#allocation50], 0 }
  0x4c   :  { %94 = vsyncpa [#allocation53], 0 }
  0x4d   :  { %95 = vsyncpa [#allocation56], 0 }
  0x4e   :  { %96 = vsyncpa [#allocation59], 0 }
  0x4f   :  { %97 = vsyncpa [#allocation6], 0  ;;  %s7280_s0 = smov [#allocation7]   ;;  %s7281_s1 = smov [#allocation10]  }
  0x50   :  { %s115_s28 = sshll.u32 %s7280_s0, 4  ;;  %s140_s2 = sshll.u32 %s7281_s1, 4  ;;  %s116_s28 = int_to_ptr.vmem [resolvable:$true] %s115_s28  ;;  %s7510_s2 = int_to_ptr.vmem [resolvable:$true] %s140_s2 }
  0x51   :  { %s6390_s7 = scalar_lea.hbm %s7333_s9, 512 }
  0x52   :  { %p6391_p0 = scmp.ne.s32.totalorder %s7333_s9, %s6390_s7  ;;  %p6394_p1 = scmp.lt.u32.totalorder %s6390_s7, %s7333_s9 }
  0x54   :  { %p6396_p2 = pnand %p6394_p1, %p6391_p0 }
  0x56   :  { %6399 = shalt.err (!%p6396_p2)
}
  0x57   :  { %s6400_s10 = scalar_lea.vmem %s116_s28, 512  ;;  %p6405_p4 = scmp.lt.s32.totalorder %s116_s28, %s116_s28 }
  0x58   :  { %p6401_p3 = scmp.ne.s32.totalorder %s116_s28, %s6400_s10  ;;  %p6406_p5 = scmp.lt.s32.totalorder %s6400_s10, %s6400_s10 }
  0x5a   :  { %p6407_p6 = por %p6406_p5, %p6405_p4 }
  0x5c   :  { %p6408_p7 = pnand %p6407_p6, %p6401_p3 }
  0x5e   :  { %6411 = shalt.err (!%p6408_p7)
}
  0x5f   :  { %s7282_s11 = smov 128   ;;  %s7283_s15 = smov 8  }
  0x60   :  { %121 = dma.hbm_to_vmem [thread:$0]  %s7333_s9, 512, %s116_s28, [#allocation8], %s7282_s11, %s7282_s11, %s7283_s15  }
  0x61   :  { %s6412_s16 = scalar_lea.hbm %s7343_s17, 16 }
  0x62   :  { %p6413_p8 = scmp.ne.s32.totalorder %s7343_s17, %s6412_s16  ;;  %p6416_p9 = scmp.lt.u32.totalorder %s6412_s16, %s7343_s17 }
  0x64   :  { %p6418_p10 = pnand %p6416_p9, %p6413_p8 }
  0x66   :  { %6421 = shalt.err (!%p6418_p10)
}
  0x67   :  { %s6422_s18 = scalar_lea.vmem %s7510_s2, 16  ;;  %s6426_s22 = scalar_lea.vmem %s7510_s2, 32 }
  0x68   :  { %p6423_p11 = scmp.ne.s32.totalorder %s7510_s2, %s6422_s18  ;;  %p6427_p12 = scmp.lt.s32.totalorder %s7510_s2, %s7510_s2 }
  0x69   :  { %p6428_p13 = scmp.lt.s32.totalorder %s6426_s22, %s6422_s18 }
  0x6b   :  { %p6429_p0 = por %p6428_p13, %p6427_p12 }
  0x6d   :  { %p6430_p1 = pnand %p6429_p0, %p6423_p11 }
  0x6f   :  { %6433 = shalt.err (!%p6430_p1)
}
  0x70   :  { %143 = dma.hbm_to_vmem [thread:$0]  %s7343_s17, 16, %s7510_s2, [#allocation11]  }
  0x71   :  { %s7284_s9 = smov [#allocation13]   ;;  %s7285_s26 = smov [#allocation16]  }
  0x72   :  { %s162_s23 = sshll.u32 %s7284_s9, 4  ;;  %s184_s0 = sshll.u32 %s7285_s26, 4  ;;  %s163_s23 = int_to_ptr.vmem [resolvable:$true] %s162_s23  ;;  %s185_s0 = int_to_ptr.vmem [resolvable:$true] %s184_s0 }
  0x73   :  { %s6434_s28 = scalar_lea.hbm %s7353_s25, 16 }
  0x74   :  { %p6435_p2 = scmp.ne.s32.totalorder %s7353_s25, %s6434_s28  ;;  %p6438_p3 = scmp.lt.u32.totalorder %s6434_s28, %s7353_s25 }
  0x76   :  { %p6440_p4 = pnand %p6438_p3, %p6435_p2 }
  0x78   :  { %6443 = shalt.err (!%p6440_p4)
}
  0x79   :  { %s6444_s1 = scalar_lea.vmem %s163_s23, 16  ;;  %s6448_s7 = scalar_lea.vmem %s163_s23, 32 }
  0x7a   :  { %p6445_p5 = scmp.ne.s32.totalorder %s163_s23, %s6444_s1  ;;  %p6449_p6 = scmp.lt.s32.totalorder %s163_s23, %s163_s23 }
  0x7b   :  { %p6450_p7 = scmp.lt.s32.totalorder %s6448_s7, %s6444_s1 }
  0x7d   :  { %p6451_p8 = por %p6450_p7, %p6449_p6 }
  0x7f   :  { %p6452_p9 = pnand %p6451_p8, %p6445_p5 }
  0x81   :  { %6455 = shalt.err (!%p6452_p9)
}
  0x82   :  { %165 = dma.hbm_to_vmem [thread:$0]  %s7353_s25, 16, %s163_s23, [#allocation14]  }
  0x83   :  { %s6456_s17 = scalar_lea.hbm %s7363_s3, 16 }
  0x84   :  { %p6457_p10 = scmp.ne.s32.totalorder %s7363_s3, %s6456_s17  ;;  %p6460_p11 = scmp.lt.u32.totalorder %s6456_s17, %s7363_s3 }
  0x86   :  { %p6462_p12 = pnand %p6460_p11, %p6457_p10 }
  0x88   :  { %6465 = shalt.err (!%p6462_p12)
}
  0x89   :  { %s6466_s2 = scalar_lea.vmem %s185_s0, 16  ;;  %s6470_s10 = scalar_lea.vmem %s185_s0, 32 }
  0x8a   :  { %p6467_p13 = scmp.ne.s32.totalorder %s185_s0, %s6466_s2  ;;  %p6471_p0 = scmp.lt.s32.totalorder %s185_s0, %s185_s0 }
  0x8b   :  { %p6472_p1 = scmp.lt.s32.totalorder %s6470_s10, %s6466_s2 }
  0x8d   :  { %p6473_p2 = por %p6472_p1, %p6471_p0 }
  0x8f   :  { %p6474_p3 = pnand %p6473_p2, %p6467_p13 }
  0x91   :  { %6477 = shalt.err (!%p6474_p3)
}
  0x92   :  { %187 = dma.hbm_to_vmem [thread:$0]  %s7363_s3, 16, %s185_s0, [#allocation17]  }
  0x93   :  { %s7286_s16 = smov [#allocation19]   ;;  %s7287_s18 = smov [#allocation22]  }
  0x94   :  { %s206_s25 = sshll.u32 %s7286_s16, 4  ;;  %s228_s22 = sshll.u32 %s7287_s18, 4  ;;  %s207_s25 = int_to_ptr.vmem [resolvable:$true] %s206_s25  ;;  %s229_s22 = int_to_ptr.vmem [resolvable:$true] %s228_s22 }
  0x95   :  { %s6478_s9 = scalar_lea.hbm %s7373_s14, 16 }
  0x96   :  { %p6479_p4 = scmp.ne.s32.totalorder %s7373_s14, %s6478_s9  ;;  %p6482_p5 = scmp.lt.u32.totalorder %s6478_s9, %s7373_s14 }
  0x98   :  { %p6484_p6 = pnand %p6482_p5, %p6479_p4 }
  0x9a   :  { %6487 = shalt.err (!%p6484_p6)
}
  0x9b   :  { %s6488_s23 = scalar_lea.vmem %s207_s25, 16  ;;  %s6492_s26 = scalar_lea.vmem %s207_s25, 32 }
  0x9c   :  { %p6489_p7 = scmp.ne.s32.totalorder %s207_s25, %s6488_s23  ;;  %p6493_p8 = scmp.lt.s32.totalorder %s207_s25, %s207_s25 }
  0x9d   :  { %p6494_p9 = scmp.lt.s32.totalorder %s6492_s26, %s6488_s23 }
  0x9f   :  { %p6495_p10 = por %p6494_p9, %p6493_p8 }
  0xa1   :  { %p6496_p11 = pnand %p6495_p10, %p6489_p7 }
  0xa3   :  { %6499 = shalt.err (!%p6496_p11)
}
  0xa4   :  { %209 = dma.hbm_to_vmem [thread:$0]  %s7373_s14, 16, %s207_s25, [#allocation20]  }
  0xa5   :  { %s6500_s3 = scalar_lea.hbm %s7383_s24, 16 }
  0xa6   :  { %p6501_p12 = scmp.ne.s32.totalorder %s7383_s24, %s6500_s3  ;;  %p6504_p13 = scmp.lt.u32.totalorder %s6500_s3, %s7383_s24 }
  0xa8   :  { %p6506_p0 = pnand %p6504_p13, %p6501_p12 }
  0xaa   :  { %6509 = shalt.err (!%p6506_p0)
}
  0xab   :  { %s6510_s0 = scalar_lea.vmem %s229_s22, 16  ;;  %s6514_s28 = scalar_lea.vmem %s229_s22, 32 }
  0xac   :  { %p6511_p1 = scmp.ne.s32.totalorder %s229_s22, %s6510_s0  ;;  %p6515_p2 = scmp.lt.s32.totalorder %s229_s22, %s229_s22 }
  0xad   :  { %p6516_p3 = scmp.lt.s32.totalorder %s6514_s28, %s6510_s0 }
  0xaf   :  { %p6517_p4 = por %p6516_p3, %p6515_p2 }
  0xb1   :  { %p6518_p5 = pnand %p6517_p4, %p6511_p1 }
  0xb3   :  { %6521 = shalt.err (!%p6518_p5)
}
  0xb4   :  { %231 = dma.hbm_to_vmem [thread:$0]  %s7383_s24, 16, %s229_s22, [#allocation23]  }
  0xb5   :  { %s7288_s1 = smov [#allocation25]   ;;  %s7289_s7 = smov [#allocation28]  }
  0xb6   :  { %s250_s14 = sshll.u32 %s7288_s1, 4  ;;  %s272_s17 = sshll.u32 %s7289_s7, 4  ;;  %s251_s14 = int_to_ptr.vmem [resolvable:$true] %s250_s14  ;;  %s273_s17 = int_to_ptr.vmem [resolvable:$true] %s272_s17 }
  0xb7   :  { %s6522_s2 = scalar_lea.hbm %s7393_s6, 16 }
  0xb8   :  { %p6523_p6 = scmp.ne.s32.totalorder %s7393_s6, %s6522_s2  ;;  %p6526_p7 = scmp.lt.u32.totalorder %s6522_s2, %s7393_s6 }
  0xba   :  { %p6528_p8 = pnand %p6526_p7, %p6523_p6 }
  0xbc   :  { %6531 = shalt.err (!%p6528_p8)
}
  0xbd   :  { %s6532_s10 = scalar_lea.vmem %s251_s14, 16  ;;  %s6536_s16 = scalar_lea.vmem %s251_s14, 32 }
  0xbe   :  { %p6533_p9 = scmp.ne.s32.totalorder %s251_s14, %s6532_s10  ;;  %p6537_p10 = scmp.lt.s32.totalorder %s251_s14, %s251_s14 }
  0xbf   :  { %p6538_p11 = scmp.lt.s32.totalorder %s6536_s16, %s6532_s10 }
  0xc1   :  { %p6539_p12 = por %p6538_p11, %p6537_p10 }
  0xc3   :  { %p6540_p13 = pnand %p6539_p12, %p6533_p9 }
  0xc5   :  { %6543 = shalt.err (!%p6540_p13)
}
  0xc6   :  { %253 = dma.hbm_to_vmem [thread:$0]  %s7393_s6, 16, %s251_s14, [#allocation26]  }
  0xc7   :  { %s6544_s24 = scalar_lea.hbm %s7403_s20, 16 }
  0xc8   :  { %p6545_p0 = scmp.ne.s32.totalorder %s7403_s20, %s6544_s24  ;;  %p6548_p1 = scmp.lt.u32.totalorder %s6544_s24, %s7403_s20 }
  0xca   :  { %p6550_p2 = pnand %p6548_p1, %p6545_p0 }
  0xcc   :  { %6553 = shalt.err (!%p6550_p2)
}
  0xcd   :  { %s6554_s25 = scalar_lea.vmem %s273_s17, 16  ;;  %s6558_s18 = scalar_lea.vmem %s273_s17, 32 }
  0xce   :  { %p6555_p3 = scmp.ne.s32.totalorder %s273_s17, %s6554_s25  ;;  %p6559_p4 = scmp.lt.s32.totalorder %s273_s17, %s273_s17 }
  0xcf   :  { %p6560_p5 = scmp.lt.s32.totalorder %s6558_s18, %s6554_s25 }
  0xd1   :  { %p6561_p6 = por %p6560_p5, %p6559_p4 }
  0xd3   :  { %p6562_p7 = pnand %p6561_p6, %p6555_p3 }
  0xd5   :  { %6565 = shalt.err (!%p6562_p7)
}
  0xd6   :  { %275 = dma.hbm_to_vmem [thread:$0]  %s7403_s20, 16, %s273_s17, [#allocation29]  }
  0xd7   :  { %s7290_s22 = smov [#allocation31]   ;;  %s7291_s9 = smov [#allocation34]  }
  0xd8   :  { %s294_s6 = sshll.u32 %s7290_s22, 4  ;;  %s316_s23 = sshll.u32 %s7291_s9, 4  ;;  %s295_s6 = int_to_ptr.vmem [resolvable:$true] %s294_s6  ;;  %s317_s23 = int_to_ptr.vmem [resolvable:$true] %s316_s23 }
  0xd9   :  { %s6566_s26 = scalar_lea.hbm %s7413_s4, 16 }
  0xda   :  { %p6567_p8 = scmp.ne.s32.totalorder %s7413_s4, %s6566_s26  ;;  %p6570_p9 = scmp.lt.u32.totalorder %s6566_s26, %s7413_s4 }
  0xdc   :  { %p6572_p10 = pnand %p6570_p9, %p6567_p8 }
  0xde   :  { %6575 = shalt.err (!%p6572_p10)
}
  0xdf   :  { %s6576_s3 = scalar_lea.vmem %s295_s6, 16  ;;  %s6580_s0 = scalar_lea.vmem %s295_s6, 32 }
  0xe0   :  { %p6577_p11 = scmp.ne.s32.totalorder %s295_s6, %s6576_s3  ;;  %p6581_p12 = scmp.lt.s32.totalorder %s295_s6, %s295_s6 }
  0xe1   :  { %p6582_p13 = scmp.lt.s32.totalorder %s6580_s0, %s6576_s3 }
  0xe3   :  { %p6583_p0 = por %p6582_p13, %p6581_p12 }
  0xe5   :  { %p6584_p1 = pnand %p6583_p0, %p6577_p11 }
  0xe7   :  { %6587 = shalt.err (!%p6584_p1)
}
  0xe8   :  { %297 = dma.hbm_to_vmem [thread:$0]  %s7413_s4, 16, %s295_s6, [#allocation32]  }
  0xe9   :  { %s6588_s20 = scalar_lea.hbm %s7423_s30, 16 }
  0xea   :  { %p6589_p2 = scmp.ne.s32.totalorder %s7423_s30, %s6588_s20  ;;  %p6592_p3 = scmp.lt.u32.totalorder %s6588_s20, %s7423_s30 }
  0xec   :  { %p6594_p4 = pnand %p6592_p3, %p6589_p2 }
  0xee   :  { %6597 = shalt.err (!%p6594_p4)
}
  0xef   :  { %s6598_s28 = scalar_lea.vmem %s317_s23, 16  ;;  %s6602_s1 = scalar_lea.vmem %s317_s23, 32 }
  0xf0   :  { %p6599_p5 = scmp.ne.s32.totalorder %s317_s23, %s6598_s28  ;;  %p6603_p6 = scmp.lt.s32.totalorder %s317_s23, %s317_s23 }
  0xf1   :  { %p6604_p7 = scmp.lt.s32.totalorder %s6602_s1, %s6598_s28 }
  0xf3   :  { %p6605_p8 = por %p6604_p7, %p6603_p6 }
  0xf5   :  { %p6606_p9 = pnand %p6605_p8, %p6599_p5 }
  0xf7   :  { %6609 = shalt.err (!%p6606_p9)
}
  0xf8   :  { %319 = dma.hbm_to_vmem [thread:$0]  %s7423_s30, 16, %s317_s23, [#allocation35]  }
  0xf9   :  { %s7292_s14 = smov [#allocation37]   ;;  %s7293_s7 = smov [#allocation40]  }
  0xfa   :  { %s338_s4 = sshll.u32 %s7292_s14, 4  ;;  %s360_s17 = sshll.u32 %s7293_s7, 4  ;;  %s339_s4 = int_to_ptr.vmem [resolvable:$true] %s338_s4  ;;  %s361_s17 = int_to_ptr.vmem [resolvable:$true] %s360_s17 }
  0xfb   :  { %s6610_s2 = scalar_lea.hbm %s7433_s19, 16 }
  0xfc   :  { %p6611_p10 = scmp.ne.s32.totalorder %s7433_s19, %s6610_s2  ;;  %p6614_p11 = scmp.lt.u32.totalorder %s6610_s2, %s7433_s19 }
  0xfe   :  { %p6616_p12 = pnand %p6614_p11, %p6611_p10 }
 0x100   :  { %6619 = shalt.err (!%p6616_p12)
}
 0x101   :  { %s6620_s10 = scalar_lea.vmem %s339_s4, 16  ;;  %s6624_s16 = scalar_lea.vmem %s339_s4, 32 }
 0x102   :  { %p6621_p13 = scmp.ne.s32.totalorder %s339_s4, %s6620_s10  ;;  %p6625_p0 = scmp.lt.s32.totalorder %s339_s4, %s339_s4 }
 0x103   :  { %p6626_p1 = scmp.lt.s32.totalorder %s6624_s16, %s6620_s10 }
 0x105   :  { %p6627_p2 = por %p6626_p1, %p6625_p0 }
 0x107   :  { %p6628_p3 = pnand %p6627_p2, %p6621_p13 }
 0x109   :  { %6631 = shalt.err (!%p6628_p3)
}
 0x10a   :  { %341 = dma.hbm_to_vmem [thread:$0]  %s7433_s19, 16, %s339_s4, [#allocation38]  }
 0x10b   :  { %s6632_s30 = scalar_lea.hbm %s7443_s8, 16 }
 0x10c   :  { %p6633_p4 = scmp.ne.s32.totalorder %s7443_s8, %s6632_s30  ;;  %p6636_p5 = scmp.lt.u32.totalorder %s6632_s30, %s7443_s8 }
 0x10e   :  { %p6638_p6 = pnand %p6636_p5, %p6633_p4 }
 0x110   :  { %6641 = shalt.err (!%p6638_p6)
}
 0x111   :  { %s6642_s24 = scalar_lea.vmem %s361_s17, 16  ;;  %s6646_s25 = scalar_lea.vmem %s361_s17, 32 }
 0x112   :  { %p6643_p7 = scmp.ne.s32.totalorder %s361_s17, %s6642_s24  ;;  %p6647_p8 = scmp.lt.s32.totalorder %s361_s17, %s361_s17 }
 0x113   :  { %p6648_p9 = scmp.lt.s32.totalorder %s6646_s25, %s6642_s24 }
 0x115   :  { %p6649_p10 = por %p6648_p9, %p6647_p8 }
 0x117   :  { %p6650_p11 = pnand %p6649_p10, %p6643_p7 }
 0x119   :  { %6653 = shalt.err (!%p6650_p11)
}
 0x11a   :  { %363 = dma.hbm_to_vmem [thread:$0]  %s7443_s8, 16, %s361_s17, [#allocation41]  }
 0x11b   :  { %s7294_s18 = smov [#allocation43]   ;;  %s7295_s22 = smov [#allocation46]  }
 0x11c   :  { %s382_s19 = sshll.u32 %s7294_s18, 4  ;;  %s404_s6 = sshll.u32 %s7295_s22, 4  ;;  %s383_s19 = int_to_ptr.vmem [resolvable:$true] %s382_s19  ;;  %s405_s6 = int_to_ptr.vmem [resolvable:$true] %s404_s6 }
 0x11d   :  { %s6654_s9 = scalar_lea.hbm %s7453_s29, 16 }
 0x11e   :  { %p6655_p12 = scmp.ne.s32.totalorder %s7453_s29, %s6654_s9  ;;  %p6658_p13 = scmp.lt.u32.totalorder %s6654_s9, %s7453_s29 }
 0x120   :  { %p6660_p0 = pnand %p6658_p13, %p6655_p12 }
 0x122   :  { %6663 = shalt.err (!%p6660_p0)
}
 0x123   :  { %s6664_s23 = scalar_lea.vmem %s383_s19, 16  ;;  %s6668_s26 = scalar_lea.vmem %s383_s19, 32 }
 0x124   :  { %p6665_p1 = scmp.ne.s32.totalorder %s383_s19, %s6664_s23  ;;  %p6669_p2 = scmp.lt.s32.totalorder %s383_s19, %s383_s19 }
 0x125   :  { %p6670_p3 = scmp.lt.s32.totalorder %s6668_s26, %s6664_s23 }
 0x127   :  { %p6671_p4 = por %p6670_p3, %p6669_p2 }
 0x129   :  { %p6672_p5 = pnand %p6671_p4, %p6665_p1 }
 0x12b   :  { %6675 = shalt.err (!%p6672_p5)
}
 0x12c   :  { %385 = dma.hbm_to_vmem [thread:$0]  %s7453_s29, 16, %s383_s19, [#allocation44]  }
 0x12d   :  { %s6676_s8 = scalar_lea.hbm %s7463_s21, 16 }
 0x12e   :  { %p6677_p6 = scmp.ne.s32.totalorder %s7463_s21, %s6676_s8  ;;  %p6680_p7 = scmp.lt.u32.totalorder %s6676_s8, %s7463_s21 }
 0x130   :  { %p6682_p8 = pnand %p6680_p7, %p6677_p6 }
 0x132   :  { %6685 = shalt.err (!%p6682_p8)
}
 0x133   :  { %s6686_s3 = scalar_lea.vmem %s405_s6, 16  ;;  %s6690_s0 = scalar_lea.vmem %s405_s6, 32 }
 0x134   :  { %p6687_p9 = scmp.ne.s32.totalorder %s405_s6, %s6686_s3  ;;  %p6691_p10 = scmp.lt.s32.totalorder %s405_s6, %s405_s6 }
 0x135   :  { %p6692_p11 = scmp.lt.s32.totalorder %s6690_s0, %s6686_s3 }
 0x137   :  { %p6693_p12 = por %p6692_p11, %p6691_p10 }
 0x139   :  { %p6694_p13 = pnand %p6693_p12, %p6687_p9 }
 0x13b   :  { %6697 = shalt.err (!%p6694_p13)
}
 0x13c   :  { %s7988_s20 = sld [smem:[#allocation96_spill]]  ;;  %s7296_s28 = smov [#allocation49]  }
 0x13d   :  { %407 = dma.hbm_to_vmem [thread:$0]  %s7463_s21, 16, %s405_s6, [#allocation47]  }
 0x13e   :  { %s426_s29 = sshll.u32 %s7296_s28, 4  ;;  %s7297_s1 = smov [#allocation52]   ;;  %s427_s29 = int_to_ptr.vmem [resolvable:$true] %s426_s29 }
 0x13f   :  { %s448_s14 = sshll.u32 %s7297_s1, 4  ;;  %s449_s14 = int_to_ptr.vmem [resolvable:$true] %s448_s14 }
 0x142   :  { %s6698_s4 = scalar_lea.hbm %s7988_s20, 16 }
 0x143   :  { %p6699_p0 = scmp.ne.s32.totalorder %s7988_s20, %s6698_s4  ;;  %p6702_p1 = scmp.lt.u32.totalorder %s6698_s4, %s7988_s20 }
 0x145   :  { %p6704_p2 = pnand %p6702_p1, %p6699_p0 }
 0x147   :  { %6707 = shalt.err (!%p6704_p2)
}
 0x148   :  { %s6708_s7 = scalar_lea.vmem %s427_s29, 16  ;;  %s6712_s17 = scalar_lea.vmem %s427_s29, 32 }
 0x149   :  { %p6709_p3 = scmp.ne.s32.totalorder %s427_s29, %s6708_s7  ;;  %p6713_p4 = scmp.lt.s32.totalorder %s427_s29, %s427_s29 }
 0x14a   :  { %p6714_p5 = scmp.lt.s32.totalorder %s6712_s17, %s6708_s7 }
 0x14c   :  { %p6715_p6 = por %p6714_p5, %p6713_p4 }
 0x14e   :  { %p6716_p7 = pnand %p6715_p6, %p6709_p3 }
 0x150   :  { %6719 = shalt.err (!%p6716_p7)
}
 0x151   :  { %s7989_s21 = sld [smem:[#allocation98_spill]] }
 0x152   :  { %429 = dma.hbm_to_vmem [thread:$0]  %s7988_s20, 16, %s427_s29, [#allocation50]  }
 0x157   :  { %s6720_s2 = scalar_lea.hbm %s7989_s21, 16 }
 0x158   :  { %p6721_p8 = scmp.ne.s32.totalorder %s7989_s21, %s6720_s2  ;;  %p6724_p9 = scmp.lt.u32.totalorder %s6720_s2, %s7989_s21 }
 0x15a   :  { %p6726_p10 = pnand %p6724_p9, %p6721_p8 }
 0x15c   :  { %6729 = shalt.err (!%p6726_p10)
}
 0x15d   :  { %s6730_s10 = scalar_lea.vmem %s449_s14, 16  ;;  %s6734_s16 = scalar_lea.vmem %s449_s14, 32 }
 0x15e   :  { %p6731_p11 = scmp.ne.s32.totalorder %s449_s14, %s6730_s10  ;;  %p6735_p12 = scmp.lt.s32.totalorder %s449_s14, %s449_s14 }
 0x15f   :  { %p6736_p13 = scmp.lt.s32.totalorder %s6734_s16, %s6730_s10 }
 0x161   :  { %p6737_p0 = por %p6736_p13, %p6735_p12 }
 0x163   :  { %p6738_p1 = pnand %p6737_p0, %p6731_p11 }
 0x165   :  { %6741 = shalt.err (!%p6738_p1)
}
 0x166   :  { %451 = dma.hbm_to_vmem [thread:$0]  %s7989_s21, 16, %s449_s14, [#allocation53]  }
 0x167   :  { %s7298_s30 = smov [#allocation55]   ;;  %s7299_s25 = smov [#allocation4]  }
 0x168   :  { %s470_s24 = sshll.u32 %s7298_s30, 4  ;;  %s103_s18 = sshll.u32 %s7299_s25, 4  ;;  %s471_s24 = int_to_ptr.vmem [resolvable:$true] %s470_s24  ;;  %s7585_s18 = int_to_ptr.vmem [resolvable:$true] %s103_s18 }
 0x169   :  { %s6742_s19 = scalar_lea.hbm %s7493_s13, 16 }
 0x16a   :  { %p6743_p2 = scmp.ne.s32.totalorder %s7493_s13, %s6742_s19  ;;  %p6746_p3 = scmp.lt.u32.totalorder %s6742_s19, %s7493_s13 }
 0x16c   :  { %p6748_p4 = pnand %p6746_p3, %p6743_p2 }
 0x16e   :  { %6751 = shalt.err (!%p6748_p4)
}
 0x16f   :  { %s6752_s22 = scalar_lea.vmem %s471_s24, 16  ;;  %s6756_s6 = scalar_lea.vmem %s471_s24, 32 }
 0x170   :  { %p6753_p5 = scmp.ne.s32.totalorder %s471_s24, %s6752_s22  ;;  %p6757_p6 = scmp.lt.s32.totalorder %s471_s24, %s471_s24 }
 0x171   :  { %p6758_p7 = scmp.lt.s32.totalorder %s6756_s6, %s6752_s22 }
 0x173   :  { %p6759_p8 = por %p6758_p7, %p6757_p6 }
 0x175   :  { %p6760_p9 = pnand %p6759_p8, %p6753_p5 }
 0x177   :  { %6763 = shalt.err (!%p6760_p9)
}
 0x178   :  { %s7990_s9 = sld [smem:[#allocation81_spill]] }
 0x179   :  { %473 = dma.hbm_to_vmem [thread:$0]  %s7493_s13, 16, %s471_s24, [#allocation56]  }
 0x17e   :  { %s6764_s23 = scalar_lea.hbm %s7990_s9, 512 }
 0x17f   :  { %p6765_p10 = scmp.ne.s32.totalorder %s7990_s9, %s6764_s23  ;;  %p6768_p11 = scmp.lt.u32.totalorder %s6764_s23, %s7990_s9 }
 0x181   :  { %p6770_p12 = pnand %p6768_p11, %p6765_p10 }
 0x183   :  { %6773 = shalt.err (!%p6770_p12)
}
 0x184   :  { %s6774_s26 = scalar_lea.vmem %s7585_s18, 512  ;;  %p6779_p0 = scmp.lt.s32.totalorder %s7585_s18, %s7585_s18 }
 0x185   :  { %p6775_p13 = scmp.ne.s32.totalorder %s7585_s18, %s6774_s26  ;;  %p6780_p1 = scmp.lt.s32.totalorder %s6774_s26, %s6774_s26 }
 0x187   :  { %p6781_p2 = por %p6780_p1, %p6779_p0 }
 0x189   :  { %p6782_p3 = pnand %p6781_p2, %p6775_p13 }
 0x18b   :  { %6785 = shalt.err (!%p6782_p3)
}
 0x18c   :  { %s7991_s13 = sld [smem:[#allocation82_spill]]  ;;  %s7300_s8 = smov [#allocation9]  }
 0x18d   :  { %109 = dma.hbm_to_vmem [thread:$0]  %s7990_s9, 512, %s7585_s18, [#allocation5], %s7282_s11, %s7282_s11, %s7283_s15  }
 0x18e   :  { %s127_s3 = sshll.u32 %s7300_s8, 4  ;;  %s7301_s0 = smov [#allocation12]   ;;  %s128_s3 = int_to_ptr.vmem [resolvable:$true] %s127_s3 }
 0x18f   :  { %s149_s20 = sshll.u32 %s7301_s0, 4  ;;  %s7603_s20 = int_to_ptr.vmem [resolvable:$true] %s149_s20 }
 0x192   :  { %s6786_s28 = scalar_lea.hbm %s7991_s13, 6144 }
 0x193   :  { %p6787_p4 = scmp.ne.s32.totalorder %s7991_s13, %s6786_s28  ;;  %p6790_p5 = scmp.lt.u32.totalorder %s6786_s28, %s7991_s13 }
 0x195   :  { %p6792_p6 = pnand %p6790_p5, %p6787_p4 }
 0x197   :  { %6795 = shalt.err (!%p6792_p6)
}
 0x198   :  { %s6796_s29 = scalar_lea.vmem %s128_s3, 6144  ;;  %p6801_p8 = scmp.lt.s32.totalorder %s128_s3, %s128_s3 }
 0x199   :  { %p6797_p7 = scmp.ne.s32.totalorder %s128_s3, %s6796_s29  ;;  %p6802_p9 = scmp.lt.s32.totalorder %s6796_s29, %s6796_s29 }
 0x19b   :  { %p6803_p10 = por %p6802_p9, %p6801_p8 }
 0x19d   :  { %p6804_p11 = pnand %p6803_p10, %p6797_p7 }
 0x19f   :  { %6807 = shalt.err (!%p6804_p11)
}
 0x1a0   :  { %s7992_s1 = sld [smem:[#allocation83_spill]] }
 0x1a1   :  { %133 = dma.hbm_to_vmem [thread:$0]  %s7991_s13, 6144, %s128_s3, [#allocation8], %s7282_s11, %s7282_s11, %s7283_s15  }
 0x1a6   :  { %s6808_s14 = scalar_lea.hbm %s7992_s1, 6144 }
 0x1a7   :  { %p6809_p12 = scmp.ne.s32.totalorder %s7992_s1, %s6808_s14  ;;  %p6812_p13 = scmp.lt.u32.totalorder %s6808_s14, %s7992_s1 }
 0x1a9   :  { %p6814_p0 = pnand %p6812_p13, %p6809_p12 }
 0x1ab   :  { %6817 = shalt.err (!%p6814_p0)
}
 0x1ac   :  { %s6818_s4 = scalar_lea.vmem %s7603_s20, 6144  ;;  %p6823_p2 = scmp.lt.s32.totalorder %s7603_s20, %s7603_s20 }
 0x1ad   :  { %p6819_p1 = scmp.ne.s32.totalorder %s7603_s20, %s6818_s4  ;;  %p6824_p3 = scmp.lt.s32.totalorder %s6818_s4, %s6818_s4 }
 0x1af   :  { %p6825_p4 = por %p6824_p3, %p6823_p2 }
 0x1b1   :  { %p6826_p5 = pnand %p6825_p4, %p6819_p1 }
 0x1b3   :  { %6829 = shalt.err (!%p6826_p5)
}
 0x1b4   :  { %s7993_s7 = sld [smem:[#allocation84_spill]]  ;;  %s7302_s17 = smov [#allocation15]  }
 0x1b5   :  { %155 = dma.hbm_to_vmem [thread:$0]  %s7992_s1, 6144, %s7603_s20, [#allocation11], %s7282_s11, %s7282_s11, %s7283_s15  }
 0x1b6   :  { %s171_s21 = sshll.u32 %s7302_s17, 4  ;;  %s7303_s2 = smov [#allocation18]   ;;  %s172_s21 = int_to_ptr.vmem [resolvable:$true] %s171_s21 }
 0x1b7   :  { %s193_s10 = sshll.u32 %s7303_s2, 4  ;;  %s7624_s10 = int_to_ptr.vmem [resolvable:$true] %s193_s10 }
 0x1ba   :  { %s6830_s16 = scalar_lea.hbm %s7993_s7, 2048 }
 0x1bb   :  { %p6831_p6 = scmp.ne.s32.totalorder %s7993_s7, %s6830_s16  ;;  %p6834_p7 = scmp.lt.u32.totalorder %s6830_s16, %s7993_s7 }
 0x1bd   :  { %p6836_p8 = pnand %p6834_p7, %p6831_p6 }
 0x1bf   :  { %6839 = shalt.err (!%p6836_p8)
}
 0x1c0   :  { %s6840_s30 = scalar_lea.vmem %s172_s21, 2048  ;;  %p6845_p10 = scmp.lt.s32.totalorder %s172_s21, %s172_s21 }
 0x1c1   :  { %p6841_p9 = scmp.ne.s32.totalorder %s172_s21, %s6840_s30  ;;  %p6846_p11 = scmp.lt.s32.totalorder %s6840_s30, %s6840_s30 }
 0x1c3   :  { %p6847_p12 = por %p6846_p11, %p6845_p10 }
 0x1c5   :  { %p6848_p13 = pnand %p6847_p12, %p6841_p9 }
 0x1c7   :  { %6851 = shalt.err (!%p6848_p13)
}
 0x1c8   :  { %s7994_s24 = sld [smem:[#allocation85_spill]] }
 0x1c9   :  { %177 = dma.hbm_to_vmem [thread:$0]  %s7993_s7, 2048, %s172_s21, [#allocation14], %s7282_s11, %s7282_s11, %s7283_s15  }
 0x1ce   :  { %s6852_s25 = scalar_lea.hbm %s7994_s24, 6144 }
 0x1cf   :  { %p6853_p0 = scmp.ne.s32.totalorder %s7994_s24, %s6852_s25  ;;  %p6856_p1 = scmp.lt.u32.totalorder %s6852_s25, %s7994_s24 }
 0x1d1   :  { %p6858_p2 = pnand %p6856_p1, %p6853_p0 }
 0x1d3   :  { %6861 = shalt.err (!%p6858_p2)
}
 0x1d4   :  { %s6862_s18 = scalar_lea.vmem %s7624_s10, 6144  ;;  %p6867_p4 = scmp.lt.s32.totalorder %s7624_s10, %s7624_s10 }
 0x1d5   :  { %p6863_p3 = scmp.ne.s32.totalorder %s7624_s10, %s6862_s18  ;;  %p6868_p5 = scmp.lt.s32.totalorder %s6862_s18, %s6862_s18 }
 0x1d7   :  { %p6869_p6 = por %p6868_p5, %p6867_p4 }
 0x1d9   :  { %p6870_p7 = pnand %p6869_p6, %p6863_p3 }
 0x1db   :  { %6873 = shalt.err (!%p6870_p7)
}
 0x1dc   :  { %s7995_s19 = sld [smem:[#allocation86_spill]]  ;;  %s7304_s22 = smov [#allocation21]  }
 0x1dd   :  { %199 = dma.hbm_to_vmem [thread:$0]  %s7994_s24, 6144, %s7624_s10, [#allocation17], %s7282_s11, %s7282_s11, %s7283_s15  }
 0x1de   :  { %s215_s6 = sshll.u32 %s7304_s22, 4  ;;  %s7305_s9 = smov [#allocation24]   ;;  %s216_s6 = int_to_ptr.vmem [resolvable:$true] %s215_s6 }
 0x1df   :  { %s237_s23 = sshll.u32 %s7305_s9, 4  ;;  %s7645_s23 = int_to_ptr.vmem [resolvable:$true] %s237_s23 }
 0x1e2   :  { %s6874_s26 = scalar_lea.hbm %s7995_s19, 6144 }
 0x1e3   :  { %p6875_p8 = scmp.ne.s32.totalorder %s7995_s19, %s6874_s26  ;;  %p6878_p9 = scmp.lt.u32.totalorder %s6874_s26, %s7995_s19 }
 0x1e5   :  { %p6880_p10 = pnand %p6878_p9, %p6875_p8 }
 0x1e7   :  { %6883 = shalt.err (!%p6880_p10)
}
 0x1e8   :  { %s6884_s13 = scalar_lea.vmem %s216_s6, 6144  ;;  %p6889_p12 = scmp.lt.s32.totalorder %s216_s6, %s216_s6 }
 0x1e9   :  { %p6885_p11 = scmp.ne.s32.totalorder %s216_s6, %s6884_s13  ;;  %p6890_p13 = scmp.lt.s32.totalorder %s6884_s13, %s6884_s13 }
 0x1eb   :  { %p6891_p0 = por %p6890_p13, %p6889_p12 }
 0x1ed   :  { %p6892_p1 = pnand %p6891_p0, %p6885_p11 }
 0x1ef   :  { %6895 = shalt.err (!%p6892_p1)
}
 0x1f0   :  { %s7996_s8 = sld [smem:[#allocation87_spill]] }
 0x1f1   :  { %221 = dma.hbm_to_vmem [thread:$0]  %s7995_s19, 6144, %s216_s6, [#allocation20], %s7282_s11, %s7282_s11, %s7283_s15  }
 0x1f6   :  { %s6896_s3 = scalar_lea.hbm %s7996_s8, 6144 }
 0x1f7   :  { %p6897_p2 = scmp.ne.s32.totalorder %s7996_s8, %s6896_s3  ;;  %p6900_p3 = scmp.lt.u32.totalorder %s6896_s3, %s7996_s8 }
 0x1f9   :  { %p6902_p4 = pnand %p6900_p3, %p6897_p2 }
 0x1fb   :  { %6905 = shalt.err (!%p6902_p4)
}
 0x1fc   :  { %s6906_s0 = scalar_lea.vmem %s7645_s23, 6144  ;;  %p6911_p6 = scmp.lt.s32.totalorder %s7645_s23, %s7645_s23 }
 0x1fd   :  { %p6907_p5 = scmp.ne.s32.totalorder %s7645_s23, %s6906_s0  ;;  %p6912_p7 = scmp.lt.s32.totalorder %s6906_s0, %s6906_s0 }
 0x1ff   :  { %p6913_p8 = por %p6912_p7, %p6911_p6 }
 0x201   :  { %p6914_p9 = pnand %p6913_p8, %p6907_p5 }
 0x203   :  { %6917 = shalt.err (!%p6914_p9)
}
 0x204   :  { %s7997_s20 = sld [smem:[#allocation88_spill]]  ;;  %s7306_s28 = smov [#allocation27]  }
 0x205   :  { %243 = dma.hbm_to_vmem [thread:$0]  %s7996_s8, 6144, %s7645_s23, [#allocation23], %s7282_s11, %s7282_s11, %s7283_s15  }
 0x206   :  { %s259_s29 = sshll.u32 %s7306_s28, 4  ;;  %s7307_s1 = smov [#allocation30]   ;;  %s260_s29 = int_to_ptr.vmem [resolvable:$true] %s259_s29 }
 0x207   :  { %s281_s14 = sshll.u32 %s7307_s1, 4  ;;  %s7666_s14 = int_to_ptr.vmem [resolvable:$true] %s281_s14 }
 0x20a   :  { %s6918_s4 = scalar_lea.hbm %s7997_s20, 6144 }
 0x20b   :  { %p6919_p10 = scmp.ne.s32.totalorder %s7997_s20, %s6918_s4  ;;  %p6922_p11 = scmp.lt.u32.totalorder %s6918_s4, %s7997_s20 }
 0x20d   :  { %p6924_p12 = pnand %p6922_p11, %p6919_p10 }
 0x20f   :  { %6927 = shalt.err (!%p6924_p12)
}
 0x210   :  { %s6928_s7 = scalar_lea.vmem %s260_s29, 6144  ;;  %p6933_p0 = scmp.lt.s32.totalorder %s260_s29, %s260_s29 }
 0x211   :  { %p6929_p13 = scmp.ne.s32.totalorder %s260_s29, %s6928_s7  ;;  %p6934_p1 = scmp.lt.s32.totalorder %s6928_s7, %s6928_s7 }
 0x213   :  { %p6935_p2 = por %p6934_p1, %p6933_p0 }
 0x215   :  { %p6936_p3 = pnand %p6935_p2, %p6929_p13 }
 0x217   :  { %6939 = shalt.err (!%p6936_p3)
}
 0x218   :  { %s7998_s17 = sld [smem:[#allocation89_spill]] }
 0x219   :  { %265 = dma.hbm_to_vmem [thread:$0]  %s7997_s20, 6144, %s260_s29, [#allocation26], %s7282_s11, %s7282_s11, %s7283_s15  }
 0x21e   :  { %s6940_s21 = scalar_lea.hbm %s7998_s17, 2048 }
 0x21f   :  { %p6941_p4 = scmp.ne.s32.totalorder %s7998_s17, %s6940_s21  ;;  %p6944_p5 = scmp.lt.u32.totalorder %s6940_s21, %s7998_s17 }
 0x221   :  { %p6946_p6 = pnand %p6944_p5, %p6941_p4 }
 0x223   :  { %6949 = shalt.err (!%p6946_p6)
}
 0x224   :  { %s6950_s2 = scalar_lea.vmem %s7666_s14, 2048  ;;  %p6955_p8 = scmp.lt.s32.totalorder %s7666_s14, %s7666_s14 }
 0x225   :  { %p6951_p7 = scmp.ne.s32.totalorder %s7666_s14, %s6950_s2  ;;  %p6956_p9 = scmp.lt.s32.totalorder %s6950_s2, %s6950_s2 }
 0x227   :  { %p6957_p10 = por %p6956_p9, %p6955_p8 }
 0x229   :  { %p6958_p11 = pnand %p6957_p10, %p6951_p7 }
 0x22b   :  { %6961 = shalt.err (!%p6958_p11)
}
 0x22c   :  { %s7999_s10 = sld [smem:[#allocation90_spill]]  ;;  %s7308_s16 = smov [#allocation33]  }
 0x22d   :  { %287 = dma.hbm_to_vmem [thread:$0]  %s7998_s17, 2048, %s7666_s14, [#allocation29], %s7282_s11, %s7282_s11, %s7283_s15  }
 0x22e   :  { %s303_s30 = sshll.u32 %s7308_s16, 4  ;;  %s7309_s24 = smov [#allocation36]   ;;  %s304_s30 = int_to_ptr.vmem [resolvable:$true] %s303_s30 }
 0x22f   :  { %s325_s25 = sshll.u32 %s7309_s24, 4  ;;  %s7687_s25 = int_to_ptr.vmem [resolvable:$true] %s325_s25 }
 0x232   :  { %s6962_s18 = scalar_lea.hbm %s7999_s10, 6144 }
 0x233   :  { %p6963_p12 = scmp.ne.s32.totalorder %s7999_s10, %s6962_s18  ;;  %p6966_p13 = scmp.lt.u32.totalorder %s6962_s18, %s7999_s10 }
 0x235   :  { %p6968_p0 = pnand %p6966_p13, %p6963_p12 }
 0x237   :  { %6971 = shalt.err (!%p6968_p0)
}
 0x238   :  { %s6972_s19 = scalar_lea.vmem %s304_s30, 6144  ;;  %p6977_p2 = scmp.lt.s32.totalorder %s304_s30, %s304_s30 }
 0x239   :  { %p6973_p1 = scmp.ne.s32.totalorder %s304_s30, %s6972_s19  ;;  %p6978_p3 = scmp.lt.s32.totalorder %s6972_s19, %s6972_s19 }
 0x23b   :  { %p6979_p4 = por %p6978_p3, %p6977_p2 }
 0x23d   :  { %p6980_p5 = pnand %p6979_p4, %p6973_p1 }
 0x23f   :  { %6983 = shalt.err (!%p6980_p5)
}
 0x240   :  { %s8000_s22 = sld [smem:[#allocation91_spill]] }
 0x241   :  { %309 = dma.hbm_to_vmem [thread:$0]  %s7999_s10, 6144, %s304_s30, [#allocation32], %s7282_s11, %s7282_s11, %s7283_s15  }
 0x246   :  { %s6984_s6 = scalar_lea.hbm %s8000_s22, 6144 }
 0x247   :  { %p6985_p6 = scmp.ne.s32.totalorder %s8000_s22, %s6984_s6  ;;  %p6988_p7 = scmp.lt.u32.totalorder %s6984_s6, %s8000_s22 }
 0x249   :  { %p6990_p8 = pnand %p6988_p7, %p6985_p6 }
 0x24b   :  { %6993 = shalt.err (!%p6990_p8)
}
 0x24c   :  { %s6994_s9 = scalar_lea.vmem %s7687_s25, 6144  ;;  %p6999_p10 = scmp.lt.s32.totalorder %s7687_s25, %s7687_s25 }
 0x24d   :  { %p6995_p9 = scmp.ne.s32.totalorder %s7687_s25, %s6994_s9  ;;  %p7000_p11 = scmp.lt.s32.totalorder %s6994_s9, %s6994_s9 }
 0x24f   :  { %p7001_p12 = por %p7000_p11, %p6999_p10 }
 0x251   :  { %p7002_p13 = pnand %p7001_p12, %p6995_p9 }
 0x253   :  { %7005 = shalt.err (!%p7002_p13)
}
 0x254   :  { %s8001_s23 = sld [smem:[#allocation92_spill]]  ;;  %s7310_s26 = smov [#allocation39]  }
 0x255   :  { %331 = dma.hbm_to_vmem [thread:$0]  %s8000_s22, 6144, %s7687_s25, [#allocation35], %s7282_s11, %s7282_s11, %s7283_s15  }
 0x256   :  { %s347_s13 = sshll.u32 %s7310_s26, 4  ;;  %s7311_s8 = smov [#allocation42]   ;;  %s348_s13 = int_to_ptr.vmem [resolvable:$true] %s347_s13 }
 0x257   :  { %s369_s3 = sshll.u32 %s7311_s8, 4  ;;  %s7708_s3 = int_to_ptr.vmem [resolvable:$true] %s369_s3 }
 0x25a   :  { %s7006_s0 = scalar_lea.hbm %s8001_s23, 6144 }
 0x25b   :  { %p7007_p0 = scmp.ne.s32.totalorder %s8001_s23, %s7006_s0  ;;  %p7010_p1 = scmp.lt.u32.totalorder %s7006_s0, %s8001_s23 }
 0x25d   :  { %p7012_p2 = pnand %p7010_p1, %p7007_p0 }
 0x25f   :  { %7015 = shalt.err (!%p7012_p2)
}
 0x260   :  { %s7016_s20 = scalar_lea.vmem %s348_s13, 6144  ;;  %p7021_p4 = scmp.lt.s32.totalorder %s348_s13, %s348_s13 }
 0x261   :  { %p7017_p3 = scmp.ne.s32.totalorder %s348_s13, %s7016_s20  ;;  %p7022_p5 = scmp.lt.s32.totalorder %s7016_s20, %s7016_s20 }
 0x263   :  { %p7023_p6 = por %p7022_p5, %p7021_p4 }
 0x265   :  { %p7024_p7 = pnand %p7023_p6, %p7017_p3 }
 0x267   :  { %7027 = shalt.err (!%p7024_p7)
}
 0x268   :  { %s8002_s28 = sld [smem:[#allocation93_spill]] }
 0x269   :  { %353 = dma.hbm_to_vmem [thread:$0]  %s8001_s23, 6144, %s348_s13, [#allocation38], %s7282_s11, %s7282_s11, %s7283_s15  }
 0x26e   :  { %s7028_s29 = scalar_lea.hbm %s8002_s28, 6144 }
 0x26f   :  { %p7029_p8 = scmp.ne.s32.totalorder %s8002_s28, %s7028_s29  ;;  %p7032_p9 = scmp.lt.u32.totalorder %s7028_s29, %s8002_s28 }
 0x271   :  { %p7034_p10 = pnand %p7032_p9, %p7029_p8 }
 0x273   :  { %7037 = shalt.err (!%p7034_p10)
}
 0x274   :  { %s7038_s1 = scalar_lea.vmem %s7708_s3, 6144  ;;  %p7043_p12 = scmp.lt.s32.totalorder %s7708_s3, %s7708_s3 }
 0x275   :  { %p7039_p11 = scmp.ne.s32.totalorder %s7708_s3, %s7038_s1  ;;  %p7044_p13 = scmp.lt.s32.totalorder %s7038_s1, %s7038_s1 }
 0x277   :  { %p7045_p0 = por %p7044_p13, %p7043_p12 }
 0x279   :  { %p7046_p1 = pnand %p7045_p0, %p7039_p11 }
 0x27b   :  { %7049 = shalt.err (!%p7046_p1)
}
 0x27c   :  { %s8003_s14 = sld [smem:[#allocation94_spill]]  ;;  %s7312_s4 = smov [#allocation45]  }
 0x27d   :  { %375 = dma.hbm_to_vmem [thread:$0]  %s8002_s28, 6144, %s7708_s3, [#allocation41], %s7282_s11, %s7282_s11, %s7283_s15  }
 0x27e   :  { %s391_s7 = sshll.u32 %s7312_s4, 4  ;;  %s7313_s17 = smov [#allocation48]   ;;  %s392_s7 = int_to_ptr.vmem [resolvable:$true] %s391_s7 }
 0x27f   :  { %s413_s21 = sshll.u32 %s7313_s17, 4  ;;  %s7729_s21 = int_to_ptr.vmem [resolvable:$true] %s413_s21 }
 0x282   :  { %s7050_s2 = scalar_lea.hbm %s8003_s14, 2048 }
 0x283   :  { %p7051_p2 = scmp.ne.s32.totalorder %s8003_s14, %s7050_s2  ;;  %p7054_p3 = scmp.lt.u32.totalorder %s7050_s2, %s8003_s14 }
 0x285   :  { %p7056_p4 = pnand %p7054_p3, %p7051_p2 }
 0x287   :  { %7059 = shalt.err (!%p7056_p4)
}
 0x288   :  { %s7060_s10 = scalar_lea.vmem %s392_s7, 2048  ;;  %p7065_p6 = scmp.lt.s32.totalorder %s392_s7, %s392_s7 }
 0x289   :  { %p7061_p5 = scmp.ne.s32.totalorder %s392_s7, %s7060_s10  ;;  %p7066_p7 = scmp.lt.s32.totalorder %s7060_s10, %s7060_s10 }
 0x28b   :  { %p7067_p8 = por %p7066_p7, %p7065_p6 }
 0x28d   :  { %p7068_p9 = pnand %p7067_p8, %p7061_p5 }
 0x28f   :  { %7071 = shalt.err (!%p7068_p9)
}
 0x290   :  { %s8004_s16 = sld [smem:[#allocation95_spill]] }
 0x291   :  { %397 = dma.hbm_to_vmem [thread:$0]  %s8003_s14, 2048, %s392_s7, [#allocation44], %s7282_s11, %s7282_s11, %s7283_s15  }
 0x296   :  { %s7072_s30 = scalar_lea.hbm %s8004_s16, 2048 }
 0x297   :  { %p7073_p10 = scmp.ne.s32.totalorder %s8004_s16, %s7072_s30  ;;  %p7076_p11 = scmp.lt.u32.totalorder %s7072_s30, %s8004_s16 }
 0x299   :  { %p7078_p12 = pnand %p7076_p11, %p7073_p10 }
 0x29b   :  { %7081 = shalt.err (!%p7078_p12)
}
 0x29c   :  { %s7082_s24 = scalar_lea.vmem %s7729_s21, 2048  ;;  %p7087_p0 = scmp.lt.s32.totalorder %s7729_s21, %s7729_s21 }
 0x29d   :  { %p7083_p13 = scmp.ne.s32.totalorder %s7729_s21, %s7082_s24  ;;  %p7088_p1 = scmp.lt.s32.totalorder %s7082_s24, %s7082_s24 }
 0x29f   :  { %p7089_p2 = por %p7088_p1, %p7087_p0 }
 0x2a1   :  { %p7090_p3 = pnand %p7089_p2, %p7083_p13 }
 0x2a3   :  { %7093 = shalt.err (!%p7090_p3)
}
 0x2a4   :  { %s8005_s25 = sld [smem:[#allocation97_spill]]  ;;  %s7314_s18 = smov [#allocation51]  }
 0x2a5   :  { %419 = dma.hbm_to_vmem [thread:$0]  %s8004_s16, 2048, %s7729_s21, [#allocation47], %s7282_s11, %s7282_s11, %s7283_s15  }
 0x2a6   :  { %s435_s19 = sshll.u32 %s7314_s18, 4  ;;  %s7315_s22 = smov [#allocation54]   ;;  %s436_s19 = int_to_ptr.vmem [resolvable:$true] %s435_s19 }
 0x2a7   :  { %s457_s6 = sshll.u32 %s7315_s22, 4  ;;  %s7750_s6 = int_to_ptr.vmem [resolvable:$true] %s457_s6 }
 0x2aa   :  { %s7094_s9 = scalar_lea.hbm %s8005_s25, 2048 }
 0x2ab   :  { %p7095_p4 = scmp.ne.s32.totalorder %s8005_s25, %s7094_s9  ;;  %p7098_p5 = scmp.lt.u32.totalorder %s7094_s9, %s8005_s25 }
 0x2ad   :  { %p7100_p6 = pnand %p7098_p5, %p7095_p4 }
 0x2af   :  { %7103 = shalt.err (!%p7100_p6)
}
 0x2b0   :  { %s7104_s23 = scalar_lea.vmem %s436_s19, 2048  ;;  %p7109_p8 = scmp.lt.s32.totalorder %s436_s19, %s436_s19 }
 0x2b1   :  { %p7105_p7 = scmp.ne.s32.totalorder %s436_s19, %s7104_s23  ;;  %p7110_p9 = scmp.lt.s32.totalorder %s7104_s23, %s7104_s23 }
 0x2b3   :  { %p7111_p10 = por %p7110_p9, %p7109_p8 }
 0x2b5   :  { %p7112_p11 = pnand %p7111_p10, %p7105_p7 }
 0x2b7   :  { %7115 = shalt.err (!%p7112_p11)
}
 0x2b8   :  { %s8006_s26 = sld [smem:[#allocation99_spill]] }
 0x2b9   :  { %441 = dma.hbm_to_vmem [thread:$0]  %s8005_s25, 2048, %s436_s19, [#allocation50], %s7282_s11, %s7282_s11, %s7283_s15  }
 0x2be   :  { %s7116_s13 = scalar_lea.hbm %s8006_s26, 2048 }
 0x2bf   :  { %p7117_p12 = scmp.ne.s32.totalorder %s8006_s26, %s7116_s13  ;;  %p7120_p13 = scmp.lt.u32.totalorder %s7116_s13, %s8006_s26 }
 0x2c1   :  { %p7122_p0 = pnand %p7120_p13, %p7117_p12 }
 0x2c3   :  { %7125 = shalt.err (!%p7122_p0)
}
 0x2c4   :  { %s7126_s8 = scalar_lea.vmem %s7750_s6, 2048  ;;  %p7131_p2 = scmp.lt.s32.totalorder %s7750_s6, %s7750_s6 }
 0x2c5   :  { %p7127_p1 = scmp.ne.s32.totalorder %s7750_s6, %s7126_s8  ;;  %p7132_p3 = scmp.lt.s32.totalorder %s7126_s8, %s7126_s8 }
 0x2c7   :  { %p7133_p4 = por %p7132_p3, %p7131_p2 }
 0x2c9   :  { %p7134_p5 = pnand %p7133_p4, %p7127_p1 }
 0x2cb   :  { %7137 = shalt.err (!%p7134_p5)
}
 0x2cc   :  { %463 = dma.hbm_to_vmem [thread:$0]  %s8006_s26, 2048, %s7750_s6, [#allocation53], %s7282_s11, %s7282_s11, %s7283_s15  }
 0x2cd   :  { %s7316_s3 = smov [#allocation57]   ;;  %s7317_s20 = smov [#allocation58]  }
 0x2ce   :  { %s479_s0 = sshll.u32 %s7316_s3, 4  ;;  %s492_s28 = sshll.u32 %s7317_s20, 4  ;;  %s480_s0 = int_to_ptr.vmem [resolvable:$true] %s479_s0  ;;  %s493_s28 = int_to_ptr.vmem [resolvable:$true] %s492_s28 }
 0x2cf   :  { %s7138_s29 = scalar_lea.hbm %s7498_s12, 2048 }
 0x2d0   :  { %p7139_p6 = scmp.ne.s32.totalorder %s7498_s12, %s7138_s29  ;;  %p7142_p7 = scmp.lt.u32.totalorder %s7138_s29, %s7498_s12 }
 0x2d2   :  { %p7144_p8 = pnand %p7142_p7, %p7139_p6 }
 0x2d4   :  { %7147 = shalt.err (!%p7144_p8)
}
 0x2d5   :  { %s7148_s1 = scalar_lea.vmem %s480_s0, 2048  ;;  %p7153_p10 = scmp.lt.s32.totalorder %s480_s0, %s480_s0 }
 0x2d6   :  { %p7149_p9 = scmp.ne.s32.totalorder %s480_s0, %s7148_s1  ;;  %p7154_p11 = scmp.lt.s32.totalorder %s7148_s1, %s7148_s1 }
 0x2d8   :  { %p7155_p12 = por %p7154_p11, %p7153_p10 }
 0x2da   :  { %p7156_p13 = pnand %p7155_p12, %p7149_p9 }
 0x2dc   :  { %7159 = shalt.err (!%p7156_p13)
}
 0x2dd   :  { %485 = dma.hbm_to_vmem [thread:$0]  %s7498_s12, 2048, %s480_s0, [#allocation56], %s7282_s11, %s7282_s11, %s7283_s15  }
 0x2de   :  { %s7160_s14 = scalar_lea.hbm %s7503_s5, 16 }
 0x2df   :  { %p7161_p0 = scmp.ne.s32.totalorder %s7503_s5, %s7160_s14  ;;  %p7164_p1 = scmp.lt.u32.totalorder %s7160_s14, %s7503_s5 }
 0x2e1   :  { %p7166_p2 = pnand %p7164_p1, %p7161_p0 }
 0x2e3   :  { %7169 = shalt.err (!%p7166_p2)
}
 0x2e4   :  { %s7170_s4 = scalar_lea.vmem %s493_s28, 16  ;;  %s7174_s7 = scalar_lea.vmem %s493_s28, 32 }
 0x2e5   :  { %p7171_p3 = scmp.ne.s32.totalorder %s493_s28, %s7170_s4  ;;  %p7175_p4 = scmp.lt.s32.totalorder %s493_s28, %s493_s28 }
 0x2e6   :  { %p7176_p5 = scmp.lt.s32.totalorder %s7174_s7, %s7170_s4 }
 0x2e8   :  { %p7177_p6 = por %p7176_p5, %p7175_p4 }
 0x2ea   :  { %p7178_p7 = pnand %p7177_p6, %p7171_p3 }
 0x2ec   :  { %7181 = shalt.err (!%p7178_p7)
}
 0x2ed   :  { %495 = dma.hbm_to_vmem [thread:$0]  %s7503_s5, 16, %s493_s28, [#allocation59]  }
 0x2ee   :  { %7204 = dma.done.wait [#allocation5], 512  }
 0x2ef   :  { %7205 = vsyncadd [#allocation5], 4294966784 }
 0x2f0   :  { %7206 = dma.done.wait [#allocation8], 6656  }
 0x2f1   :  { %7207 = vsyncadd [#allocation8], 4294960640 }
 0x2f2   :  { %7208 = dma.done.wait [#allocation11], 6160  }
 0x2f3   :  { %7209 = vsyncadd [#allocation11], 4294961136 }
 0x2f4   :  { %7210 = dma.done.wait [#allocation14], 2064  }
 0x2f5   :  { %7211 = vsyncadd [#allocation14], 4294965232 }
 0x2f6   :  { %7212 = dma.done.wait [#allocation17], 6160  }
 0x2f7   :  { %7213 = vsyncadd [#allocation17], 4294961136 }
 0x2f8   :  { %7214 = dma.done.wait [#allocation20], 6160  }
 0x2f9   :  { %7215 = vsyncadd [#allocation20], 4294961136 }
 0x2fa   :  { %7216 = dma.done.wait [#allocation23], 6160  }
 0x2fb   :  { %7217 = vsyncadd [#allocation23], 4294961136 }
 0x2fc   :  { %7218 = dma.done.wait [#allocation26], 6160  }
 0x2fd   :  { %7219 = vsyncadd [#allocation26], 4294961136 }
 0x2fe   :  { %7220 = dma.done.wait [#allocation29], 2064  }
 0x2ff   :  { %7221 = vsyncadd [#allocation29], 4294965232 }
 0x300   :  { %7222 = dma.done.wait [#allocation32], 6160  }
 0x301   :  { %7223 = vsyncadd [#allocation32], 4294961136 }
 0x302   :  { %7224 = dma.done.wait [#allocation35], 6160  }
 0x303   :  { %7225 = vsyncadd [#allocation35], 4294961136 }
 0x304   :  { %7226 = dma.done.wait [#allocation38], 6160  }
 0x305   :  { %7227 = vsyncadd [#allocation38], 4294961136 }
 0x306   :  { %7228 = dma.done.wait [#allocation41], 6160  }
 0x307   :  { %7229 = vsyncadd [#allocation41], 4294961136 }
 0x308   :  { %7230 = dma.done.wait [#allocation44], 2064  }
 0x309   :  { %7231 = vsyncadd [#allocation44], 4294965232 }
 0x30a   :  { %7232 = dma.done.wait [#allocation47], 2064  }
 0x30b   :  { %7233 = vsyncadd [#allocation47], 4294965232 }
 0x30c   :  { %7234 = dma.done.wait [#allocation50], 2064  }
 0x30d   :  { %7235 = vsyncadd [#allocation50], 4294965232 }
 0x30e   :  { %7236 = dma.done.wait [#allocation53], 2064  }
 0x30f   :  { %7237 = vsyncadd [#allocation53], 4294965232 }
 0x310   :  { %7238 = dma.done.wait [#allocation56], 2064  }
 0x311   :  { %7239 = vsyncadd [#allocation56], 4294965232 }
 0x312   :  { %7240 = dma.done.wait [#allocation59], 16  }
 0x313   :  { %7241 = vsyncadd [#allocation59], 4294967280  ;;  %v7318_v0 = vmov 0.0   ;;  %v656_v1 = vld [vmem:[#allocation9 + $0x80] sm:$0xff]  ;;  %v657_v2 = vld [vmem:[#allocation9 + $0x88] sm:$0xff]  ;;  %s7319_s5 = smov [#allocation60]  }
 0x314   :  { %607 = vst [vmem:[#allocation2 + $0x18] sm:$0xff] %v7318_v0  ;;  %611 = vst [vmem:[#allocation2 + $0x48] sm:$0xff] %v7318_v0  ;;  %v640_v3 = vld [vmem:[#allocation9] sm:$0xff]  ;;  %v5424_v4 = vpack.c.bf16 %v657_v2, %v656_v1  ;;  %v641_v5 = vld [vmem:[#allocation9 + $0x8] sm:$0xff]  ;;  %s3915_s12 = sshll.u32 %s7319_s5, 4  ;;  %s3916_s12 = int_to_ptr.vmem [resolvable:$true] %s3915_s12 }
 0x315   :  { %615 = vst [vmem:[#allocation3 + $0x18] sm:$0xff] %v7318_v0  ;;  %619 = vst [vmem:[#allocation3 + $0x48] sm:$0xff] %v7318_v0  ;;  %v672_v6 = vld [vmem:[#allocation9 + $0x100] sm:$0xff]  ;;  %v673_v7 = vld [vmem:[#allocation9 + $0x108] sm:$0xff]  ;;  %v5426_v8 = vpack.c.bf16 %v641_v5, %v640_v3  ;;  %s7182_s17 = scalar_lea.vmem %s3916_s12, 512  ;;  %p7187_p9 = scmp.lt.s32.totalorder %s3916_s12, %s3916_s12 }
 0x316   :  { %v5456_v9 = vpack.c.bf16 %v673_v7, %v672_v6  ;;  %v658_v10 = vld [vmem:[#allocation9 + $0x90] sm:$0xff]  ;;  %v659_v11 = vld [vmem:[#allocation9 + $0x98] sm:$0xff]  ;;  %5425 = vmatprep.subr.bf16.mxu0 %v5424_v4  ;;  %v660_v19 = vld [vmem:[#allocation9 + $0xa0] sm:$0xff]  ;;  %p7183_p8 = scmp.ne.s32.totalorder %s3916_s12, %s7182_s17  ;;  %p7188_p10 = scmp.lt.s32.totalorder %s7182_s17, %s7182_s17 }
 0x317   :  { %v642_v12 = vld [vmem:[#allocation9 + $0x10] sm:$0xff]  ;;  %v5428_v13 = vpack.c.bf16 %v659_v11, %v658_v10  ;;  %v643_v14 = vld [vmem:[#allocation9 + $0x18] sm:$0xff]  ;;  %5427 = vmatpush3.bf16.msra.mxu0 %v5426_v8  ;;  %v661_v20 = vld [vmem:[#allocation9 + $0xa8] sm:$0xff] }
 0x318   :  { %v674_v15 = vld [vmem:[#allocation9 + $0x110] sm:$0xff]  ;;  %v675_v16 = vld [vmem:[#allocation9 + $0x118] sm:$0xff]  ;;  %5457 = vmatprep.subr.bf16.mxu1 %v5456_v9  ;;  %v5430_v17 = vpack.c.bf16 %v643_v14, %v642_v12  ;;  %v644_v21 = vld [vmem:[#allocation9 + $0x20] sm:$0xff]  ;;  %v5432_v22 = vpack.c.bf16 %v661_v20, %v660_v19  ;;  %p7189_p11 = por %p7188_p10, %p7187_p9 }
 0x319   :  { %v5460_v18 = vpack.c.bf16 %v675_v16, %v674_v15  ;;  %5429 = vmatprep.subr.bf16.mxu0 %v5428_v13  ;;  %5459 = vmatpush3.bf16.msra.mxu1 %v5456_v9  ;;  %v645_v23 = vld [vmem:[#allocation9 + $0x28] sm:$0xff]  ;;  %v676_v24 = vld [vmem:[#allocation9 + $0x120] sm:$0xff]  ;;  %v662_v27 = vld [vmem:[#allocation9 + $0xb0] sm:$0xff] }
 0x31a   :  { %v677_v25 = vld [vmem:[#allocation9 + $0x128] sm:$0xff]  ;;  %v663_v28 = vld [vmem:[#allocation9 + $0xb8] sm:$0xff]  ;;  %v678_v29 = vld [vmem:[#allocation9 + $0x130] sm:$0xff]  ;;  %v5434_v31 = vpack.c.bf16 %v645_v23, %v644_v21  ;;  %p7190_p12 = pnand %p7189_p11, %p7183_p8 }
 0x31b   :  { %5461 = vmatprep.subr.bf16.mxu1 %v5460_v18  ;;  %v5464_v26 = vpack.c.bf16 %v677_v25, %v676_v24  ;;  %v679_v30 = vld [vmem:[#allocation9 + $0x138] sm:$0xff]  ;;  %5431 = vmatpush3.bf16.msra.mxu0 %v5430_v17  ;;  %v5436_v32 = vpack.c.bf16 %v663_v28, %v662_v27  ;;  %v646_v33 = vld [vmem:[#allocation9 + $0x30] sm:$0xff]  ;;  %v664_v36 = vld [vmem:[#allocation9 + $0xc0] sm:$0xff] }
 0x31c   :  { %5433 = vmatprep.subr.bf16.mxu0 %v5432_v22  ;;  %v647_v34 = vld [vmem:[#allocation9 + $0x38] sm:$0xff]  ;;  %v5468_v35 = vpack.c.bf16 %v679_v30, %v678_v29  ;;  %v665_v37 = vld [vmem:[#allocation9 + $0xc8] sm:$0xff]  ;;  %v680_v38 = vld [vmem:[#allocation9 + $0x140] sm:$0xff] }
 0x31d   :  { %5463 = vmatpush3.bf16.msra.mxu1 %v5460_v18  ;;  %v681_v39 = vld [vmem:[#allocation9 + $0x148] sm:$0xff]  ;;  %v5438_v40 = vpack.c.bf16 %v647_v34, %v646_v33  ;;  %v5440_v41 = vpack.c.bf16 %v665_v37, %v664_v36  ;;  %v648_v42 = vld [vmem:[#allocation9 + $0x40] sm:$0xff]  ;;  %v666_v45 = vld [vmem:[#allocation9 + $0xd0] sm:$0xff] }
 0x31e   :  { %5465 = vmatprep.subr.bf16.mxu1 %v5464_v26  ;;  %v649_v43 = vld [vmem:[#allocation9 + $0x48] sm:$0xff]  ;;  %v5472_v44 = vpack.c.bf16 %v681_v39, %v680_v38  ;;  %v667_v46 = vld [vmem:[#allocation9 + $0xd8] sm:$0xff]  ;;  %v682_v47 = vld [vmem:[#allocation9 + $0x150] sm:$0xff] }
 0x31f   :  { %5435 = vmatpush3.bf16.msra.mxu0 %v5434_v31  ;;  %v683_v48 = vld [vmem:[#allocation9 + $0x158] sm:$0xff]  ;;  %v7782_v49 = vld [vmem:[#allocation4] sm:$0xff]  ;;  %v5442_v50 = vpack.c.bf16 %v649_v43, %v648_v42  ;;  %v7786_v51 = vld [vmem:[#allocation4 + $0x8] sm:$0xff]  ;;  %v5444_v53 = vpack.c.bf16 %v667_v46, %v666_v45 }
 0x320   :  { %5437 = vmatprep.subr.bf16.mxu0 %v5436_v32  ;;  %624 = vst [vmem:[#allocation2 + $0x20] sm:$0xff] %v7782_v49  ;;  %4810 = vmatprep.mubr.f32.mxu1 %v7782_v49  ;;  %v7788_v52 = vld [vmem:[#allocation4 + $0x10] sm:$0xff]  ;;  %v651_v55 = vld [vmem:[#allocation9 + $0x58] sm:$0xff]  ;;  %625 = vst [vmem:[#allocation2 + $0x28] sm:$0xff] %v7786_v51  ;;  %v5476_v57 = vpack.c.bf16 %v683_v48, %v682_v47 }
 0x321   :  { %5467 = vmatpush3.bf16.msra.mxu1 %v5464_v26  ;;  %v650_v54 = vld [vmem:[#allocation9 + $0x50] sm:$0xff]  ;;  %626 = vst [vmem:[#allocation2 + $0x50] sm:$0xff] %v7788_v52  ;;  %v7792_v56 = vld [vmem:[#allocation4 + $0x18] sm:$0xff]  ;;  %v668_v58 = vld [vmem:[#allocation9 + $0xe0] sm:$0xff] }
 0x322   :  { %5469 = vmatprep.subr.bf16.mxu1 %v5468_v35  ;;  %v669_v59 = vld [vmem:[#allocation9 + $0xe8] sm:$0xff]  ;;  %627 = vst [vmem:[#allocation2 + $0x58] sm:$0xff] %v7792_v56  ;;  %v684_v60 = vld [vmem:[#allocation9 + $0x160] sm:$0xff]  ;;  %v5446_v62 = vpack.c.bf16 %v651_v55, %v650_v54  ;;  %v670_v3 = vld [vmem:[#allocation9 + $0xf0] sm:$0xff] }
 0x323   :  { %5439 = vmatpush3.bf16.msra.mxu0 %v5438_v40  ;;  %v685_v61 = vld [vmem:[#allocation9 + $0x168] sm:$0xff]  ;;  %v5448_v63 = vpack.c.bf16 %v669_v59, %v668_v58  ;;  %v652_v0 = vld [vmem:[#allocation9 + $0x60] sm:$0xff]  ;;  %v671_v4 = vld [vmem:[#allocation9 + $0xf8] sm:$0xff] }
 0x324   :  { %5441 = vmatprep.subr.bf16.mxu0 %v5440_v41  ;;  %v653_v1 = vld [vmem:[#allocation9 + $0x68] sm:$0xff]  ;;  %v5480_v2 = vpack.c.bf16 %v685_v61, %v684_v60  ;;  %v686_v6 = vld [vmem:[#allocation9 + $0x170] sm:$0xff]  ;;  %v687_v7 = vld [vmem:[#allocation9 + $0x178] sm:$0xff]  ;;  %v5452_v9 = vpack.c.bf16 %v671_v4, %v670_v3 }
 0x325   :  { %5471 = vmatpush3.bf16.msra.mxu1 %v5468_v35  ;;  %v5450_v8 = vpack.c.bf16 %v653_v1, %v652_v0  ;;  %v654_v10 = vld [vmem:[#allocation9 + $0x70] sm:$0xff]  ;;  %v655_v11 = vld [vmem:[#allocation9 + $0x78] sm:$0xff]  ;;  %v5484_v12 = vpack.c.bf16 %v687_v7, %v686_v6  ;;  %v901_v13 = vld [vmem:[#allocation12 + $0x80] sm:$0xff] }
 0x326   :  { %5473 = vmatprep.subr.bf16.mxu1 %v5472_v44  ;;  %v902_v14 = vld [vmem:[#allocation12 + $0x88] sm:$0xff]  ;;  %v917_v15 = vld [vmem:[#allocation12 + $0x100] sm:$0xff]  ;;  %v5454_v17 = vpack.c.bf16 %v655_v11, %v654_v10  ;;  %v903_v22 = vld [vmem:[#allocation12 + $0x90] sm:$0xff] }
 0x327   :  { %5443 = vmatpush3.bf16.msra.mxu0 %v5442_v50  ;;  %v636_v5 = vld [vmem:[#allocation2 + $0x1f] sm:$0xff]  ;;  %v918_v16 = vld [vmem:[#allocation12 + $0x108] sm:$0xff]  ;;  %v5488_v18 = vpack.c.bf16 %v902_v14, %v901_v13  ;;  %v919_v25 = vld [vmem:[#allocation12 + $0x110] sm:$0xff] }
 0x328   :  { %5445 = vmatprep.subr.bf16.mxu0 %v5444_v53  ;;  %759 = vmatprep.mubr.f32.mxu0 %v636_v5  ;;  %v885_v19 = vld [vmem:[#allocation12] sm:$0xff]  ;;  %v886_v20 = vld [vmem:[#allocation12 + $0x8] sm:$0xff]  ;;  %v5520_v21 = vpack.c.bf16 %v918_v16, %v917_v15  ;;  %v904_v23 = vld [vmem:[#allocation12 + $0x98] sm:$0xff] }
 0x329   :  { %5475 = vmatpush3.bf16.msra.mxu1 %v5472_v44  ;;  %v632_v24 = vld [vmem:[#allocation2 + $0x1e] sm:$0xff]  ;;  %v637_v27 = vld [vmem:[#allocation2 + $0x27] sm:$0xff]  ;;  %v5490_v28 = vpack.c.bf16 %v886_v20, %v885_v19  ;;  %v5492_v29 = vpack.c.bf16 %v904_v23, %v903_v22  ;;  %v887_v30 = vld [vmem:[#allocation12 + $0x10] sm:$0xff] }
 0x32a   :  { %5477 = vmatprep.subr.bf16.mxu1 %v5476_v57  ;;  %v920_v26 = vld [vmem:[#allocation12 + $0x118] sm:$0xff]  ;;  %v905_v32 = vld [vmem:[#allocation12 + $0xa0] sm:$0xff]  ;;  %v906_v33 = vld [vmem:[#allocation12 + $0xa8] sm:$0xff] }
 0x32b   :  { %5447 = vmatpush3.bf16.msra.mxu0 %v5446_v62  ;;  %v888_v31 = vld [vmem:[#allocation12 + $0x18] sm:$0xff]  ;;  %v5524_v34 = vpack.c.bf16 %v920_v26, %v919_v25  ;;  %v633_v35 = vld [vmem:[#allocation2 + $0x26] sm:$0xff]  ;;  %v638_v38 = vld [vmem:[#allocation2 + $0x4f] sm:$0xff]  ;;  %v5496_v40 = vpack.c.bf16 %v906_v33, %v905_v32 }
 0x32c   :  { %5449 = vmatprep.subr.bf16.mxu0 %v5448_v63  ;;  %v921_v36 = vld [vmem:[#allocation12 + $0x120] sm:$0xff]  ;;  %v922_v37 = vld [vmem:[#allocation12 + $0x128] sm:$0xff]  ;;  %v5494_v39 = vpack.c.bf16 %v888_v31, %v887_v30  ;;  %v907_v43 = vld [vmem:[#allocation12 + $0xb0] sm:$0xff] }
 0x32d   :  { %5479 = vmatpush3.bf16.msra.mxu1 %v5476_v57  ;;  %v889_v41 = vld [vmem:[#allocation12 + $0x20] sm:$0xff]  ;;  %v890_v42 = vld [vmem:[#allocation12 + $0x28] sm:$0xff]  ;;  %v908_v44 = vld [vmem:[#allocation12 + $0xb8] sm:$0xff]  ;;  %v5528_v45 = vpack.c.bf16 %v922_v37, %v921_v36 }
 0x32e   :  { %5481 = vmatprep.subr.bf16.mxu1 %v5480_v2  ;;  %v634_v46 = vld [vmem:[#allocation2 + $0x4e] sm:$0xff]  ;;  %v639_v47 = vld [vmem:[#allocation2 + $0x57] sm:$0xff]  ;;  %v5498_v48 = vpack.c.bf16 %v890_v42, %v889_v41  ;;  %v5500_v50 = vpack.c.bf16 %v908_v44, %v907_v43  ;;  %v925_v61 = vld [vmem:[#allocation12 + $0x140] sm:$0xff] }
 0x32f   :  { %5451 = vmatpush3.bf16.msra.mxu0 %v5450_v8  ;;  %v891_v53 = vld [vmem:[#allocation12 + $0x30] sm:$0xff]  ;;  %v892_v54 = vld [vmem:[#allocation12 + $0x38] sm:$0xff]  ;;  %v926_v62 = vld [vmem:[#allocation12 + $0x148] sm:$0xff] }
 0x330   :  { %5453 = vmatprep.subr.bf16.mxu0 %v5452_v9  ;;  %v635_v55 = vld [vmem:[#allocation2 + $0x56] sm:$0xff]  ;;  %v5502_v57 = vpack.c.bf16 %v892_v54, %v891_v53  ;;  %v5536_v63 = vpack.c.bf16 %v926_v62, %v925_v61  ;;  %v909_v0 = vld [vmem:[#allocation12 + $0xc0] sm:$0xff]  ;;  %v910_v1 = vld [vmem:[#allocation12 + $0xc8] sm:$0xff] }
 0x331   :  { %5483 = vmatpush3.bf16.msra.mxu1 %v5480_v2  ;;  %v923_v58 = vld [vmem:[#allocation12 + $0x130] sm:$0xff]  ;;  %v924_v59 = vld [vmem:[#allocation12 + $0x138] sm:$0xff]  ;;  %v5504_v3 = vpack.c.bf16 %v910_v1, %v909_v0  ;;  %v893_v4 = vld [vmem:[#allocation12 + $0x40] sm:$0xff] }
 0x332   :  { %5485 = vmatprep.subr.bf16.mxu1 %v5484_v12  ;;  %v5532_v60 = vpack.c.bf16 %v924_v59, %v923_v58  ;;  %v927_v2 = vld [vmem:[#allocation12 + $0x150] sm:$0xff]  ;;  %v894_v5 = vld [vmem:[#allocation12 + $0x48] sm:$0xff]  ;;  %v928_v6 = vld [vmem:[#allocation12 + $0x158] sm:$0xff] }
 0x333   :  { %5455 = vmatpush3.bf16.msra.mxu0 %v5454_v17  ;;  %v5506_v7 = vpack.c.bf16 %v894_v5, %v893_v4  ;;  %v5540_v8 = vpack.c.bf16 %v928_v6, %v927_v2  ;;  %v911_v9 = vld [vmem:[#allocation12 + $0xd0] sm:$0xff]  ;;  %v912_v10 = vld [vmem:[#allocation12 + $0xd8] sm:$0xff]  ;;  %v929_v14 = vld [vmem:[#allocation12 + $0x160] sm:$0xff] }
 0x334   :  { %5489 = vmatprep.subr.bf16.mxu0 %v5488_v18  ;;  %v5508_v11 = vpack.c.bf16 %v912_v10, %v911_v9  ;;  %v896_v13 = vld [vmem:[#allocation12 + $0x58] sm:$0xff]  ;;  %v930_v16 = vld [vmem:[#allocation12 + $0x168] sm:$0xff]  ;;  %v913_v18 = vld [vmem:[#allocation12 + $0xe0] sm:$0xff] }
 0x335   :  { %5487 = vmatpush3.bf16.msra.mxu1 %v5484_v12  ;;  %v895_v12 = vld [vmem:[#allocation12 + $0x50] sm:$0xff]  ;;  %v5544_v17 = vpack.c.bf16 %v930_v16, %v929_v14  ;;  %v914_v19 = vld [vmem:[#allocation12 + $0xe8] sm:$0xff]  ;;  %v897_v22 = vld [vmem:[#allocation12 + $0x60] sm:$0xff] }
 0x336   :  { %5521 = vmatprep.subr.bf16.mxu1 %v5520_v21  ;;  %760 = vmatmul.mubr.f32.vlgmr.msra.gmra.mrb[0].mxu0 %v632_v24  ;;  %v5510_v15 = vpack.c.bf16 %v896_v13, %v895_v12  ;;  %v931_v20 = vld [vmem:[#allocation12 + $0x170] sm:$0xff]  ;;  %v898_v23 = vld [vmem:[#allocation12 + $0x68] sm:$0xff]  ;;  %v932_v24 = vld [vmem:[#allocation12 + $0x178] sm:$0xff] }
 0x337   :  { %764 = vmatprep.mubr.f32.mxu0 %v637_v27  ;;  %5491 = vmatpush3.bf16.msra.mxu0 %v5490_v28  ;;  %v5514_v25 = vpack.c.bf16 %v898_v23, %v897_v22  ;;  %v5548_v26 = vpack.c.bf16 %v932_v24, %v931_v20  ;;  %v915_v27 = vld [vmem:[#allocation12 + $0xf0] sm:$0xff]  ;;  %v916_v28 = vld [vmem:[#allocation12 + $0xf8] sm:$0xff]  ;;  %v1114_v33 = vld [vmem:[#allocation15] sm:$0xff] }
 0x338   :  { %4811 = vmatmul.mubr.f32.vlgmr.msra.gmra.mrb[0].mxu1 %v7786_v51  ;;  %5493 = vmatprep.subr.bf16.mxu0 %v5492_v29  ;;  %v5516_v29 = vpack.c.bf16 %v916_v28, %v915_v27  ;;  %v899_v30 = vld [vmem:[#allocation12 + $0x70] sm:$0xff]  ;;  %v900_v31 = vld [vmem:[#allocation12 + $0x78] sm:$0xff]  ;;  %v1118_v9 = vld [vmem:[#allocation15 + $0x20] sm:$0xff] }
 0x339   :  { %4813 = vmatprep.mubr.f32.mxu1 %v7788_v52  ;;  %5523 = vmatpush3.bf16.msra.mxu1 %v5520_v21  ;;  %v5512_v21 = vpack.c.bf16 %v914_v19, %v913_v18  ;;  %v5518_v32 = vpack.c.bf16 %v900_v31, %v899_v30  ;;  %v1116_v1 = vld [vmem:[#allocation15 + $0x10] sm:$0xff]  ;;  %v1117_v2 = vld [vmem:[#allocation15 + $0x18] sm:$0xff]  ;;  %v1119_v10 = vld [vmem:[#allocation15 + $0x28] sm:$0xff] }
 0x33a   :  { %765 = vmatmul.mubr.f32.gmra.mrb[2].mxu0 %v633_v35  ;;  %5525 = vmatprep.subr.bf16.mxu1 %v5524_v34  ;;  %v5560_v14 = vpack.c.bf16 %v1119_v10, %v1118_v9  ;;  %v1121_v16 = vld [vmem:[#allocation15 + $0x38] sm:$0xff]  ;;  %v1122_v20 = vld [vmem:[#allocation15 + $0x40] sm:$0xff]  ;;  %v1128_v31 = vld [vmem:[#allocation15 + $0x70] sm:$0xff] }
 0x33b   :  { %769 = vmatprep.mubr.f32.mxu0 %v638_v38  ;;  %5495 = vmatpush3.bf16.msra.mxu0 %v5494_v39  ;;  %v3981_v39 = vld [vmem:[#allocation10] ss:$0 sm:$0xff]  ;;  %v1126_v28 = vld [vmem:[#allocation15 + $0x60] sm:$0xff]  ;;  %v1288_v9 = vld [vmem:[#allocation18 + $0x150] sm:$0xff] }
 0x33c   :  { %4814 = vmatmul.mubr.f32.gmra.mrb[2].mxu1 %v7792_v56  ;;  %5497 = vmatprep.subr.bf16.mxu0 %v5496_v40  ;;  %v1289_v10 = vld [vmem:[#allocation18 + $0x158] sm:$0xff] }
 0x33d   :  { %5527 = vmatpush3.bf16.msra.mxu1 %v5524_v34  ;;  %v1115_v34 = vld [vmem:[#allocation15 + $0x8] sm:$0xff] }
 0x33e   :  { %770 = vmatmul.mubr.f32.gmra.mrb[4].mxu0 %v634_v46  ;;  %5529 = vmatprep.subr.bf16.mxu1 %v5528_v45  ;;  %v5552_v35 = vpack.c.bf16 %v1115_v34, %v1114_v33  ;;  %v1279_v34 = vld [vmem:[#allocation18 + $0x108] sm:$0xff] }
 0x33f   :  { %774 = vmatprep.mubr.f32.mxu0 %v639_v47  ;;  %5499 = vmatpush3.bf16.msra.mxu0 %v5498_v48 }
 0x340   :  { %5501 = vmatprep.subr.bf16.mxu0 %v5500_v50 }
 0x341   :  { %5531 = vmatpush3.bf16.msra.mxu1 %v5528_v45 }
 0x342   :  { %775 = vmatmul.mubr.f32.gmra.mrb[6].mxu0 %v635_v55  ;;  %5533 = vmatprep.subr.bf16.mxu1 %v5532_v60 }
 0x343   :  { %5503 = vmatpush3.bf16.msra.mxu0 %v5502_v57 }
 0x344   :  { %5505 = vmatprep.subr.bf16.mxu0 %v5504_v3 }
 0x345   :  { %5535 = vmatpush3.bf16.msra.mxu1 %v5532_v60 }
 0x346   :  { %5537 = vmatprep.subr.bf16.mxu1 %v5536_v63 }
 0x347   :  { %5507 = vmatpush3.bf16.msra.mxu0 %v5506_v7  ;;  %v5556_v7 = vpack.c.bf16 %v1117_v2, %v1116_v1  ;;  %v1286_v2 = vld [vmem:[#allocation18 + $0x140] sm:$0xff] }
 0x348   :  { %5509 = vmatprep.subr.bf16.mxu0 %v5508_v11 }
 0x349   :  { %5539 = vmatpush3.bf16.msra.mxu1 %v5536_v63 }
 0x34a   :  { %5541 = vmatprep.subr.bf16.mxu1 %v5540_v8 }
 0x34b   :  { %5511 = vmatpush3.bf16.msra.mxu0 %v5510_v15  ;;  %v1120_v15 = vld [vmem:[#allocation15 + $0x30] sm:$0xff] }
 0x34c   :  { %5513 = vmatprep.subr.bf16.mxu0 %v5512_v21  ;;  %v5564_v18 = vpack.c.bf16 %v1121_v16, %v1120_v15  ;;  %v1123_v21 = vld [vmem:[#allocation15 + $0x48] sm:$0xff] }
 0x34d   :  { %5543 = vmatpush3.bf16.msra.mxu1 %v5540_v8  ;;  %v5568_v23 = vpack.c.bf16 %v1123_v21, %v1122_v20  ;;  %v1254_v16 = vld [vmem:[#allocation18 + $0x40] sm:$0xff]  ;;  %v1272_v21 = vld [vmem:[#allocation18 + $0xd0] sm:$0xff] }
 0x34e   :  { %5545 = vmatprep.subr.bf16.mxu1 %v5544_v17 }
 0x34f   :  { %5515 = vmatpush3.bf16.msra.mxu0 %v5514_v25  ;;  %v1124_v25 = vld [vmem:[#allocation15 + $0x50] sm:$0xff] }
 0x350   :  { %5517 = vmatprep.subr.bf16.mxu0 %v5516_v29  ;;  %v1127_v29 = vld [vmem:[#allocation15 + $0x68] sm:$0xff] }
 0x351   :  { %5547 = vmatpush3.bf16.msra.mxu1 %v5544_v17  ;;  %v5576_v30 = vpack.c.bf16 %v1127_v29, %v1126_v28 }
 0x352   :  { %5549 = vmatprep.subr.bf16.mxu1 %v5548_v26 }
 0x353   :  { %5519 = vmatpush3.bf16.msra.mxu0 %v5518_v32  ;;  %v1129_v32 = vld [vmem:[#allocation15 + $0x78] sm:$0xff] }
 0x354   :  { %5553 = vmatprep.subr.bf16.mxu0 %v5552_v35  ;;  %v5580_v33 = vpack.c.bf16 %v1129_v32, %v1128_v31  ;;  %v1275_v31 = vld [vmem:[#allocation18 + $0xe8] sm:$0xff] }
 0x355   :  { %5551 = vmatpush3.bf16.msra.mxu1 %v5548_v26  ;;  %v1125_v26 = vld [vmem:[#allocation15 + $0x58] sm:$0xff] }
 0x356   :  { %v5572_v27 = vpack.c.bf16 %v1125_v26, %v1124_v25  ;;  %v1256_v25 = vld [vmem:[#allocation18 + $0x50] sm:$0xff]  ;;  %v1257_v26 = vld [vmem:[#allocation18 + $0x58] sm:$0xff] }
 0x357   :  { %v5606_v28 = vpack.c.bf16 %v1257_v26, %v1256_v25 }
 0x409   :  { %v4030_v36 = vpop.f32.mrb[0].mxu0 }
 0x40a   :  { %v4031_v37 = vpop.f32.mrb[1].mxu0 }
 0x40b   :  { %v4812_v38 = vpop.f32.mrb[0].mxu1  ;;  %v4032_v40 = vadd.f32 %v4031_v37, %v4030_v36  ;;  %v1280_v36 = vld [vmem:[#allocation18 + $0x110] sm:$0xff]  ;;  %v1281_v37 = vld [vmem:[#allocation18 + $0x118] sm:$0xff] }
 0x40c   :  { %v846_v41 = vpop.f32.mrb[1].mxu1 }
 0x40d   :  { %v4033_v42 = vpop.f32.mrb[2].mxu0  ;;  %v762_v43 = vadd.f32 %v4032_v40, %v3981_v39  ;;  %v1263_v40 = vld [vmem:[#allocation18 + $0x88] sm:$0xff] }
 0x40e   :  { %v4034_v44 = vpop.f32.mrb[3].mxu0 }
 0x40f   :  { %v4815_v45 = vpop.f32.mrb[2].mxu1  ;;  %v847_v46 = vadd.f32 %v846_v41, %v762_v43  ;;  %v4035_v47 = vadd.f32 %v4034_v44, %v4033_v42  ;;  %v1246_v42 = vld [vmem:[#allocation18] sm:$0xff]  ;;  %v1247_v43 = vld [vmem:[#allocation18 + $0x8] sm:$0xff] }
 0x410   :  { %v856_v48 = vpop.f32.mrb[3].mxu1  ;;  %v1283_v44 = vld [vmem:[#allocation18 + $0x128] sm:$0xff] }
 0x411   :  { %v865_v50 = vmax.f32 %v847_v46, 0.0  ;;  %v767_v53 = vadd.f32 %v4035_v47, %v3981_v39  ;;  %v4036_v54 = vpop.f32.mrb[4].mxu0  ;;  %v1265_v46 = vld [vmem:[#allocation18 + $0x98] sm:$0xff]  ;;  %v1284_v47 = vld [vmem:[#allocation18 + $0x130] sm:$0xff] }
 0x412   :  { %v4037_v55 = vpop.f32.mrb[5].mxu0 }
 0x413   :  { %869 = vst [vmem:[#allocation3 + $0x20] sm:$0xff] %v865_v50  ;;  %v852_v57 = vadd.f32 %v4812_v38, %v767_v53  ;;  %v4038_v58 = vadd.f32 %v4037_v55, %v4036_v54  ;;  %4848 = vmatprep.mubr.f32.mxu1 %v865_v50  ;;  %v5620_v38 = vpack.c.bf16 %v1281_v37, %v1280_v36  ;;  %v1248_v50 = vld [vmem:[#allocation18 + $0x10] sm:$0xff]  ;;  %v1249_v53 = vld [vmem:[#allocation18 + $0x18] sm:$0xff] }
 0x414   :  { %v1285_v54 = vld [vmem:[#allocation18 + $0x138] sm:$0xff]  ;;  %v5590_v55 = vpack.c.bf16 %v1249_v53, %v1248_v50 }
 0x415   :  { %v866_v59 = vmax.f32 %v852_v57, 0.0  ;;  %v4039_v60 = vpop.f32.mrb[6].mxu0  ;;  %v772_v61 = vadd.f32 %v4038_v58, %v3981_v39  ;;  %v1266_v57 = vld [vmem:[#allocation18 + $0xa0] sm:$0xff]  ;;  %v1267_v58 = vld [vmem:[#allocation18 + $0xa8] sm:$0xff]  ;;  %v1277_v36 = vld [vmem:[#allocation18 + $0xf8] sm:$0xff] }
 0x416   :  { %v4040_v62 = vpop.f32.mrb[7].mxu0 }
 0x417   :  { %870 = vst [vmem:[#allocation3 + $0x28] sm:$0xff] %v866_v59  ;;  %v4041_v63 = vadd.f32 %v4040_v62, %v4039_v60  ;;  %v857_v0 = vadd.f32 %v856_v48, %v772_v61  ;;  %4849 = vmatmul.mubr.f32.vlgmr.msra.gmra.mrb[4].mxu1 %v866_v59  ;;  %v1250_v59 = vld [vmem:[#allocation18 + $0x20] sm:$0xff]  ;;  %v5628_v60 = vpack.c.bf16 %v1285_v54, %v1284_v47  ;;  %v1251_v62 = vld [vmem:[#allocation18 + $0x28] sm:$0xff] }
 0x418   :  { %v5592_v61 = vpack.c.bf16 %v1267_v58, %v1266_v57  ;;  %v5594_v1 = vpack.c.bf16 %v1251_v62, %v1250_v59 }
 0x419   :  { %v777_v3 = vadd.f32 %v4041_v63, %v3981_v39  ;;  %v867_v4 = vmax.f32 %v857_v0, 0.0  ;;  %v1262_v39 = vld [vmem:[#allocation18 + $0x80] sm:$0xff]  ;;  %v1268_v63 = vld [vmem:[#allocation18 + $0xb0] sm:$0xff]  ;;  %v1269_v0 = vld [vmem:[#allocation18 + $0xb8] sm:$0xff] }
 0x41a   :  { %v877_v5 = vld [vmem:[#allocation3 + $0x1f] sm:$0xff]  ;;  %v5584_v41 = vpack.c.bf16 %v1263_v40, %v1262_v39 }
 0x41b   :  { %v873_v6 = vld [vmem:[#allocation3 + $0x1e] sm:$0xff]  ;;  %v862_v8 = vadd.f32 %v4815_v45, %v777_v3  ;;  %871 = vst [vmem:[#allocation3 + $0x50] sm:$0xff] %v867_v4  ;;  %1004 = vmatprep.mubr.f32.mxu0 %v877_v5  ;;  %4851 = vmatprep.mubr.f32.mxu1 %v867_v4  ;;  %v1264_v45 = vld [vmem:[#allocation18 + $0x90] sm:$0xff]  ;;  %v5596_v3 = vpack.c.bf16 %v1269_v0, %v1268_v63 }
 0x41c   :  { %1005 = vmatmul.mubr.f32.vlgmr.msra.gmra.mrb[8].mxu0 %v873_v6  ;;  %5585 = vmatprep.subr.bf16.mxu1 %v5584_v41  ;;  %v5588_v48 = vpack.c.bf16 %v1265_v46, %v1264_v45  ;;  %v1252_v4 = vld [vmem:[#allocation18 + $0x30] sm:$0xff]  ;;  %v1253_v5 = vld [vmem:[#allocation18 + $0x38] sm:$0xff]  ;;  %v1287_v6 = vld [vmem:[#allocation18 + $0x148] sm:$0xff] }
 0x41d   :  { %v868_v11 = vmax.f32 %v862_v8, 0.0  ;;  %5555 = vmatpush3.bf16.msra.mxu0 %v5552_v35  ;;  %v5598_v8 = vpack.c.bf16 %v1253_v5, %v1252_v4  ;;  %v1261_v39 = vld [vmem:[#allocation18 + $0x78] sm:$0xff]  ;;  %v1507_v41 = vld [vmem:[#allocation21 + $0x80] sm:$0xff] }
 0x41e   :  { %v878_v12 = vld [vmem:[#allocation3 + $0x27] sm:$0xff]  ;;  %5557 = vmatprep.subr.bf16.mxu0 %v5556_v7 }
 0x41f   :  { %v874_v13 = vld [vmem:[#allocation3 + $0x26] sm:$0xff]  ;;  %872 = vst [vmem:[#allocation3 + $0x58] sm:$0xff] %v868_v11  ;;  %1009 = vmatprep.mubr.f32.mxu0 %v878_v12  ;;  %4852 = vmatmul.mubr.f32.gmra.mrb[6].mxu1 %v868_v11  ;;  %v5636_v11 = vpack.c.bf16 %v1289_v10, %v1288_v9  ;;  %v3983_v9 = vld [vmem:[#allocation16] ss:$0 sm:$0xff] }
 0x420   :  { %1010 = vmatmul.mubr.f32.gmra.mrb[10].mxu0 %v874_v13  ;;  %v1270_v12 = vld [vmem:[#allocation18 + $0xc0] sm:$0xff]  ;;  %v1271_v13 = vld [vmem:[#allocation18 + $0xc8] sm:$0xff] }
 0x421   :  { %5559 = vmatpush3.bf16.msra.mxu0 %v5556_v7  ;;  %v5632_v7 = vpack.c.bf16 %v1287_v6, %v1286_v2  ;;  %v5600_v15 = vpack.c.bf16 %v1271_v13, %v1270_v12 }
 0x422   :  { %5561 = vmatprep.subr.bf16.mxu0 %v5560_v14  ;;  %v879_v17 = vld [vmem:[#allocation3 + $0x4f] sm:$0xff] }
 0x423   :  { %v875_v19 = vld [vmem:[#allocation3 + $0x4e] sm:$0xff]  ;;  %1014 = vmatprep.mubr.f32.mxu0 %v879_v17 }
 0x424   :  { %1015 = vmatmul.mubr.f32.gmra.mrb[12].mxu0 %v875_v19  ;;  %v1255_v17 = vld [vmem:[#allocation18 + $0x48] sm:$0xff] }
 0x425   :  { %5563 = vmatpush3.bf16.msra.mxu0 %v5560_v14  ;;  %v1290_v14 = vld [vmem:[#allocation18 + $0x160] sm:$0xff]  ;;  %v5602_v19 = vpack.c.bf16 %v1255_v17, %v1254_v16 }
 0x426   :  { %5565 = vmatprep.subr.bf16.mxu0 %v5564_v18  ;;  %v880_v22 = vld [vmem:[#allocation3 + $0x57] sm:$0xff] }
 0x427   :  { %v876_v24 = vld [vmem:[#allocation3 + $0x56] sm:$0xff]  ;;  %1019 = vmatprep.mubr.f32.mxu0 %v880_v22  ;;  %v1273_v22 = vld [vmem:[#allocation18 + $0xd8] sm:$0xff] }
 0x428   :  { %1020 = vmatmul.mubr.f32.gmra.mrb[14].mxu0 %v876_v24  ;;  %v5604_v24 = vpack.c.bf16 %v1273_v22, %v1272_v21 }
 0x429   :  { %5567 = vmatpush3.bf16.msra.mxu0 %v5564_v18  ;;  %4886 = vmatprep.mubr.f32.mxu0 %v7782_v49  ;;  %v1278_v49 = vld [vmem:[#allocation18 + $0x100] sm:$0xff]  ;;  %v1291_v18 = vld [vmem:[#allocation18 + $0x168] sm:$0xff] }
 0x42a   :  { %5569 = vmatprep.subr.bf16.mxu0 %v5568_v23  ;;  %v5616_v35 = vpack.c.bf16 %v1279_v34, %v1278_v49  ;;  %v5640_v20 = vpack.c.bf16 %v1291_v18, %v1290_v14  ;;  %v1259_v49 = vld [vmem:[#allocation18 + $0x68] sm:$0xff] }
 0x42d   :  { %5571 = vmatpush3.bf16.msra.mxu0 %v5568_v23  ;;  %v1292_v23 = vld [vmem:[#allocation18 + $0x170] sm:$0xff] }
 0x42e   :  { %5573 = vmatprep.subr.bf16.mxu0 %v5572_v27 }
 0x431   :  { %5575 = vmatpush3.bf16.msra.mxu0 %v5572_v27  ;;  %v1293_v27 = vld [vmem:[#allocation18 + $0x178] sm:$0xff] }
 0x432   :  { %5577 = vmatprep.subr.bf16.mxu0 %v5576_v30  ;;  %v5644_v29 = vpack.c.bf16 %v1293_v27, %v1292_v23 }
 0x435   :  { %5579 = vmatpush3.bf16.msra.mxu0 %v5576_v30  ;;  %v1274_v30 = vld [vmem:[#allocation18 + $0xe0] sm:$0xff] }
 0x436   :  { %5581 = vmatprep.subr.bf16.mxu0 %v5580_v33  ;;  %v5608_v32 = vpack.c.bf16 %v1275_v31, %v1274_v30  ;;  %v1527_v31 = vld [vmem:[#allocation21 + $0x120] sm:$0xff] }
 0x439   :  { %5583 = vmatpush3.bf16.msra.mxu0 %v5580_v33  ;;  %v1258_v33 = vld [vmem:[#allocation18 + $0x60] sm:$0xff] }
 0x43a   :  { %5617 = vmatprep.subr.bf16.mxu0 %v5616_v35  ;;  %v5610_v34 = vpack.c.bf16 %v1259_v49, %v1258_v33 }
 0x43c   :  { %4887 = vmatmul.mubr.f32.vlgmr.msra.gmra.mrb[16].mxu0 %v7786_v51  ;;  %v1282_v51 = vld [vmem:[#allocation18 + $0x120] sm:$0xff] }
 0x43d   :  { %4889 = vmatprep.mubr.f32.mxu0 %v7788_v52  ;;  %5619 = vmatpush3.bf16.msra.mxu0 %v5616_v35  ;;  %v5586_v52 = vpack.c.bf16 %v1247_v43, %v1246_v42  ;;  %v1276_v35 = vld [vmem:[#allocation18 + $0xf0] sm:$0xff] }
 0x43e   :  { %5621 = vmatprep.subr.bf16.mxu0 %v5620_v38  ;;  %v5612_v37 = vpack.c.bf16 %v1277_v36, %v1276_v35  ;;  %v1508_v42 = vld [vmem:[#allocation21 + $0x88] sm:$0xff] }
 0x43f   :  { %5587 = vmatpush3.bf16.msra.mxu1 %v5586_v52  ;;  %v5648_v43 = vpack.c.bf16 %v1508_v42, %v1507_v41  ;;  %v1524_v52 = vld [vmem:[#allocation21 + $0x108] sm:$0xff] }
 0x440   :  { %4890 = vmatmul.mubr.f32.gmra.mrb[18].mxu0 %v7792_v56  ;;  %v5624_v56 = vpack.c.bf16 %v1283_v44, %v1282_v51  ;;  %5589 = vmatprep.subr.bf16.mxu1 %v5588_v48  ;;  %v1523_v51 = vld [vmem:[#allocation21 + $0x100] sm:$0xff]  ;;  %v3982_v48 = vld [vmem:[#allocation13] ss:$0 sm:$0xff]  ;;  %v1492_v35 = vld [vmem:[#allocation21 + $0x8] sm:$0xff] }
 0x441   :  { %5623 = vmatpush3.bf16.msra.mxu0 %v5620_v38  ;;  %v1260_v38 = vld [vmem:[#allocation18 + $0x70] sm:$0xff]  ;;  %v5680_v44 = vpack.c.bf16 %v1524_v52, %v1523_v51  ;;  %v1494_v51 = vld [vmem:[#allocation21 + $0x18] sm:$0xff]  ;;  %v1511_v52 = vld [vmem:[#allocation21 + $0xa0] sm:$0xff] }
 0x442   :  { %5625 = vmatprep.subr.bf16.mxu0 %v5624_v56  ;;  %v5614_v40 = vpack.c.bf16 %v1261_v39, %v1260_v38  ;;  %v1510_v38 = vld [vmem:[#allocation21 + $0x98] sm:$0xff] }
 0x443   :  { %5591 = vmatpush3.bf16.msra.mxu1 %v5590_v55 }
 0x444   :  { %5593 = vmatprep.subr.bf16.mxu1 %v5592_v61 }
 0x445   :  { %5627 = vmatpush3.bf16.msra.mxu0 %v5624_v56 }
 0x446   :  { %5629 = vmatprep.subr.bf16.mxu0 %v5628_v60 }
 0x447   :  { %5595 = vmatpush3.bf16.msra.mxu1 %v5594_v1 }
 0x448   :  { %5597 = vmatprep.subr.bf16.mxu1 %v5596_v3 }
 0x449   :  { %5631 = vmatpush3.bf16.msra.mxu0 %v5628_v60 }
 0x44a   :  { %5633 = vmatprep.subr.bf16.mxu0 %v5632_v7 }
 0x44b   :  { %5599 = vmatpush3.bf16.msra.mxu1 %v5598_v8 }
 0x44c   :  { %5601 = vmatprep.subr.bf16.mxu1 %v5600_v15 }
 0x44d   :  { %5635 = vmatpush3.bf16.msra.mxu0 %v5632_v7 }
 0x44e   :  { %5637 = vmatprep.subr.bf16.mxu0 %v5636_v11 }
 0x44f   :  { %5603 = vmatpush3.bf16.msra.mxu1 %v5602_v19  ;;  %v1525_v19 = vld [vmem:[#allocation21 + $0x110] sm:$0xff] }
 0x450   :  { %5605 = vmatprep.subr.bf16.mxu1 %v5604_v24 }
 0x451   :  { %5639 = vmatpush3.bf16.msra.mxu0 %v5636_v11 }
 0x452   :  { %5641 = vmatprep.subr.bf16.mxu0 %v5640_v20 }
 0x453   :  { %5607 = vmatpush3.bf16.msra.mxu1 %v5606_v28 }
 0x454   :  { %5609 = vmatprep.subr.bf16.mxu1 %v5608_v32  ;;  %v1528_v32 = vld [vmem:[#allocation21 + $0x128] sm:$0xff] }
 0x455   :  { %5643 = vmatpush3.bf16.msra.mxu0 %v5640_v20  ;;  %v1526_v20 = vld [vmem:[#allocation21 + $0x118] sm:$0xff]  ;;  %v5688_v36 = vpack.c.bf16 %v1528_v32, %v1527_v31 }
 0x456   :  { %5645 = vmatprep.subr.bf16.mxu0 %v5644_v29 }
 0x457   :  { %5611 = vmatpush3.bf16.msra.mxu1 %v5610_v34  ;;  %v1491_v34 = vld [vmem:[#allocation21] sm:$0xff] }
 0x458   :  { %5613 = vmatprep.subr.bf16.mxu1 %v5612_v37  ;;  %v1509_v37 = vld [vmem:[#allocation21 + $0x90] sm:$0xff]  ;;  %v5650_v39 = vpack.c.bf16 %v1492_v35, %v1491_v34  ;;  %v1503_v34 = vld [vmem:[#allocation21 + $0x60] sm:$0xff]  ;;  %v1504_v35 = vld [vmem:[#allocation21 + $0x68] sm:$0xff] }
 0x459   :  { %5647 = vmatpush3.bf16.msra.mxu0 %v5644_v29  ;;  %v5684_v29 = vpack.c.bf16 %v1526_v20, %v1525_v19  ;;  %v1518_v19 = vld [vmem:[#allocation21 + $0xd8] sm:$0xff] }
 0x45a   :  { %5681 = vmatprep.subr.bf16.mxu0 %v5680_v44 }
 0x45b   :  { %5615 = vmatpush3.bf16.msra.mxu1 %v5614_v40  ;;  %v1493_v40 = vld [vmem:[#allocation21 + $0x10] sm:$0xff] }
 0x45c   :  { %5649 = vmatprep.subr.bf16.mxu1 %v5648_v43  ;;  %v5652_v43 = vpack.c.bf16 %v1510_v38, %v1509_v37  ;;  %v1521_v37 = vld [vmem:[#allocation21 + $0xf0] sm:$0xff]  ;;  %v1522_v38 = vld [vmem:[#allocation21 + $0xf8] sm:$0xff] }
 0x4ea   :  { %v4850_v56 = vpop.f32.mrb[4].mxu1 }
 0x4eb   :  { %v1091_v45 = vpop.f32.mrb[5].mxu1 }
 0x4ef   :  { %v4094_v46 = vpop.f32.mrb[8].mxu0 }
 0x4f0   :  { %v4095_v47 = vpop.f32.mrb[9].mxu0 }
 0x4f1   :  { %v4096_v50 = vadd.f32 %v4095_v47, %v4094_v46  ;;  %v1495_v47 = vld [vmem:[#allocation21 + $0x20] sm:$0xff] }
 0x4f2   :  { %v4853_v53 = vpop.f32.mrb[6].mxu1 }
 0x4f3   :  { %v4097_v54 = vpop.f32.mrb[10].mxu0  ;;  %v1007_v55 = vadd.f32 %v4096_v50, %v3982_v48  ;;  %v1101_v57 = vpop.f32.mrb[7].mxu1 }
 0x4f4   :  { %v4098_v58 = vpop.f32.mrb[11].mxu0 }
 0x4f5   :  { %v1092_v59 = vadd.f32 %v1091_v45, %v1007_v55  ;;  %v4099_v60 = vadd.f32 %v4098_v58, %v4097_v54  ;;  %v5654_v45 = vpack.c.bf16 %v1494_v51, %v1493_v40  ;;  %v1514_v54 = vld [vmem:[#allocation21 + $0xb8] sm:$0xff]  ;;  %v1505_v40 = vld [vmem:[#allocation21 + $0x70] sm:$0xff] }
 0x4f6   :  { %v1761_v51 = vld [vmem:[#allocation24 + $0x88] sm:$0xff] }
 0x4f7   :  { %v1012_v61 = vadd.f32 %v4099_v60, %v3982_v48  ;;  %v4100_v62 = vpop.f32.mrb[12].mxu0  ;;  %v1110_v14 = vmax.f32 %v1092_v59, 0.0 }
 0x4f8   :  { %v4101_v63 = vpop.f32.mrb[13].mxu0 }
 0x4f9   :  { %v1097_v0 = vadd.f32 %v4850_v56, %v1012_v61  ;;  %v4102_v1 = vadd.f32 %v4101_v63, %v4100_v62  ;;  %v1529_v62 = vld [vmem:[#allocation21 + $0x130] sm:$0xff]  ;;  %v1530_v63 = vld [vmem:[#allocation21 + $0x138] sm:$0xff] }
 0x4fb   :  { %v4103_v2 = vpop.f32.mrb[14].mxu0  ;;  %v1017_v3 = vadd.f32 %v4102_v1, %v3982_v48  ;;  %v1111_v11 = vmax.f32 %v1097_v0, 0.0  ;;  %v5692_v0 = vpack.c.bf16 %v1530_v63, %v1529_v62  ;;  %v1531_v1 = vld [vmem:[#allocation21 + $0x140] sm:$0xff] }
 0x4fc   :  { %v4104_v4 = vpop.f32.mrb[15].mxu0 }
 0x4fd   :  { %v4105_v5 = vadd.f32 %v4104_v4, %v4103_v2  ;;  %v1102_v6 = vadd.f32 %v1101_v57, %v1017_v3  ;;  %v1532_v2 = vld [vmem:[#allocation21 + $0x148] sm:$0xff]  ;;  %v1497_v4 = vld [vmem:[#allocation21 + $0x30] sm:$0xff] }
 0x4fe   :  { %v5696_v3 = vpack.c.bf16 %v1532_v2, %v1531_v1 }
 0x4ff   :  { %v1022_v7 = vadd.f32 %v4105_v5, %v3982_v48  ;;  %v1112_v25 = vmax.f32 %v1102_v6, 0.0  ;;  %v1496_v48 = vld [vmem:[#allocation21 + $0x28] sm:$0xff]  ;;  %v1498_v5 = vld [vmem:[#allocation21 + $0x38] sm:$0xff] }
 0x500   :  { %v5658_v57 = vpack.c.bf16 %v1496_v48, %v1495_v47  ;;  %v5662_v6 = vpack.c.bf16 %v1498_v5, %v1497_v4  ;;  %v1779_v4 = vld [vmem:[#allocation24 + $0x118] sm:$0xff] }
 0x501   :  { %v1107_v8 = vadd.f32 %v4853_v53, %v1022_v7  ;;  %v1513_v53 = vld [vmem:[#allocation21 + $0xb0] sm:$0xff] }
 0x502   :  { %v5660_v58 = vpack.c.bf16 %v1514_v54, %v1513_v53  ;;  %v1533_v7 = vld [vmem:[#allocation21 + $0x150] sm:$0xff] }
 0x503   :  { %v1113_v21 = vmax.f32 %v1107_v8, 0.0  ;;  %v1534_v8 = vld [vmem:[#allocation21 + $0x158] sm:$0xff] }
 0x50f   :  { %v4888_v10 = vpop.f32.mrb[16].mxu0 }
 0x510   :  { %v1209_v12 = vadd.f32 %v4888_v10, %v3983_v9  ;;  %v1203_v13 = vpop.f32.mrb[17].mxu0  ;;  %v1516_v10 = vld [vmem:[#allocation21 + $0xc8] sm:$0xff] }
 0x511   :  { %v1204_v15 = vadd.f32 %v3983_v9, %v1203_v13  ;;  %v1499_v13 = vld [vmem:[#allocation21 + $0x40] sm:$0xff] }
 0x512   :  { %v1223_v16 = vadd.f32 %v1209_v12, %v1111_v11  ;;  %v5700_v11 = vpack.c.bf16 %v1534_v8, %v1533_v7 }
 0x513   :  { %v1222_v17 = vadd.f32 %v1204_v15, %v1110_v14  ;;  %v4891_v18 = vpop.f32.mrb[18].mxu0  ;;  %v1500_v14 = vld [vmem:[#allocation21 + $0x48] sm:$0xff] }
 0x514   :  { %v7802_v22 = vmax.f32 %v1223_v16, 0.0  ;;  %v1219_v23 = vadd.f32 %v4891_v18, %v3983_v9  ;;  %v1213_v24 = vpop.f32.mrb[19].mxu0  ;;  %v5666_v15 = vpack.c.bf16 %v1500_v14, %v1499_v13  ;;  %v1535_v16 = vld [vmem:[#allocation21 + $0x160] sm:$0xff]  ;;  %v1517_v18 = vld [vmem:[#allocation21 + $0xd0] sm:$0xff] }
 0x515   :  { %v7804_v26 = vmax.f32 %v1222_v17, 0.0  ;;  %v1214_v27 = vadd.f32 %v3983_v9, %v1213_v24  ;;  %v1515_v9 = vld [vmem:[#allocation21 + $0xc0] sm:$0xff]  ;;  %v1536_v17 = vld [vmem:[#allocation21 + $0x168] sm:$0xff]  ;;  %v1502_v24 = vld [vmem:[#allocation21 + $0x58] sm:$0xff] }
 0x516   :  { %1231 = vst [vmem:[#allocation2 + $0x28] sm:$0xff] %v7802_v22  ;;  %v1225_v28 = vadd.f32 %v1219_v23, %v1113_v21  ;;  %v5664_v12 = vpack.c.bf16 %v1516_v10, %v1515_v9  ;;  %v5704_v20 = vpack.c.bf16 %v1536_v17, %v1535_v16  ;;  %v5668_v21 = vpack.c.bf16 %v1518_v19, %v1517_v18  ;;  %v1501_v23 = vld [vmem:[#allocation21 + $0x50] sm:$0xff]  ;;  %v1763_v17 = vld [vmem:[#allocation24 + $0x98] sm:$0xff] }
 0x517   :  { %1230 = vst [vmem:[#allocation2 + $0x20] sm:$0xff] %v7804_v26  ;;  %v1224_v30 = vadd.f32 %v1214_v27, %v1112_v25  ;;  %4924 = vmatprep.mubr.f32.mxu0 %v7804_v26  ;;  %v5670_v25 = vpack.c.bf16 %v1502_v24, %v1501_v23  ;;  %v1537_v27 = vld [vmem:[#allocation21 + $0x170] sm:$0xff] }
 0x518   :  { %v7809_v33 = vmax.f32 %v1225_v28, 0.0  ;;  %4925 = vmatmul.mubr.f32.vlgmr.msra.gmra.mrb[20].mxu0 %v7802_v22  ;;  %v1538_v28 = vld [vmem:[#allocation21 + $0x178] sm:$0xff]  ;;  %v1745_v13 = vld [vmem:[#allocation24 + $0x8] sm:$0xff] }
 0x519   :  { %v7812_v49 = vmax.f32 %v1224_v30, 0.0  ;;  %5683 = vmatpush3.bf16.msra.mxu0 %v5680_v44  ;;  %v1512_v44 = vld [vmem:[#allocation21 + $0xa8] sm:$0xff]  ;;  %v5708_v31 = vpack.c.bf16 %v1538_v28, %v1537_v27  ;;  %v1762_v16 = vld [vmem:[#allocation24 + $0x90] sm:$0xff]  ;;  %v1747_v27 = vld [vmem:[#allocation24 + $0x18] sm:$0xff] }
 0x51a   :  { %1233 = vst [vmem:[#allocation2 + $0x58] sm:$0xff] %v7809_v33  ;;  %5685 = vmatprep.subr.bf16.mxu0 %v5684_v29  ;;  %v5656_v46 = vpack.c.bf16 %v1512_v44, %v1511_v52  ;;  %v1520_v30 = vld [vmem:[#allocation21 + $0xe8] sm:$0xff] }
 0x51b   :  { %1232 = vst [vmem:[#allocation2 + $0x50] sm:$0xff] %v7812_v49  ;;  %4927 = vmatprep.mubr.f32.mxu0 %v7812_v49  ;;  %v1776_v44 = vld [vmem:[#allocation24 + $0x100] sm:$0xff] }
 0x51c   :  { %4928 = vmatmul.mubr.f32.gmra.mrb[22].mxu0 %v7809_v33 }
 0x51d   :  { %5687 = vmatpush3.bf16.msra.mxu0 %v5684_v29  ;;  %v1519_v29 = vld [vmem:[#allocation21 + $0xe0] sm:$0xff] }
 0x51e   :  { %v1242_v41 = vld [vmem:[#allocation2 + $0x1e] sm:$0xff]  ;;  %5689 = vmatprep.subr.bf16.mxu0 %v5688_v36  ;;  %v1243_v56 = vld [vmem:[#allocation2 + $0x26] sm:$0xff]  ;;  %v5672_v32 = vpack.c.bf16 %v1520_v30, %v1519_v29  ;;  %v1765_v30 = vld [vmem:[#allocation24 + $0xa8] sm:$0xff] }
 0x51f   :  { %v1238_v42 = vld [vmem:[#allocation2 + $0x1c] sm:$0xff]  ;;  %1365 = vmatprep.mubr.f32.mxu1 %v1242_v41  ;;  %v1239_v50 = vld [vmem:[#allocation2 + $0x24] sm:$0xff] }
 0x520   :  { %1366 = vmatmul.mubr.f32.vlgmr.msra.gmra.mrb[8].mxu1 %v1238_v42  ;;  %v1506_v41 = vld [vmem:[#allocation21 + $0x78] sm:$0xff]  ;;  %v1764_v29 = vld [vmem:[#allocation24 + $0xa0] sm:$0xff] }
 0x521   :  { %1370 = vmatprep.mubr.f32.mxu1 %v1243_v56  ;;  %5651 = vmatpush3.bf16.msra.mxu1 %v5650_v39  ;;  %v5676_v39 = vpack.c.bf16 %v1522_v38, %v1521_v37  ;;  %v5678_v42 = vpack.c.bf16 %v1506_v41, %v1505_v40  ;;  %v1777_v56 = vld [vmem:[#allocation24 + $0x108] sm:$0xff]  ;;  %v1780_v41 = vld [vmem:[#allocation24 + $0x120] sm:$0xff] }
 0x522   :  { %5653 = vmatprep.subr.bf16.mxu1 %v5652_v43  ;;  %5691 = vmatpush3.bf16.msra.mxu0 %v5688_v36  ;;  %v1244_v55 = vld [vmem:[#allocation2 + $0x4e] sm:$0xff]  ;;  %v1245_v60 = vld [vmem:[#allocation2 + $0x56] sm:$0xff]  ;;  %v5674_v36 = vpack.c.bf16 %v1504_v35, %v1503_v34 }
 0x523   :  { %v1240_v59 = vld [vmem:[#allocation2 + $0x4c] sm:$0xff]  ;;  %v1241_v61 = vld [vmem:[#allocation2 + $0x54] sm:$0xff]  ;;  %5693 = vmatprep.subr.bf16.mxu0 %v5692_v0 }
 0x524   :  { %1371 = vmatmul.mubr.f32.gmra.mrb[10].mxu1 %v1239_v50  ;;  %v1760_v43 = vld [vmem:[#allocation24 + $0x80] sm:$0xff] }
 0x525   :  { %1375 = vmatprep.mubr.f32.mxu1 %v1244_v55  ;;  %5655 = vmatpush3.bf16.msra.mxu1 %v5654_v45  ;;  %v5712_v52 = vpack.c.bf16 %v1761_v51, %v1760_v43  ;;  %v5744_v45 = vpack.c.bf16 %v1777_v56, %v1776_v44  ;;  %v3984_v55 = vld [vmem:[#allocation19] ss:$0 sm:$0xff]  ;;  %v1782_v51 = vld [vmem:[#allocation24 + $0x130] sm:$0xff]  ;;  %v1748_v56 = vld [vmem:[#allocation24 + $0x20] sm:$0xff] }
 0x526   :  { %5657 = vmatprep.subr.bf16.mxu1 %v5656_v46  ;;  %5695 = vmatpush3.bf16.msra.mxu0 %v5692_v0 }
 0x527   :  { %5697 = vmatprep.subr.bf16.mxu0 %v5696_v3 }
 0x528   :  { %1376 = vmatmul.mubr.f32.gmra.mrb[12].mxu1 %v1240_v59 }
 0x529   :  { %1380 = vmatprep.mubr.f32.mxu1 %v1245_v60  ;;  %5659 = vmatpush3.bf16.msra.mxu1 %v5658_v57 }
 0x52a   :  { %5661 = vmatprep.subr.bf16.mxu1 %v5660_v58  ;;  %5699 = vmatpush3.bf16.msra.mxu0 %v5696_v3  ;;  %v1778_v3 = vld [vmem:[#allocation24 + $0x110] sm:$0xff] }
 0x52b   :  { %5701 = vmatprep.subr.bf16.mxu0 %v5700_v11  ;;  %v5748_v10 = vpack.c.bf16 %v1779_v4, %v1778_v3  ;;  %v1753_v3 = vld [vmem:[#allocation24 + $0x48] sm:$0xff] }
 0x52c   :  { %1381 = vmatmul.mubr.f32.gmra.mrb[14].mxu1 %v1241_v61 }
 0x52d   :  { %5663 = vmatpush3.bf16.msra.mxu1 %v5662_v6 }
 0x52e   :  { %5665 = vmatprep.subr.bf16.mxu1 %v5664_v12  ;;  %5703 = vmatpush3.bf16.msra.mxu0 %v5700_v11  ;;  %v1744_v12 = vld [vmem:[#allocation24] sm:$0xff] }
 0x52f   :  { %5705 = vmatprep.subr.bf16.mxu0 %v5704_v20 }
 0x531   :  { %5667 = vmatpush3.bf16.msra.mxu1 %v5666_v15 }
 0x532   :  { %5669 = vmatprep.subr.bf16.mxu1 %v5668_v21  ;;  %5707 = vmatpush3.bf16.msra.mxu0 %v5704_v20  ;;  %v5714_v20 = vpack.c.bf16 %v1745_v13, %v1744_v12  ;;  %v1746_v21 = vld [vmem:[#allocation24 + $0x10] sm:$0xff]  ;;  %v1755_v12 = vld [vmem:[#allocation24 + $0x58] sm:$0xff] }
 0x533   :  { %5709 = vmatprep.subr.bf16.mxu0 %v5708_v31 }
 0x535   :  { %5671 = vmatpush3.bf16.msra.mxu1 %v5670_v25  ;;  %v5716_v25 = vpack.c.bf16 %v1763_v17, %v1762_v16  ;;  %v1772_v16 = vld [vmem:[#allocation24 + $0xe0] sm:$0xff]  ;;  %v1773_v17 = vld [vmem:[#allocation24 + $0xe8] sm:$0xff] }
 0x536   :  { %5673 = vmatprep.subr.bf16.mxu1 %v5672_v32  ;;  %5711 = vmatpush3.bf16.msra.mxu0 %v5708_v31  ;;  %v5718_v32 = vpack.c.bf16 %v1747_v27, %v1746_v21  ;;  %v1757_v21 = vld [vmem:[#allocation24 + $0x68] sm:$0xff] }
 0x537   :  { %5745 = vmatprep.subr.bf16.mxu0 %v5744_v45 }
 0x539   :  { %5675 = vmatpush3.bf16.msra.mxu1 %v5674_v36  ;;  %v5720_v36 = vpack.c.bf16 %v1765_v30, %v1764_v29  ;;  %v1759_v29 = vld [vmem:[#allocation24 + $0x78] sm:$0xff] }
 0x53a   :  { %5677 = vmatprep.subr.bf16.mxu1 %v5676_v39 }
 0x53d   :  { %5679 = vmatpush3.bf16.msra.mxu1 %v5678_v42  ;;  %v1781_v42 = vld [vmem:[#allocation24 + $0x128] sm:$0xff] }
 0x53e   :  { %5713 = vmatprep.subr.bf16.mxu1 %v5712_v52  ;;  %v5752_v43 = vpack.c.bf16 %v1781_v42, %v1780_v41  ;;  %v1783_v52 = vld [vmem:[#allocation24 + $0x138] sm:$0xff] }
 0x53f   :  { %v5756_v44 = vpack.c.bf16 %v1783_v52, %v1782_v51  ;;  %v3985_v42 = vld [vmem:[#allocation22] ss:$0 sm:$0xff] }
 0x5eb   :  { %v4926_v46 = vpop.f32.mrb[20].mxu0 }
 0x5ec   :  { %v1452_v47 = vpop.f32.mrb[21].mxu0 }
 0x5ef   :  { %v4929_v48 = vpop.f32.mrb[22].mxu0 }
 0x5f0   :  { %v1462_v50 = vpop.f32.mrb[23].mxu0 }
 0x5f3   :  { %v4178_v53 = vpop.f32.mrb[8].mxu1 }
 0x5f4   :  { %v4179_v54 = vpop.f32.mrb[9].mxu1 }
 0x5f5   :  { %v4180_v57 = vadd.f32 %v4179_v54, %v4178_v53  ;;  %v1767_v53 = vld [vmem:[#allocation24 + $0xb8] sm:$0xff] }
 0x5f7   :  { %v1368_v58 = vadd.f32 %v4180_v57, %v3984_v55  ;;  %v4181_v59 = vpop.f32.mrb[10].mxu1  ;;  %v1750_v57 = vld [vmem:[#allocation24 + $0x30] sm:$0xff] }
 0x5f8   :  { %v4182_v60 = vpop.f32.mrb[11].mxu1 }
 0x5f9   :  { %v1453_v61 = vadd.f32 %v1452_v47, %v1368_v58  ;;  %v4183_v62 = vadd.f32 %v4182_v60, %v4181_v59  ;;  %v1784_v47 = vld [vmem:[#allocation24 + $0x140] sm:$0xff]  ;;  %v1751_v58 = vld [vmem:[#allocation24 + $0x38] sm:$0xff]  ;;  %v1786_v60 = vld [vmem:[#allocation24 + $0x150] sm:$0xff] }
 0x5fa   :  { %v5726_v59 = vpack.c.bf16 %v1751_v58, %v1750_v57 }
 0x5fb   :  { %v1471_v63 = vmax.f32 %v1453_v61, 0.0  ;;  %v1373_v0 = vadd.f32 %v4183_v62, %v3984_v55  ;;  %v4184_v1 = vpop.f32.mrb[12].mxu1  ;;  %v1787_v61 = vld [vmem:[#allocation24 + $0x158] sm:$0xff]  ;;  %v1768_v62 = vld [vmem:[#allocation24 + $0xc0] sm:$0xff] }
 0x5fc   :  { %v4185_v2 = vpop.f32.mrb[13].mxu1 }
 0x5fd   :  { %1475 = vst [vmem:[#allocation3 + $0x20] sm:$0xff] %v1471_v63  ;;  %v1458_v5 = vadd.f32 %v4926_v46, %v1373_v0  ;;  %v4186_v6 = vadd.f32 %v4185_v2, %v4184_v1  ;;  %4962 = vmatprep.mubr.f32.mxu0 %v1471_v63  ;;  %v1769_v63 = vld [vmem:[#allocation24 + $0xc8] sm:$0xff]  ;;  %v5764_v0 = vpack.c.bf16 %v1787_v61, %v1786_v60  ;;  %v1752_v2 = vld [vmem:[#allocation24 + $0x40] sm:$0xff] }
 0x5fe   :  { %v5728_v1 = vpack.c.bf16 %v1769_v63, %v1768_v62  ;;  %v5730_v4 = vpack.c.bf16 %v1753_v3, %v1752_v2 }
 0x5ff   :  { %v1472_v7 = vmax.f32 %v1458_v5, 0.0  ;;  %v1378_v8 = vadd.f32 %v4186_v6, %v3984_v55  ;;  %v4187_v9 = vpop.f32.mrb[14].mxu1  ;;  %v1788_v5 = vld [vmem:[#allocation24 + $0x160] sm:$0xff]  ;;  %v1789_v6 = vld [vmem:[#allocation24 + $0x168] sm:$0xff] }
 0x600   :  { %v4188_v11 = vpop.f32.mrb[15].mxu1 }
 0x601   :  { %1476 = vst [vmem:[#allocation3 + $0x28] sm:$0xff] %v1472_v7  ;;  %v1463_v14 = vadd.f32 %v1462_v50, %v1378_v8  ;;  %v4189_v15 = vadd.f32 %v4188_v11, %v4187_v9  ;;  %4963 = vmatmul.mubr.f32.vlgmr.msra.gmra.mrb[24].mxu0 %v1472_v7  ;;  %v1766_v50 = vld [vmem:[#allocation24 + $0xb0] sm:$0xff]  ;;  %v1771_v8 = vld [vmem:[#allocation24 + $0xd8] sm:$0xff]  ;;  %v5768_v9 = vpack.c.bf16 %v1789_v6, %v1788_v5 }
 0x602   :  { %5747 = vmatpush3.bf16.msra.mxu0 %v5744_v45  ;;  %v1749_v45 = vld [vmem:[#allocation24 + $0x28] sm:$0xff]  ;;  %v1770_v7 = vld [vmem:[#allocation24 + $0xd0] sm:$0xff] }
 0x603   :  { %v1473_v18 = vmax.f32 %v1463_v14, 0.0  ;;  %v1383_v19 = vadd.f32 %v4189_v15, %v3984_v55  ;;  %5749 = vmatprep.subr.bf16.mxu0 %v5748_v10  ;;  %v5722_v46 = vpack.c.bf16 %v1749_v45, %v1748_v56  ;;  %v5724_v55 = vpack.c.bf16 %v1767_v53, %v1766_v50  ;;  %v1754_v11 = vld [vmem:[#allocation24 + $0x50] sm:$0xff]  ;;  %v1791_v15 = vld [vmem:[#allocation24 + $0x178] sm:$0xff] }
 0x604   :  { %v1483_v23 = vld [vmem:[#allocation3 + $0x1e] sm:$0xff]  ;;  %v5734_v13 = vpack.c.bf16 %v1755_v12, %v1754_v11  ;;  %v2026_v11 = vld [vmem:[#allocation27 + $0x128] sm:$0xff] }
 0x605   :  { %v1479_v24 = vld [vmem:[#allocation3 + $0x1c] sm:$0xff]  ;;  %1477 = vst [vmem:[#allocation3 + $0x50] sm:$0xff] %v1473_v18  ;;  %v1468_v28 = vadd.f32 %v4929_v48, %v1383_v19  ;;  %1610 = vmatprep.mubr.f32.mxu1 %v1483_v23  ;;  %4965 = vmatprep.mubr.f32.mxu0 %v1473_v18  ;;  %v1785_v48 = vld [vmem:[#allocation24 + $0x148] sm:$0xff]  ;;  %v5736_v19 = vpack.c.bf16 %v1773_v17, %v1772_v16 }
 0x606   :  { %1611 = vmatmul.mubr.f32.vlgmr.msra.gmra.mrb[16].mxu1 %v1479_v24  ;;  %5751 = vmatpush3.bf16.msra.mxu0 %v5748_v10  ;;  %v5760_v54 = vpack.c.bf16 %v1785_v48, %v1784_v47  ;;  %v5732_v10 = vpack.c.bf16 %v1771_v8, %v1770_v7  ;;  %v1790_v14 = vld [vmem:[#allocation24 + $0x170] sm:$0xff]  ;;  %v1989_v7 = vld [vmem:[#allocation27] sm:$0xff] }
 0x607   :  { %v1474_v31 = vmax.f32 %v1468_v28, 0.0  ;;  %5715 = vmatpush3.bf16.msra.mxu1 %v5714_v20  ;;  %5753 = vmatprep.subr.bf16.mxu0 %v5752_v43  ;;  %v5772_v18 = vpack.c.bf16 %v1791_v15, %v1790_v14  ;;  %v1756_v20 = vld [vmem:[#allocation24 + $0x60] sm:$0xff]  ;;  %v1774_v24 = vld [vmem:[#allocation24 + $0xf0] sm:$0xff] }
 0x608   :  { %v1484_v34 = vld [vmem:[#allocation3 + $0x26] sm:$0xff]  ;;  %5717 = vmatprep.subr.bf16.mxu1 %v5716_v25  ;;  %v5738_v23 = vpack.c.bf16 %v1757_v21, %v1756_v20  ;;  %v1758_v28 = vld [vmem:[#allocation24 + $0x70] sm:$0xff] }
 0x609   :  { %v1480_v35 = vld [vmem:[#allocation3 + $0x24] sm:$0xff]  ;;  %1478 = vst [vmem:[#allocation3 + $0x58] sm:$0xff] %v1474_v31  ;;  %1615 = vmatprep.mubr.f32.mxu1 %v1484_v34  ;;  %4966 = vmatmul.mubr.f32.gmra.mrb[26].mxu0 %v1474_v31  ;;  %v5742_v30 = vpack.c.bf16 %v1759_v29, %v1758_v28  ;;  %v2005_v31 = vld [vmem:[#allocation27 + $0x80] sm:$0xff]  ;;  %v1991_v21 = vld [vmem:[#allocation27 + $0x10] sm:$0xff] }
 0x60a   :  { %1616 = vmatmul.mubr.f32.gmra.mrb[18].mxu1 %v1480_v35  ;;  %5755 = vmatpush3.bf16.msra.mxu0 %v5752_v43  ;;  %v1775_v25 = vld [vmem:[#allocation24 + $0xf8] sm:$0xff]  ;;  %v2021_v35 = vld [vmem:[#allocation27 + $0x100] sm:$0xff] }
 0x60b   :  { %5719 = vmatpush3.bf16.msra.mxu1 %v5718_v32  ;;  %5757 = vmatprep.subr.bf16.mxu0 %v5756_v44  ;;  %v5740_v27 = vpack.c.bf16 %v1775_v25, %v1774_v24  ;;  %v2006_v32 = vld [vmem:[#allocation27 + $0x88] sm:$0xff]  ;;  %v2008_v14 = vld [vmem:[#allocation27 + $0x98] sm:$0xff]  ;;  %v2009_v24 = vld [vmem:[#allocation27 + $0xa0] sm:$0xff] }
 0x60c   :  { %v1485_v37 = vld [vmem:[#allocation3 + $0x4e] sm:$0xff]  ;;  %5721 = vmatprep.subr.bf16.mxu1 %v5720_v36  ;;  %v5776_v34 = vpack.c.bf16 %v2006_v32, %v2005_v31 }
 0x60d   :  { %v1481_v38 = vld [vmem:[#allocation3 + $0x4c] sm:$0xff]  ;;  %1620 = vmatprep.mubr.f32.mxu1 %v1485_v37  ;;  %v2022_v36 = vld [vmem:[#allocation27 + $0x108] sm:$0xff] }
 0x60e   :  { %1621 = vmatmul.mubr.f32.gmra.mrb[20].mxu1 %v1481_v38  ;;  %5759 = vmatpush3.bf16.msra.mxu0 %v5756_v44  ;;  %v5808_v37 = vpack.c.bf16 %v2022_v36, %v2021_v35  ;;  %v2010_v25 = vld [vmem:[#allocation27 + $0xa8] sm:$0xff]  ;;  %v1993_v32 = vld [vmem:[#allocation27 + $0x20] sm:$0xff]  ;;  %v2012_v35 = vld [vmem:[#allocation27 + $0xb8] sm:$0xff] }
 0x60f   :  { %5723 = vmatpush3.bf16.msra.mxu1 %v5722_v46  ;;  %5761 = vmatprep.subr.bf16.mxu0 %v5760_v54  ;;  %v5784_v31 = vpack.c.bf16 %v2010_v25, %v2009_v24 }
 0x610   :  { %v1486_v39 = vld [vmem:[#allocation3 + $0x56] sm:$0xff]  ;;  %5725 = vmatprep.subr.bf16.mxu1 %v5724_v55 }
 0x611   :  { %v1482_v40 = vld [vmem:[#allocation3 + $0x54] sm:$0xff]  ;;  %1625 = vmatprep.mubr.f32.mxu1 %v1486_v39 }
 0x612   :  { %1626 = vmatmul.mubr.f32.gmra.mrb[22].mxu1 %v1482_v40  ;;  %5763 = vmatpush3.bf16.msra.mxu0 %v5760_v54 }
 0x613   :  { %5727 = vmatpush3.bf16.msra.mxu1 %v5726_v59  ;;  %5765 = vmatprep.subr.bf16.mxu0 %v5764_v0 }
 0x614   :  { %5729 = vmatprep.subr.bf16.mxu1 %v5728_v1  ;;  %v2024_v1 = vld [vmem:[#allocation27 + $0x118] sm:$0xff] }
 0x616   :  { %5767 = vmatpush3.bf16.msra.mxu0 %v5764_v0  ;;  %v2023_v0 = vld [vmem:[#allocation27 + $0x110] sm:$0xff] }
 0x617   :  { %5731 = vmatpush3.bf16.msra.mxu1 %v5730_v4  ;;  %5769 = vmatprep.subr.bf16.mxu0 %v5768_v9  ;;  %v5812_v8 = vpack.c.bf16 %v2024_v1, %v2023_v0  ;;  %v2000_v0 = vld [vmem:[#allocation27 + $0x58] sm:$0xff]  ;;  %v2033_v1 = vld [vmem:[#allocation27 + $0x160] sm:$0xff] }
 0x618   :  { %5733 = vmatprep.subr.bf16.mxu1 %v5732_v10  ;;  %v2025_v10 = vld [vmem:[#allocation27 + $0x120] sm:$0xff] }
 0x61a   :  { %5771 = vmatpush3.bf16.msra.mxu0 %v5768_v9  ;;  %v1990_v9 = vld [vmem:[#allocation27 + $0x8] sm:$0xff] }
 0x61b   :  { %5735 = vmatpush3.bf16.msra.mxu1 %v5734_v13  ;;  %5773 = vmatprep.subr.bf16.mxu0 %v5772_v18  ;;  %v5778_v17 = vpack.c.bf16 %v1990_v9, %v1989_v7  ;;  %v2035_v7 = vld [vmem:[#allocation27 + $0x170] sm:$0xff]  ;;  %v2001_v9 = vld [vmem:[#allocation27 + $0x60] sm:$0xff] }
 0x61c   :  { %5737 = vmatprep.subr.bf16.mxu1 %v5736_v19 }
 0x61e   :  { %5775 = vmatpush3.bf16.msra.mxu0 %v5772_v18  ;;  %v5816_v18 = vpack.c.bf16 %v2026_v11, %v2025_v10  ;;  %v2002_v10 = vld [vmem:[#allocation27 + $0x68] sm:$0xff]  ;;  %v2036_v11 = vld [vmem:[#allocation27 + $0x178] sm:$0xff] }
 0x61f   :  { %5739 = vmatpush3.bf16.msra.mxu1 %v5738_v23  ;;  %5809 = vmatprep.subr.bf16.mxu0 %v5808_v37  ;;  %v1992_v23 = vld [vmem:[#allocation27 + $0x18] sm:$0xff] }
 0x620   :  { %5741 = vmatprep.subr.bf16.mxu1 %v5740_v27  ;;  %v7834_v27 = vld [vmem:[#allocation2 + $0x18] sm:$0xff]  ;;  %v5782_v29 = vpack.c.bf16 %v1992_v23, %v1991_v21 }
 0x621   :  { %v2219_v21 = vld [vmem:[#allocation30 + $0x8] sm:$0xff] }
 0x623   :  { %5743 = vmatpush3.bf16.msra.mxu1 %v5742_v30 }
 0x624   :  { %5777 = vmatprep.subr.bf16.mxu1 %v5776_v34  ;;  %v2011_v34 = vld [vmem:[#allocation27 + $0xb0] sm:$0xff] }
 0x6d4   :  { %v4964_v38 = vpop.f32.mrb[24].mxu0 }
 0x6d5   :  { %v1697_v39 = vpop.f32.mrb[25].mxu0 }
 0x6d9   :  { %v4242_v40 = vpop.f32.mrb[16].mxu1 }
 0x6da   :  { %v4243_v41 = vpop.f32.mrb[17].mxu1 }
 0x6db   :  { %v4244_v43 = vadd.f32 %v4243_v41, %v4242_v40  ;;  %v1996_v40 = vld [vmem:[#allocation27 + $0x38] sm:$0xff] }
 0x6dc   :  { %v4967_v51 = vpop.f32.mrb[26].mxu0 }
 0x6dd   :  { %v4245_v52 = vpop.f32.mrb[18].mxu1  ;;  %v1613_v44 = vadd.f32 %v4244_v43, %v3985_v42  ;;  %v1707_v56 = vpop.f32.mrb[27].mxu0  ;;  %v2027_v43 = vld [vmem:[#allocation27 + $0x130] sm:$0xff] }
 0x6de   :  { %v4246_v45 = vpop.f32.mrb[19].mxu1 }
 0x6df   :  { %v1698_v46 = vadd.f32 %v1697_v39, %v1613_v44  ;;  %v4247_v47 = vadd.f32 %v4246_v45, %v4245_v52  ;;  %v1995_v39 = vld [vmem:[#allocation27 + $0x30] sm:$0xff]  ;;  %v2029_v44 = vld [vmem:[#allocation27 + $0x140] sm:$0xff] }
 0x6e0   :  { %v5790_v41 = vpack.c.bf16 %v1996_v40, %v1995_v39 }
 0x6e1   :  { %v1716_v48 = vmax.f32 %v1698_v46, 0.0  ;;  %v1618_v50 = vadd.f32 %v4247_v47, %v3985_v42  ;;  %v4248_v53 = vpop.f32.mrb[20].mxu1  ;;  %v2013_v46 = vld [vmem:[#allocation27 + $0xc0] sm:$0xff]  ;;  %v2014_v47 = vld [vmem:[#allocation27 + $0xc8] sm:$0xff] }
 0x6e2   :  { %v4249_v54 = vpop.f32.mrb[21].mxu1 }
 0x6e3   :  { %v1720_v55 = vadd.f32 %v1716_v48, %v7804_v26  ;;  %v1703_v57 = vadd.f32 %v4964_v38, %v1618_v50  ;;  %v4250_v58 = vadd.f32 %v4249_v54, %v4248_v53  ;;  %v5788_v38 = vpack.c.bf16 %v2012_v35, %v2011_v34  ;;  %v2031_v48 = vld [vmem:[#allocation27 + $0x150] sm:$0xff]  ;;  %v1997_v53 = vld [vmem:[#allocation27 + $0x40] sm:$0xff]  ;;  %v1998_v54 = vld [vmem:[#allocation27 + $0x48] sm:$0xff] }
 0x6e4   :  { %v5792_v50 = vpack.c.bf16 %v2014_v47, %v2013_v46 }
 0x6e5   :  { %v7819_v59 = vmax.f32 %v1720_v55, 0.0  ;;  %v1717_v60 = vmax.f32 %v1703_v57, 0.0  ;;  %v4251_v61 = vpop.f32.mrb[22].mxu1  ;;  %v1623_v62 = vadd.f32 %v4250_v58, %v3985_v42  ;;  %v2032_v55 = vld [vmem:[#allocation27 + $0x158] sm:$0xff]  ;;  %v5794_v57 = vpack.c.bf16 %v1998_v54, %v1997_v53 }
 0x6e6   :  { %v4252_v63 = vpop.f32.mrb[23].mxu1  ;;  %v5828_v58 = vpack.c.bf16 %v2032_v55, %v2031_v48  ;;  %v2220_v48 = vld [vmem:[#allocation30 + $0x10] sm:$0xff] }
 0x6e7   :  { %1728 = vst [vmem:[#allocation2 + $0x20] sm:$0xff] %v7819_v59  ;;  %v1721_v2 = vadd.f32 %v1717_v60, %v7802_v22  ;;  %v1708_v3 = vadd.f32 %v1707_v56, %v1623_v62  ;;  %v4253_v4 = vadd.f32 %v4252_v63, %v4251_v61  ;;  %5000 = vmatprep.mubr.f32.mxu0 %v7819_v59  ;;  %v2007_v22 = vld [vmem:[#allocation27 + $0x90] sm:$0xff]  ;;  %v2030_v56 = vld [vmem:[#allocation27 + $0x148] sm:$0xff]  ;;  %v2016_v61 = vld [vmem:[#allocation27 + $0xd8] sm:$0xff] }
 0x6e8   :  { %v5780_v20 = vpack.c.bf16 %v2008_v14, %v2007_v22  ;;  %v5824_v45 = vpack.c.bf16 %v2030_v56, %v2029_v44  ;;  %v2015_v60 = vld [vmem:[#allocation27 + $0xd0] sm:$0xff]  ;;  %v2020_v14 = vld [vmem:[#allocation27 + $0xf8] sm:$0xff] }
 0x6e9   :  { %v7824_v5 = vmax.f32 %v1721_v2, 0.0  ;;  %v1718_v26 = vmax.f32 %v1708_v3, 0.0  ;;  %v1628_v6 = vadd.f32 %v4253_v4, %v3985_v42  ;;  %v5796_v62 = vpack.c.bf16 %v2016_v61, %v2015_v60  ;;  %v1999_v63 = vld [vmem:[#allocation27 + $0x50] sm:$0xff]  ;;  %v2034_v3 = vld [vmem:[#allocation27 + $0x168] sm:$0xff] }
 0x6ea   :  { %v5798_v2 = vpack.c.bf16 %v2000_v0, %v1999_v63  ;;  %v5832_v4 = vpack.c.bf16 %v2034_v3, %v2033_v1  ;;  %v2019_v22 = vld [vmem:[#allocation27 + $0xf0] sm:$0xff]  ;;  %v2222_v60 = vld [vmem:[#allocation30 + $0x20] sm:$0xff] }
 0x6eb   :  { %1729 = vst [vmem:[#allocation2 + $0x28] sm:$0xff] %v7824_v5  ;;  %v1722_v12 = vadd.f32 %v1718_v26, %v7812_v49  ;;  %v1713_v13 = vadd.f32 %v4967_v51, %v1628_v6  ;;  %5001 = vmatmul.mubr.f32.vlgmr.msra.gmra.mrb[28].mxu0 %v7824_v5  ;;  %v2028_v51 = vld [vmem:[#allocation27 + $0x138] sm:$0xff]  ;;  %v2017_v26 = vld [vmem:[#allocation27 + $0xe0] sm:$0xff]  ;;  %v2018_v6 = vld [vmem:[#allocation27 + $0xe8] sm:$0xff] }
 0x6ec   :  { %5811 = vmatpush3.bf16.msra.mxu0 %v5808_v37  ;;  %v5820_v52 = vpack.c.bf16 %v2028_v51, %v2027_v43  ;;  %v2223_v61 = vld [vmem:[#allocation30 + $0x28] sm:$0xff]  ;;  %v2224_v1 = vld [vmem:[#allocation30 + $0x30] sm:$0xff] }
 0x6ed   :  { %v7829_v15 = vmax.f32 %v1722_v12, 0.0  ;;  %v1719_v16 = vmax.f32 %v1713_v13, 0.0  ;;  %5813 = vmatprep.subr.bf16.mxu0 %v5812_v8  ;;  %v5802_v12 = vpack.c.bf16 %v2002_v10, %v2001_v9  ;;  %v5836_v13 = vpack.c.bf16 %v2036_v11, %v2035_v7  ;;  %v2228_v9 = vld [vmem:[#allocation30 + $0x50] sm:$0xff]  ;;  %v2229_v10 = vld [vmem:[#allocation30 + $0x58] sm:$0xff] }
 0x6ee   :  { %v1740_v19 = vld [vmem:[#allocation2 + $0x1c] sm:$0xff]  ;;  %v5848_v0 = vpack.c.bf16 %v2223_v61, %v2222_v60  ;;  %v5860_v11 = vpack.c.bf16 %v2229_v10, %v2228_v9  ;;  %v2360_v9 = vld [vmem:[#allocation33 + $0x60] sm:$0xff] }
 0x6ef   :  { %1730 = vst [vmem:[#allocation2 + $0x50] sm:$0xff] %v7829_v15  ;;  %v1723_v49 = vadd.f32 %v1719_v16, %v7809_v33  ;;  %1863 = vmatprep.mubr.f32.mxu1 %v1740_v19  ;;  %5003 = vmatprep.mubr.f32.mxu0 %v7829_v15  ;;  %v1994_v33 = vld [vmem:[#allocation27 + $0x28] sm:$0xff]  ;;  %v5804_v16 = vpack.c.bf16 %v2020_v14, %v2019_v22  ;;  %v2232_v14 = vld [vmem:[#allocation30 + $0x70] sm:$0xff] }
 0x6f0   :  { %1864 = vmatmul.mubr.f32.vlgmr.msra.gmra.mrb[24].mxu1 %v7834_v27  ;;  %5815 = vmatpush3.bf16.msra.mxu0 %v5812_v8  ;;  %v5786_v36 = vpack.c.bf16 %v1994_v33, %v1993_v32  ;;  %v5800_v8 = vpack.c.bf16 %v2018_v6, %v2017_v26  ;;  %v2226_v26 = vld [vmem:[#allocation30 + $0x40] sm:$0xff]  ;;  %v2227_v6 = vld [vmem:[#allocation30 + $0x48] sm:$0xff]  ;;  %v2374_v61 = vld [vmem:[#allocation33 + $0xd0] sm:$0xff] }
 0x6f1   :  { %v7837_v28 = vmax.f32 %v1723_v49, 0.0  ;;  %5779 = vmatpush3.bf16.msra.mxu1 %v5778_v17  ;;  %5817 = vmatprep.subr.bf16.mxu0 %v5816_v18  ;;  %v2003_v17 = vld [vmem:[#allocation27 + $0x70] sm:$0xff] }
 0x6f2   :  { %v1741_v30 = vld [vmem:[#allocation2 + $0x24] sm:$0xff]  ;;  %5781 = vmatprep.subr.bf16.mxu1 %v5780_v20  ;;  %v2218_v20 = vld [vmem:[#allocation30] sm:$0xff]  ;;  %v2361_v10 = vld [vmem:[#allocation33 + $0x68] sm:$0xff] }
 0x6f3   :  { %1731 = vst [vmem:[#allocation2 + $0x58] sm:$0xff] %v7837_v28  ;;  %1868 = vmatprep.mubr.f32.mxu1 %v1741_v30  ;;  %5004 = vmatmul.mubr.f32.gmra.mrb[30].mxu0 %v7837_v28  ;;  %v5840_v23 = vpack.c.bf16 %v2219_v21, %v2218_v20  ;;  %v3986_v30 = vld [vmem:[#allocation25] ss:$0 sm:$0xff]  ;;  %v2348_v20 = vld [vmem:[#allocation33] sm:$0xff]  ;;  %v2349_v21 = vld [vmem:[#allocation33 + $0x8] sm:$0xff] }
 0x6f4   :  { %1869 = vmatmul.mubr.f32.gmra.mrb[26].mxu1 %v7819_v59  ;;  %5819 = vmatpush3.bf16.msra.mxu0 %v5816_v18  ;;  %v2004_v18 = vld [vmem:[#allocation27 + $0x78] sm:$0xff] }
 0x6f5   :  { %5783 = vmatpush3.bf16.msra.mxu1 %v5782_v29  ;;  %5821 = vmatprep.subr.bf16.mxu0 %v5820_v52  ;;  %v5806_v19 = vpack.c.bf16 %v2004_v18, %v2003_v17  ;;  %v2365_v18 = vld [vmem:[#allocation33 + $0x88] sm:$0xff] }
 0x6f6   :  { %v1742_v37 = vld [vmem:[#allocation2 + $0x4c] sm:$0xff]  ;;  %5785 = vmatprep.subr.bf16.mxu1 %v5784_v31 }
 0x6f7   :  { %1873 = vmatprep.mubr.f32.mxu1 %v1742_v37 }
 0x6f8   :  { %1874 = vmatmul.mubr.f32.gmra.mrb[28].mxu1 %v7834_v27  ;;  %5823 = vmatpush3.bf16.msra.mxu0 %v5820_v52 }
 0x6f9   :  { %5787 = vmatpush3.bf16.msra.mxu1 %v5786_v36  ;;  %5825 = vmatprep.subr.bf16.mxu0 %v5824_v45 }
 0x6fa   :  { %v1743_v42 = vld [vmem:[#allocation2 + $0x54] sm:$0xff]  ;;  %5789 = vmatprep.subr.bf16.mxu1 %v5788_v38 }
 0x6fb   :  { %1878 = vmatprep.mubr.f32.mxu1 %v1743_v42 }
 0x6fc   :  { %1879 = vmatmul.mubr.f32.gmra.mrb[30].mxu1 %v7829_v15  ;;  %5827 = vmatpush3.bf16.msra.mxu0 %v5824_v45 }
 0x6fd   :  { %5791 = vmatpush3.bf16.msra.mxu1 %v5790_v41  ;;  %5829 = vmatprep.subr.bf16.mxu0 %v5828_v58 }
 0x6fe   :  { %5793 = vmatprep.subr.bf16.mxu1 %v5792_v50  ;;  %v2221_v50 = vld [vmem:[#allocation30 + $0x18] sm:$0xff] }
 0x700   :  { %5831 = vmatpush3.bf16.msra.mxu0 %v5828_v58 }
 0x701   :  { %5795 = vmatpush3.bf16.msra.mxu1 %v5794_v57  ;;  %5833 = vmatprep.subr.bf16.mxu0 %v5832_v4  ;;  %v5844_v57 = vpack.c.bf16 %v2221_v50, %v2220_v48  ;;  %v2373_v48 = vld [vmem:[#allocation33 + $0xc8] sm:$0xff] }
 0x702   :  { %5797 = vmatprep.subr.bf16.mxu1 %v5796_v62 }
 0x704   :  { %5835 = vmatpush3.bf16.msra.mxu0 %v5832_v4 }
 0x705   :  { %5799 = vmatpush3.bf16.msra.mxu1 %v5798_v2  ;;  %5837 = vmatprep.subr.bf16.mxu0 %v5836_v13  ;;  %v2225_v2 = vld [vmem:[#allocation30 + $0x38] sm:$0xff] }
 0x706   :  { %5801 = vmatprep.subr.bf16.mxu1 %v5800_v8  ;;  %v5852_v4 = vpack.c.bf16 %v2225_v2, %v2224_v1  ;;  %v5856_v8 = vpack.c.bf16 %v2227_v6, %v2226_v26  ;;  %v2359_v1 = vld [vmem:[#allocation33 + $0x58] sm:$0xff]  ;;  %v2388_v2 = vld [vmem:[#allocation33 + $0x140] sm:$0xff] }
 0x707   :  { %v2376_v6 = vld [vmem:[#allocation33 + $0xe0] sm:$0xff] }
 0x708   :  { %5839 = vmatpush3.bf16.msra.mxu0 %v5836_v13  ;;  %v2231_v13 = vld [vmem:[#allocation30 + $0x68] sm:$0xff] }
 0x709   :  { %5803 = vmatpush3.bf16.msra.mxu1 %v5802_v12  ;;  %v2230_v12 = vld [vmem:[#allocation30 + $0x60] sm:$0xff] }
 0x70a   :  { %5805 = vmatprep.subr.bf16.mxu1 %v5804_v16  ;;  %v5864_v22 = vpack.c.bf16 %v2231_v13, %v2230_v12  ;;  %v2233_v16 = vld [vmem:[#allocation30 + $0x78] sm:$0xff]  ;;  %v5898_v12 = vpack.c.bf16 %v2361_v10, %v2360_v9 }
 0x70b   :  { %v5868_v17 = vpack.c.bf16 %v2233_v16, %v2232_v14  ;;  %v2391_v13 = vld [vmem:[#allocation33 + $0x158] sm:$0xff]  ;;  %v2378_v14 = vld [vmem:[#allocation33 + $0xf0] sm:$0xff] }
 0x70c   :  { %v2379_v16 = vld [vmem:[#allocation33 + $0xf8] sm:$0xff] }
 0x70d   :  { %5807 = vmatpush3.bf16.msra.mxu1 %v5806_v19 }
 0x70e   :  { %5841 = vmatprep.subr.bf16.mxu1 %v5840_v23 }
 0x7be   :  { %v5002_v49 = vpop.f32.mrb[28].mxu0 }
 0x7bf   :  { %v1950_v24 = vpop.f32.mrb[29].mxu0 }
 0x7c3   :  { %v4306_v25 = vpop.f32.mrb[24].mxu1 }
 0x7c4   :  { %v4307_v29 = vpop.f32.mrb[25].mxu1 }
 0x7c5   :  { %v4308_v31 = vadd.f32 %v4307_v29, %v4306_v25  ;;  %v2350_v29 = vld [vmem:[#allocation33 + $0x10] sm:$0xff] }
 0x7c6   :  { %v5005_v32 = vpop.f32.mrb[30].mxu0 }
 0x7c7   :  { %v4309_v33 = vpop.f32.mrb[26].mxu1  ;;  %v1866_v34 = vadd.f32 %v4308_v31, %v3986_v30  ;;  %v1960_v35 = vpop.f32.mrb[31].mxu0  ;;  %v2380_v31 = vld [vmem:[#allocation33 + $0x100] sm:$0xff] }
 0x7c8   :  { %v4310_v36 = vpop.f32.mrb[27].mxu1 }
 0x7c9   :  { %v1951_v37 = vadd.f32 %v1950_v24, %v1866_v34  ;;  %v4311_v38 = vadd.f32 %v4310_v36, %v4309_v33  ;;  %v2367_v24 = vld [vmem:[#allocation33 + $0x98] sm:$0xff]  ;;  %v2369_v33 = vld [vmem:[#allocation33 + $0xa8] sm:$0xff] }
 0x7ca   :  { %v2353_v36 = vld [vmem:[#allocation33 + $0x28] sm:$0xff] }
 0x7cb   :  { %v1969_v39 = vmax.f32 %v1951_v37, 0.0  ;;  %v1871_v40 = vadd.f32 %v4311_v38, %v3986_v30  ;;  %v4312_v41 = vpop.f32.mrb[28].mxu1  ;;  %v2382_v37 = vld [vmem:[#allocation33 + $0x110] sm:$0xff] }
 0x7cc   :  { %v4313_v42 = vpop.f32.mrb[29].mxu1 }
 0x7cd   :  { %1973 = vst [vmem:[#allocation3 + $0x20] sm:$0xff] %v1969_v39  ;;  %v1956_v43 = vadd.f32 %v5002_v49, %v1871_v40  ;;  %v4314_v51 = vadd.f32 %v4313_v42, %v4312_v41  ;;  %5038 = vmatprep.mubr.f32.mxu0 %v1969_v39  ;;  %v2366_v49 = vld [vmem:[#allocation33 + $0x90] sm:$0xff]  ;;  %v2371_v42 = vld [vmem:[#allocation33 + $0xb8] sm:$0xff] }
 0x7ce   :  { %v5876_v25 = vpack.c.bf16 %v2367_v24, %v2366_v49  ;;  %v2370_v41 = vld [vmem:[#allocation33 + $0xb0] sm:$0xff]  ;;  %v2395_v24 = vld [vmem:[#allocation33 + $0x178] sm:$0xff] }
 0x7cf   :  { %v1970_v52 = vmax.f32 %v1956_v43, 0.0  ;;  %v4315_v44 = vpop.f32.mrb[30].mxu1  ;;  %v1876_v56 = vadd.f32 %v4314_v51, %v3986_v30  ;;  %v5884_v43 = vpack.c.bf16 %v2371_v42, %v2370_v41  ;;  %v2354_v51 = vld [vmem:[#allocation33 + $0x30] sm:$0xff] }
 0x7d0   :  { %v4316_v45 = vpop.f32.mrb[31].mxu1  ;;  %v2394_v49 = vld [vmem:[#allocation33 + $0x170] sm:$0xff] }
 0x7d1   :  { %1974 = vst [vmem:[#allocation3 + $0x28] sm:$0xff] %v1970_v52  ;;  %v1961_v46 = vadd.f32 %v1960_v35, %v1876_v56  ;;  %v4317_v47 = vadd.f32 %v4316_v45, %v4315_v44  ;;  %5039 = vmatmul.mubr.f32.vlgmr.msra.gmra.mrb[32].mxu0 %v1970_v52  ;;  %v2352_v35 = vld [vmem:[#allocation33 + $0x20] sm:$0xff]  ;;  %v2355_v52 = vld [vmem:[#allocation33 + $0x38] sm:$0xff]  ;;  %v2385_v45 = vld [vmem:[#allocation33 + $0x128] sm:$0xff] }
 0x7d2   :  { %v5882_v38 = vpack.c.bf16 %v2353_v36, %v2352_v35  ;;  %v2384_v44 = vld [vmem:[#allocation33 + $0x120] sm:$0xff]  ;;  %v5886_v56 = vpack.c.bf16 %v2355_v52, %v2354_v51  ;;  %v2593_v35 = vld [vmem:[#allocation36 + $0x10] sm:$0xff]  ;;  %v2596_v52 = vld [vmem:[#allocation36 + $0x28] sm:$0xff] }
 0x7d3   :  { %v1971_v53 = vmax.f32 %v1961_v46, 0.0  ;;  %v1881_v54 = vadd.f32 %v4317_v47, %v3986_v30  ;;  %v2351_v30 = vld [vmem:[#allocation33 + $0x18] sm:$0xff]  ;;  %v5912_v46 = vpack.c.bf16 %v2385_v45, %v2384_v44  ;;  %v2372_v47 = vld [vmem:[#allocation33 + $0xc0] sm:$0xff] }
 0x7d4   :  { %v1981_v55 = vld [vmem:[#allocation3 + $0x1c] sm:$0xff]  ;;  %v5888_v50 = vpack.c.bf16 %v2373_v48, %v2372_v47  ;;  %v2594_v36 = vld [vmem:[#allocation36 + $0x18] sm:$0xff]  ;;  %v2595_v51 = vld [vmem:[#allocation36 + $0x20] sm:$0xff] }
 0x7d5   :  { %1975 = vst [vmem:[#allocation3 + $0x50] sm:$0xff] %v1971_v53  ;;  %v1966_v58 = vadd.f32 %v5005_v32, %v1881_v54  ;;  %2108 = vmatprep.mubr.f32.mxu1 %v1981_v55  ;;  %5041 = vmatprep.mubr.f32.mxu0 %v1971_v53  ;;  %v5878_v32 = vpack.c.bf16 %v2351_v30, %v2350_v29  ;;  %v2357_v54 = vld [vmem:[#allocation33 + $0x48] sm:$0xff]  ;;  %v2386_v55 = vld [vmem:[#allocation33 + $0x130] sm:$0xff]  ;;  %v2598_v48 = vld [vmem:[#allocation36 + $0x38] sm:$0xff] }
 0x7d6   :  { %2109 = vmatmul.mubr.f32.vlgmr.msra.gmra.mrb[32].mxu1 %v7834_v27  ;;  %v2607_v29 = vld [vmem:[#allocation36 + $0x80] sm:$0xff]  ;;  %v2608_v30 = vld [vmem:[#allocation36 + $0x88] sm:$0xff]  ;;  %v5942_v41 = vpack.c.bf16 %v2594_v36, %v2593_v35  ;;  %v2613_v44 = vld [vmem:[#allocation36 + $0xb0] sm:$0xff]  ;;  %v5946_v45 = vpack.c.bf16 %v2596_v52, %v2595_v51 }
 0x7d7   :  { %v1972_v62 = vmax.f32 %v1966_v58, 0.0  ;;  %5843 = vmatpush3.bf16.msra.mxu1 %v5840_v23  ;;  %v5874_v23 = vpack.c.bf16 %v2349_v21, %v2348_v20  ;;  %v2387_v58 = vld [vmem:[#allocation33 + $0x138] sm:$0xff]  ;;  %v2393_v21 = vld [vmem:[#allocation33 + $0x168] sm:$0xff] }
 0x7d8   :  { %v1982_v63 = vld [vmem:[#allocation3 + $0x24] sm:$0xff]  ;;  %5845 = vmatprep.subr.bf16.mxu1 %v5844_v57  ;;  %v5916_v60 = vpack.c.bf16 %v2387_v58, %v2386_v55  ;;  %v2600_v58 = vld [vmem:[#allocation36 + $0x48] sm:$0xff] }
 0x7d9   :  { %1976 = vst [vmem:[#allocation3 + $0x58] sm:$0xff] %v1972_v62  ;;  %2113 = vmatprep.mubr.f32.mxu1 %v1982_v63  ;;  %5042 = vmatmul.mubr.f32.gmra.mrb[34].mxu0 %v1972_v62  ;;  %v2375_v62 = vld [vmem:[#allocation33 + $0xd8] sm:$0xff] }
 0x7da   :  { %2114 = vmatmul.mubr.f32.gmra.mrb[34].mxu1 %v1969_v39  ;;  %2467 = vmatprep.mubr.f32.mxu0 %v7834_v27  ;;  %v2383_v39 = vld [vmem:[#allocation33 + $0x118] sm:$0xff]  ;;  %v5892_v63 = vpack.c.bf16 %v2375_v62, %v2374_v61 }
 0x7db   :  { %5847 = vmatpush3.bf16.msra.mxu1 %v5844_v57  ;;  %v5908_v40 = vpack.c.bf16 %v2383_v39, %v2382_v37  ;;  %v2611_v37 = vld [vmem:[#allocation36 + $0xa0] sm:$0xff]  ;;  %v2597_v47 = vld [vmem:[#allocation36 + $0x30] sm:$0xff]  ;;  %v2618_v62 = vld [vmem:[#allocation36 + $0xd8] sm:$0xff] }
 0x7dc   :  { %v1983_v3 = vld [vmem:[#allocation3 + $0x4c] sm:$0xff]  ;;  %5849 = vmatprep.subr.bf16.mxu1 %v5848_v0  ;;  %v2617_v61 = vld [vmem:[#allocation36 + $0xd0] sm:$0xff] }
 0x7dd   :  { %2118 = vmatprep.mubr.f32.mxu1 %v1983_v3  ;;  %v2623_v39 = vld [vmem:[#allocation36 + $0x100] sm:$0xff] }
 0x7de   :  { %2119 = vmatmul.mubr.f32.gmra.mrb[36].mxu1 %v7834_v27 }
 0x7df   :  { %5851 = vmatpush3.bf16.msra.mxu1 %v5848_v0  ;;  %v2358_v0 = vld [vmem:[#allocation33 + $0x50] sm:$0xff] }
 0x7e0   :  { %v1984_v7 = vld [vmem:[#allocation3 + $0x54] sm:$0xff]  ;;  %5853 = vmatprep.subr.bf16.mxu1 %v5852_v4  ;;  %v5894_v3 = vpack.c.bf16 %v2359_v1, %v2358_v0  ;;  %v2601_v0 = vld [vmem:[#allocation36 + $0x50] sm:$0xff]  ;;  %v2602_v1 = vld [vmem:[#allocation36 + $0x58] sm:$0xff] }
 0x7e1   :  { %2123 = vmatprep.mubr.f32.mxu1 %v1984_v7  ;;  %v2377_v7 = vld [vmem:[#allocation33 + $0xe8] sm:$0xff] }
 0x7e2   :  { %2124 = vmatmul.mubr.f32.gmra.mrb[38].mxu1 %v1971_v53  ;;  %v2356_v53 = vld [vmem:[#allocation33 + $0x40] sm:$0xff] }
 0x7e3   :  { %5855 = vmatpush3.bf16.msra.mxu1 %v5852_v4  ;;  %5076 = vmatprep.mubr.f32.mxu1 %v7819_v59  ;;  %v2364_v59 = vld [vmem:[#allocation33 + $0x80] sm:$0xff]  ;;  %v5890_v57 = vpack.c.bf16 %v2357_v54, %v2356_v53  ;;  %v2389_v4 = vld [vmem:[#allocation33 + $0x148] sm:$0xff]  ;;  %v5950_v54 = vpack.c.bf16 %v2598_v48, %v2597_v47 }
 0x7e4   :  { %5857 = vmatprep.subr.bf16.mxu1 %v5856_v8  ;;  %v5872_v19 = vpack.c.bf16 %v2365_v18, %v2364_v59  ;;  %v5920_v26 = vpack.c.bf16 %v2389_v4, %v2388_v2  ;;  %v2362_v59 = vld [vmem:[#allocation33 + $0x70] sm:$0xff]  ;;  %v2363_v18 = vld [vmem:[#allocation33 + $0x78] sm:$0xff]  ;;  %v2627_v47 = vld [vmem:[#allocation36 + $0x120] sm:$0xff] }
 0x7e5   :  { %v5902_v20 = vpack.c.bf16 %v2363_v18, %v2362_v59  ;;  %v2616_v53 = vld [vmem:[#allocation36 + $0xc8] sm:$0xff] }
 0x7e6   :  { %5873 = vmatprep.subr.bf16.mxu0 %v5872_v19  ;;  %v2392_v19 = vld [vmem:[#allocation33 + $0x160] sm:$0xff]  ;;  %v2628_v48 = vld [vmem:[#allocation36 + $0x128] sm:$0xff] }
 0x7e7   :  { %5859 = vmatpush3.bf16.msra.mxu1 %v5856_v8  ;;  %5875 = vmatpush3.bf16.msra.mxu0 %v5874_v23  ;;  %v5896_v8 = vpack.c.bf16 %v2377_v7, %v2376_v6  ;;  %v5928_v23 = vpack.c.bf16 %v2393_v21, %v2392_v19  ;;  %v3987_v7 = vld [vmem:[#allocation28] ss:$0 sm:$0xff] }
 0x7e8   :  { %5861 = vmatprep.subr.bf16.mxu1 %v5860_v11  ;;  %5877 = vmatprep.subr.bf16.mxu0 %v5876_v25  ;;  %v5932_v25 = vpack.c.bf16 %v2395_v24, %v2394_v49 }
 0x7eb   :  { %5863 = vmatpush3.bf16.msra.mxu1 %v5860_v11  ;;  %5879 = vmatpush3.bf16.msra.mxu0 %v5878_v32  ;;  %v2390_v11 = vld [vmem:[#allocation33 + $0x150] sm:$0xff]  ;;  %v5936_v32 = vpack.c.bf16 %v2608_v30, %v2607_v29  ;;  %v3988_v30 = vld [vmem:[#allocation31] ss:$0 sm:$0xff] }
 0x7ec   :  { %5865 = vmatprep.subr.bf16.mxu1 %v5864_v22 }
 0x7ef   :  { %5867 = vmatpush3.bf16.msra.mxu1 %v5864_v22  ;;  %v5924_v22 = vpack.c.bf16 %v2391_v13, %v2390_v11 }
 0x7f0   :  { %5869 = vmatprep.subr.bf16.mxu1 %v5868_v17 }
 0x7f3   :  { %5871 = vmatpush3.bf16.msra.mxu1 %v5868_v17  ;;  %v5900_v17 = vpack.c.bf16 %v2379_v16, %v2378_v14 }
 0x7f6   :  { %5077 = vmatmul.mubr.f32.vlgmr.msra.gmra.mrb[40].mxu1 %v7824_v5  ;;  %v2381_v5 = vld [vmem:[#allocation33 + $0x108] sm:$0xff] }
 0x7f7   :  { %5079 = vmatprep.mubr.f32.mxu1 %v7829_v15  ;;  %v5904_v15 = vpack.c.bf16 %v2381_v5, %v2380_v31  ;;  %v2591_v31 = vld [vmem:[#allocation36] sm:$0xff]  ;;  %v2592_v5 = vld [vmem:[#allocation36 + $0x8] sm:$0xff] }
 0x7f9   :  { %5905 = vmatprep.subr.bf16.mxu1 %v5904_v15 }
 0x7fa   :  { %5080 = vmatmul.mubr.f32.gmra.mrb[42].mxu1 %v7837_v28  ;;  %v2368_v28 = vld [vmem:[#allocation33 + $0xa0] sm:$0xff] }
 0x7fb   :  { %v5880_v34 = vpack.c.bf16 %v2369_v33, %v2368_v28  ;;  %5907 = vmatpush3.bf16.msra.mxu1 %v5904_v15  ;;  %v2609_v15 = vld [vmem:[#allocation36 + $0x90] sm:$0xff]  ;;  %v2610_v28 = vld [vmem:[#allocation36 + $0x98] sm:$0xff]  ;;  %v5938_v33 = vpack.c.bf16 %v2592_v5, %v2591_v31 }
 0x7fc   :  { %5909 = vmatprep.subr.bf16.mxu1 %v5908_v40 }
 0x7fd   :  { %5881 = vmatprep.subr.bf16.mxu0 %v5880_v34  ;;  %v5940_v34 = vpack.c.bf16 %v2610_v28, %v2609_v15 }
 0x7fe   :  { %5883 = vmatpush3.bf16.msra.mxu0 %v5882_v38  ;;  %v2612_v38 = vld [vmem:[#allocation36 + $0xa8] sm:$0xff] }
 0x7ff   :  { %5911 = vmatpush3.bf16.msra.mxu1 %v5908_v40  ;;  %5885 = vmatprep.subr.bf16.mxu0 %v5884_v43  ;;  %v2624_v40 = vld [vmem:[#allocation36 + $0x108] sm:$0xff]  ;;  %v5944_v43 = vpack.c.bf16 %v2612_v38, %v2611_v37  ;;  %v2625_v37 = vld [vmem:[#allocation36 + $0x110] sm:$0xff]  ;;  %v2626_v38 = vld [vmem:[#allocation36 + $0x118] sm:$0xff] }
 0x800   :  { %5913 = vmatprep.subr.bf16.mxu1 %v5912_v46  ;;  %v7852_v42 = vpack.c.bf16 %v2624_v40, %v2623_v39 }
 0x802   :  { %5887 = vmatpush3.bf16.msra.mxu0 %v5886_v56  ;;  %v2614_v56 = vld [vmem:[#allocation36 + $0xb8] sm:$0xff] }
 0x803   :  { %5915 = vmatpush3.bf16.msra.mxu1 %v5912_v46  ;;  %5889 = vmatprep.subr.bf16.mxu0 %v5888_v50  ;;  %v5948_v46 = vpack.c.bf16 %v2614_v56, %v2613_v44  ;;  %v2615_v50 = vld [vmem:[#allocation36 + $0xc0] sm:$0xff] }
 0x804   :  { %5917 = vmatprep.subr.bf16.mxu1 %v5916_v60  ;;  %v5952_v55 = vpack.c.bf16 %v2616_v53, %v2615_v50 }
 0x806   :  { %5891 = vmatpush3.bf16.msra.mxu0 %v5890_v57  ;;  %v2599_v57 = vld [vmem:[#allocation36 + $0x40] sm:$0xff] }
 0x807   :  { %5919 = vmatpush3.bf16.msra.mxu1 %v5916_v60  ;;  %5893 = vmatprep.subr.bf16.mxu0 %v5892_v63  ;;  %v5954_v60 = vpack.c.bf16 %v2600_v58, %v2599_v57  ;;  %v5956_v63 = vpack.c.bf16 %v2618_v62, %v2617_v61  ;;  %v2630_v57 = vld [vmem:[#allocation36 + $0x138] sm:$0xff]  ;;  %v2631_v61 = vld [vmem:[#allocation36 + $0x140] sm:$0xff] }
 0x808   :  { %5921 = vmatprep.subr.bf16.mxu1 %v5920_v26 }
 0x80a   :  { %5895 = vmatpush3.bf16.msra.mxu0 %v5894_v3  ;;  %v5958_v3 = vpack.c.bf16 %v2602_v1, %v2601_v0  ;;  %v2603_v0 = vld [vmem:[#allocation36 + $0x60] sm:$0xff]  ;;  %v2604_v1 = vld [vmem:[#allocation36 + $0x68] sm:$0xff] }
 0x80b   :  { %5923 = vmatpush3.bf16.msra.mxu1 %v5920_v26  ;;  %5897 = vmatprep.subr.bf16.mxu0 %v5896_v8 }
 0x80c   :  { %5925 = vmatprep.subr.bf16.mxu1 %v5924_v22 }
 0x80e   :  { %5899 = vmatpush3.bf16.msra.mxu0 %v5898_v12 }
 0x80f   :  { %5927 = vmatpush3.bf16.msra.mxu1 %v5924_v22  ;;  %5901 = vmatprep.subr.bf16.mxu0 %v5900_v17 }
 0x810   :  { %5929 = vmatprep.subr.bf16.mxu1 %v5928_v23 }
 0x812   :  { %5903 = vmatpush3.bf16.msra.mxu0 %v5902_v20 }
 0x813   :  { %5931 = vmatpush3.bf16.msra.mxu1 %v5928_v23  ;;  %5937 = vmatprep.subr.bf16.mxu0 %v5936_v32 }
 0x814   :  { %5933 = vmatprep.subr.bf16.mxu1 %v5932_v25 }
 0x815   :  { %2468 = vmatmul.mubr.f32.vlgmr.msra.gmra.mrb[36].mxu0 %v7834_v27 }
 0x816   :  { %5939 = vmatpush3.bf16.msra.mxu0 %v5938_v33 }
 0x817   :  { %5935 = vmatpush3.bf16.msra.mxu1 %v5932_v25  ;;  %5941 = vmatprep.subr.bf16.mxu0 %v5940_v34 }
 0x818   :  { %5969 = vmatprep.subr.bf16.mxu1 %v7852_v42 }
 0x81a   :  { %5943 = vmatpush3.bf16.msra.mxu0 %v5942_v41 }
 0x81b   :  { %5945 = vmatprep.subr.bf16.mxu0 %v5944_v43 }
 0x81e   :  { %5947 = vmatpush3.bf16.msra.mxu0 %v5946_v45  ;;  %v5972_v45 = vpack.c.bf16 %v2626_v38, %v2625_v37  ;;  %v2849_v37 = vld [vmem:[#allocation39 + $0x28] sm:$0xff]  ;;  %v2866_v38 = vld [vmem:[#allocation39 + $0xb0] sm:$0xff] }
 0x81f   :  { %5949 = vmatprep.subr.bf16.mxu0 %v5948_v46 }
 0x822   :  { %5951 = vmatpush3.bf16.msra.mxu0 %v5950_v54  ;;  %v5976_v54 = vpack.c.bf16 %v2628_v48, %v2627_v47 }
 0x823   :  { %5953 = vmatprep.subr.bf16.mxu0 %v5952_v55  ;;  %v2629_v55 = vld [vmem:[#allocation36 + $0x130] sm:$0xff] }
 0x824   :  { %v5980_v58 = vpack.c.bf16 %v2630_v57, %v2629_v55  ;;  %v2853_v55 = vld [vmem:[#allocation39 + $0x48] sm:$0xff]  ;;  %v2870_v57 = vld [vmem:[#allocation39 + $0xd0] sm:$0xff] }
 0x826   :  { %5955 = vmatpush3.bf16.msra.mxu0 %v5954_v60  ;;  %v2620_v60 = vld [vmem:[#allocation36 + $0xe8] sm:$0xff] }
 0x827   :  { %5957 = vmatprep.subr.bf16.mxu0 %v5956_v63  ;;  %v2632_v63 = vld [vmem:[#allocation36 + $0x148] sm:$0xff] }
 0x82a   :  { %5959 = vmatpush3.bf16.msra.mxu0 %v5958_v3  ;;  %v5962_v3 = vpack.c.bf16 %v2604_v1, %v2603_v0  ;;  %v2873_v0 = vld [vmem:[#allocation39 + $0xe8] sm:$0xff] }
 0x8a4   :  { %v5040_v2 = vpop.f32.mrb[32].mxu0 }
 0x8a5   :  { %v2195_v4 = vpop.f32.mrb[33].mxu0 }
 0x8a9   :  { %v4370_v26 = vpop.f32.mrb[32].mxu1 }
 0x8aa   :  { %v4371_v6 = vpop.f32.mrb[33].mxu1 }
 0x8ab   :  { %v4372_v8 = vadd.f32 %v4371_v6, %v4370_v26  ;;  %v2621_v26 = vld [vmem:[#allocation36 + $0xf0] sm:$0xff]  ;;  %v2622_v6 = vld [vmem:[#allocation36 + $0xf8] sm:$0xff] }
 0x8ac   :  { %v5043_v9 = vpop.f32.mrb[34].mxu0 }
 0x8ad   :  { %v4373_v10 = vpop.f32.mrb[34].mxu1  ;;  %v2111_v11 = vadd.f32 %v4372_v8, %v3987_v7  ;;  %v2205_v12 = vpop.f32.mrb[35].mxu0 }
 0x8ae   :  { %v4374_v13 = vpop.f32.mrb[35].mxu1 }
 0x8af   :  { %v2196_v22 = vadd.f32 %v2195_v4, %v2111_v11  ;;  %v4375_v14 = vadd.f32 %v4374_v13, %v4373_v10  ;;  %v2634_v10 = vld [vmem:[#allocation36 + $0x158] sm:$0xff]  ;;  %v2605_v11 = vld [vmem:[#allocation36 + $0x70] sm:$0xff] }
 0x8b1   :  { %v2116_v16 = vadd.f32 %v4375_v14, %v3987_v7  ;;  %v4376_v17 = vpop.f32.mrb[36].mxu1  ;;  %v2214_v28 = vmax.f32 %v2196_v22, 0.0 }
 0x8b2   :  { %v4377_v59 = vpop.f32.mrb[37].mxu1 }
 0x8b3   :  { %v2201_v18 = vadd.f32 %v5040_v2, %v2116_v16  ;;  %v4378_v19 = vadd.f32 %v4377_v59, %v4376_v17  ;;  %v5984_v2 = vpack.c.bf16 %v2632_v63, %v2631_v61  ;;  %v2635_v16 = vld [vmem:[#allocation36 + $0x160] sm:$0xff]  ;;  %v2636_v17 = vld [vmem:[#allocation36 + $0x168] sm:$0xff]  ;;  %v2854_v61 = vld [vmem:[#allocation39 + $0x50] sm:$0xff] }
 0x8b4   :  { %v5992_v59 = vpack.c.bf16 %v2636_v17, %v2635_v16  ;;  %v2872_v63 = vld [vmem:[#allocation39 + $0xe0] sm:$0xff]  ;;  %v2877_v17 = vld [vmem:[#allocation39 + $0x108] sm:$0xff] }
 0x8b5   :  { %v4379_v20 = vpop.f32.mrb[38].mxu1  ;;  %v2121_v21 = vadd.f32 %v4378_v19, %v3987_v7  ;;  %v2215_v32 = vmax.f32 %v2201_v18, 0.0  ;;  %v2637_v18 = vld [vmem:[#allocation36 + $0x170] sm:$0xff]  ;;  %v2638_v19 = vld [vmem:[#allocation36 + $0x178] sm:$0xff]  ;;  %v2876_v16 = vld [vmem:[#allocation39 + $0x100] sm:$0xff] }
 0x8b6   :  { %v4380_v23 = vpop.f32.mrb[39].mxu1 }
 0x8b7   :  { %v2206_v49 = vadd.f32 %v2205_v12, %v2121_v21  ;;  %v4381_v24 = vadd.f32 %v4380_v23, %v4379_v20  ;;  %v2606_v12 = vld [vmem:[#allocation36 + $0x78] sm:$0xff]  ;;  %v5996_v20 = vpack.c.bf16 %v2638_v19, %v2637_v18  ;;  %v2860_v21 = vld [vmem:[#allocation39 + $0x80] sm:$0xff]  ;;  %v2861_v23 = vld [vmem:[#allocation39 + $0x88] sm:$0xff] }
 0x8b8   :  { %v5966_v14 = vpack.c.bf16 %v2606_v12, %v2605_v11  ;;  %v3105_v11 = vld [vmem:[#allocation42 + $0x80] sm:$0xff]  ;;  %v3106_v12 = vld [vmem:[#allocation42 + $0x88] sm:$0xff]  ;;  %v3989_v18 = vld [vmem:[#allocation34] ss:$0 sm:$0xff] }
 0x8b9   :  { %v2126_v25 = vadd.f32 %v4381_v24, %v3987_v7  ;;  %v2216_v43 = vmax.f32 %v2206_v49, 0.0  ;;  %v2633_v7 = vld [vmem:[#allocation36 + $0x150] sm:$0xff]  ;;  %v2844_v49 = vld [vmem:[#allocation39] sm:$0xff]  ;;  %v6000_v24 = vpack.c.bf16 %v2861_v23, %v2860_v21 }
 0x8ba   :  { %v5988_v22 = vpack.c.bf16 %v2634_v10, %v2633_v7  ;;  %v2859_v10 = vld [vmem:[#allocation39 + $0x78] sm:$0xff] }
 0x8bb   :  { %v2211_v29 = vadd.f32 %v5043_v9, %v2126_v25  ;;  %v5964_v9 = vpack.c.bf16 %v2622_v6, %v2621_v26  ;;  %v2845_v25 = vld [vmem:[#allocation39 + $0x8] sm:$0xff]  ;;  %v2874_v26 = vld [vmem:[#allocation39 + $0xf0] sm:$0xff]  ;;  %v2875_v6 = vld [vmem:[#allocation39 + $0xf8] sm:$0xff] }
 0x8bd   :  { %v2217_v39 = vmax.f32 %v2211_v29, 0.0  ;;  %v2862_v29 = vld [vmem:[#allocation39 + $0x90] sm:$0xff] }
 0x8c9   :  { %v5078_v31 = vpop.f32.mrb[40].mxu1 }
 0x8ca   :  { %v2313_v5 = vadd.f32 %v5078_v31, %v3988_v30  ;;  %v2307_v15 = vpop.f32.mrb[41].mxu1  ;;  %v6002_v31 = vpack.c.bf16 %v2845_v25, %v2844_v49 }
 0x8cb   :  { %v2308_v33 = vadd.f32 %v3988_v30, %v2307_v15  ;;  %v2847_v15 = vld [vmem:[#allocation39 + $0x18] sm:$0xff] }
 0x8cc   :  { %v7855_v34 = vadd.f32 %v2313_v5, %v2215_v32  ;;  %v2846_v5 = vld [vmem:[#allocation39 + $0x10] sm:$0xff] }
 0x8cd   :  { %v2326_v35 = vadd.f32 %v2308_v33, %v2214_v28  ;;  %v5081_v36 = vpop.f32.mrb[42].mxu1  ;;  %v2864_v28 = vld [vmem:[#allocation39 + $0xa0] sm:$0xff]  ;;  %v6006_v33 = vpack.c.bf16 %v2847_v15, %v2846_v5 }
 0x8ce   :  { %v2323_v40 = vadd.f32 %v5081_v36, %v3988_v30  ;;  %v2317_v41 = vpop.f32.mrb[43].mxu1  ;;  %v2331_v44 = vmax.f32 %v7855_v34, 0.0  ;;  %v2848_v36 = vld [vmem:[#allocation39 + $0x20] sm:$0xff] }
 0x8cf   :  { %v7857_v51 = vmax.f32 %v2326_v35, 0.0  ;;  %v2318_v52 = vadd.f32 %v3988_v30, %v2317_v41  ;;  %v2863_v30 = vld [vmem:[#allocation39 + $0x98] sm:$0xff] }
 0x8d0   :  { %v7860_v56 = vadd.f32 %v2323_v40, %v2217_v39  ;;  %v6004_v32 = vpack.c.bf16 %v2863_v30, %v2862_v29  ;;  %v2867_v39 = vld [vmem:[#allocation39 + $0xb8] sm:$0xff]  ;;  %v6010_v40 = vpack.c.bf16 %v2849_v37, %v2848_v36  ;;  %v7883_v36 = vld [vmem:[#allocation2 + $0x18] sm:$0xff] }
 0x8d1   :  { %v2328_v46 = vadd.f32 %v2318_v52, %v2216_v43  ;;  %2472 = vmatprep.mubr.f32.mxu0 %v7857_v51  ;;  %5114 = vmatprep.mubr.f32.mxu1 %v7857_v51  ;;  %v6012_v41 = vpack.c.bf16 %v2867_v39, %v2866_v38  ;;  %v2850_v43 = vld [vmem:[#allocation39 + $0x30] sm:$0xff]  ;;  %v2851_v52 = vld [vmem:[#allocation39 + $0x38] sm:$0xff] }
 0x8d2   :  { %2473 = vmatmul.mubr.f32.gmra.mrb[38].mxu0 %v7834_v27  ;;  %5115 = vmatmul.mubr.f32.vlgmr.msra.gmra.mrb[44].mxu1 %v2331_v44  ;;  %v2333_v53 = vmax.f32 %v7860_v56, 0.0  ;;  %v6014_v47 = vpack.c.bf16 %v2851_v52, %v2850_v43  ;;  %v2881_v43 = vld [vmem:[#allocation39 + $0x128] sm:$0xff] }
 0x8d3   :  { %v7867_v50 = vmax.f32 %v2328_v46, 0.0  ;;  %2477 = vmatprep.mubr.f32.mxu0 %v7834_v27  ;;  %5971 = vmatpush3.bf16.msra.mxu1 %v7852_v42  ;;  %v2619_v42 = vld [vmem:[#allocation36 + $0xe0] sm:$0xff]  ;;  %v2869_v46 = vld [vmem:[#allocation39 + $0xc8] sm:$0xff] }
 0x8d4   :  { %5973 = vmatprep.subr.bf16.mxu1 %v5972_v45  ;;  %v5960_v62 = vpack.c.bf16 %v2620_v60, %v2619_v42 }
 0x8d5   :  { %5117 = vmatprep.mubr.f32.mxu1 %v7867_v50 }
 0x8d6   :  { %2478 = vmatmul.mubr.f32.gmra.mrb[40].mxu0 %v7834_v27  ;;  %5118 = vmatmul.mubr.f32.gmra.mrb[46].mxu1 %v2333_v53 }
 0x8d7   :  { %2482 = vmatprep.mubr.f32.mxu0 %v7867_v50  ;;  %5975 = vmatpush3.bf16.msra.mxu1 %v5972_v45  ;;  %v2868_v45 = vld [vmem:[#allocation39 + $0xc0] sm:$0xff] }
 0x8d8   :  { %5977 = vmatprep.subr.bf16.mxu1 %v5976_v54  ;;  %5961 = vmatprep.subr.bf16.mxu0 %v5960_v62  ;;  %v6016_v48 = vpack.c.bf16 %v2869_v46, %v2868_v45  ;;  %v2855_v62 = vld [vmem:[#allocation39 + $0x58] sm:$0xff] }
 0x8d9   :  { %5963 = vmatpush3.bf16.msra.mxu0 %v5962_v3  ;;  %v6022_v1 = vpack.c.bf16 %v2855_v62, %v2854_v61  ;;  %v2856_v3 = vld [vmem:[#allocation39 + $0x60] sm:$0xff] }
 0x8da   :  { %2483 = vmatmul.mubr.f32.gmra.mrb[42].mxu0 %v7834_v27  ;;  %5965 = vmatprep.subr.bf16.mxu0 %v5964_v9  ;;  %v2858_v9 = vld [vmem:[#allocation39 + $0x70] sm:$0xff] }
 0x8db   :  { %5979 = vmatpush3.bf16.msra.mxu1 %v5976_v54  ;;  %2710 = vmatprep.mubr.f32.mxu0 %v7834_v27  ;;  %v2852_v54 = vld [vmem:[#allocation39 + $0x40] sm:$0xff] }
 0x8dc   :  { %5981 = vmatprep.subr.bf16.mxu1 %v5980_v58  ;;  %v6018_v42 = vpack.c.bf16 %v2853_v55, %v2852_v54  ;;  %v3089_v54 = vld [vmem:[#allocation42] sm:$0xff]  ;;  %v3090_v55 = vld [vmem:[#allocation42 + $0x8] sm:$0xff] }
 0x8dd   :  { %5967 = vmatpush3.bf16.msra.mxu0 %v5966_v14  ;;  %v6064_v14 = vpack.c.bf16 %v3106_v12, %v3105_v11  ;;  %v6066_v61 = vpack.c.bf16 %v3090_v55, %v3089_v54  ;;  %v3095_v11 = vld [vmem:[#allocation42 + $0x30] sm:$0xff]  ;;  %v3096_v12 = vld [vmem:[#allocation42 + $0x38] sm:$0xff] }
 0x8de   :  { %6001 = vmatprep.subr.bf16.mxu0 %v6000_v24  ;;  %v2883_v54 = vld [vmem:[#allocation39 + $0x138] sm:$0xff] }
 0x8df   :  { %5983 = vmatpush3.bf16.msra.mxu1 %v5980_v58  ;;  %v2871_v58 = vld [vmem:[#allocation39 + $0xd8] sm:$0xff] }
 0x8e0   :  { %5985 = vmatprep.subr.bf16.mxu1 %v5984_v2  ;;  %2711 = vmatmul.mubr.f32.vlgmr.msra.gmra.mrb[44].mxu0 %v7834_v27  ;;  %v2865_v27 = vld [vmem:[#allocation39 + $0xa8] sm:$0xff]  ;;  %v6020_v60 = vpack.c.bf16 %v2871_v58, %v2870_v57  ;;  %v3107_v58 = vld [vmem:[#allocation42 + $0x90] sm:$0xff] }
 0x8e1   :  { %6003 = vmatpush3.bf16.msra.mxu0 %v6002_v31  ;;  %v6008_v35 = vpack.c.bf16 %v2865_v27, %v2864_v28  ;;  %v2878_v28 = vld [vmem:[#allocation39 + $0x110] sm:$0xff]  ;;  %v2879_v27 = vld [vmem:[#allocation39 + $0x118] sm:$0xff] }
 0x8e2   :  { %6005 = vmatprep.subr.bf16.mxu0 %v6004_v32  ;;  %v6036_v39 = vpack.c.bf16 %v2879_v27, %v2878_v28  ;;  %v3120_v28 = vld [vmem:[#allocation42 + $0xf8] sm:$0xff] }
 0x8e3   :  { %5987 = vmatpush3.bf16.msra.mxu1 %v5984_v2  ;;  %v6024_v2 = vpack.c.bf16 %v2873_v0, %v2872_v63  ;;  %v3091_v63 = vld [vmem:[#allocation42 + $0x10] sm:$0xff]  ;;  %v3092_v0 = vld [vmem:[#allocation42 + $0x18] sm:$0xff] }
 0x8e4   :  { %5989 = vmatprep.subr.bf16.mxu1 %v5988_v22  ;;  %v3324_v55 = vld [vmem:[#allocation45 + $0x30] sm:$0xff] }
 0x8e5   :  { %6007 = vmatpush3.bf16.msra.mxu0 %v6006_v33 }
 0x8e6   :  { %6009 = vmatprep.subr.bf16.mxu0 %v6008_v35 }
 0x8e7   :  { %5991 = vmatpush3.bf16.msra.mxu1 %v5988_v22  ;;  %v6030_v22 = vpack.c.bf16 %v2859_v10, %v2858_v9 }
 0x8e8   :  { %v4454_v4 = vpop.f32.mrb[36].mxu0  ;;  %5993 = vmatprep.subr.bf16.mxu1 %v5992_v59 }
 0x8e9   :  { %v4455_v8 = vpop.f32.mrb[37].mxu0  ;;  %6011 = vmatpush3.bf16.msra.mxu0 %v6010_v40 }
 0x8ea   :  { %v7879_v13 = vadd.f32 %v4455_v8, %v4454_v4  ;;  %6013 = vmatprep.subr.bf16.mxu0 %v6012_v41  ;;  %v2857_v4 = vld [vmem:[#allocation39 + $0x68] sm:$0xff]  ;;  %v6028_v8 = vpack.c.bf16 %v2875_v6, %v2874_v26  ;;  %v2880_v41 = vld [vmem:[#allocation39 + $0x120] sm:$0xff] }
 0x8eb   :  { %5995 = vmatpush3.bf16.msra.mxu1 %v5992_v59  ;;  %v6026_v7 = vpack.c.bf16 %v2857_v4, %v2856_v3  ;;  %v6032_v59 = vpack.c.bf16 %v2877_v17, %v2876_v16  ;;  %v6070_v3 = vpack.c.bf16 %v3092_v0, %v3091_v63  ;;  %v3093_v26 = vld [vmem:[#allocation42 + $0x20] sm:$0xff]  ;;  %v3094_v6 = vld [vmem:[#allocation42 + $0x28] sm:$0xff]  ;;  %v6078_v16 = vpack.c.bf16 %v3096_v12, %v3095_v11 }
 0x8ec   :  { %5997 = vmatprep.subr.bf16.mxu1 %v5996_v20  ;;  %v2470_v19 = vadd.f32 %v7879_v13, %v3989_v18  ;;  %v6074_v9 = vpack.c.bf16 %v3094_v6, %v3093_v26  ;;  %v3326_v63 = vld [vmem:[#allocation45 + $0x40] sm:$0xff]  ;;  %v2887_v26 = vld [vmem:[#allocation39 + $0x158] sm:$0xff] }
 0x8ed   :  { %6015 = vmatpush3.bf16.msra.mxu0 %v6014_v47  ;;  %v3328_v6 = vld [vmem:[#allocation45 + $0x50] sm:$0xff]  ;;  %v2889_v11 = vld [vmem:[#allocation39 + $0x168] sm:$0xff] }
 0x8ee   :  { %6017 = vmatprep.subr.bf16.mxu0 %v6016_v48  ;;  %v6040_v48 = vpack.c.bf16 %v2881_v43, %v2880_v41  ;;  %v3320_v41 = vld [vmem:[#allocation45 + $0x10] sm:$0xff]  ;;  %v3321_v43 = vld [vmem:[#allocation45 + $0x18] sm:$0xff]  ;;  %v3330_v12 = vld [vmem:[#allocation45 + $0x60] sm:$0xff] }
 0x8ef   :  { %5999 = vmatpush3.bf16.msra.mxu1 %v5996_v20 }
 0x8f0   :  { %6033 = vmatprep.subr.bf16.mxu1 %v6032_v59 }
 0x8f1   :  { %6019 = vmatpush3.bf16.msra.mxu0 %v6018_v42  ;;  %v3108_v42 = vld [vmem:[#allocation42 + $0x98] sm:$0xff] }
 0x8f2   :  { %6021 = vmatprep.subr.bf16.mxu0 %v6020_v60  ;;  %v6068_v62 = vpack.c.bf16 %v3108_v42, %v3107_v58  ;;  %v3325_v58 = vld [vmem:[#allocation45 + $0x38] sm:$0xff] }
 0x8f3   :  { %v6140_v42 = vpack.c.bf16 %v3325_v58, %v3324_v55 }
 0x8f5   :  { %6023 = vmatpush3.bf16.msra.mxu0 %v6022_v1  ;;  %v3109_v1 = vld [vmem:[#allocation42 + $0xa0] sm:$0xff] }
 0x8f6   :  { %6025 = vmatprep.subr.bf16.mxu0 %v6024_v2  ;;  %v3110_v2 = vld [vmem:[#allocation42 + $0xa8] sm:$0xff] }
 0x8f7   :  { %v6072_v4 = vpack.c.bf16 %v3110_v2, %v3109_v1  ;;  %v3327_v2 = vld [vmem:[#allocation45 + $0x48] sm:$0xff] }
 0x8f9   :  { %6027 = vmatpush3.bf16.msra.mxu0 %v6026_v7  ;;  %v3111_v7 = vld [vmem:[#allocation42 + $0xb0] sm:$0xff] }
 0x8fa   :  { %6029 = vmatprep.subr.bf16.mxu0 %v6028_v8  ;;  %v3112_v8 = vld [vmem:[#allocation42 + $0xb8] sm:$0xff] }
 0x8fb   :  { %v6076_v10 = vpack.c.bf16 %v3112_v8, %v3111_v7  ;;  %v3329_v8 = vld [vmem:[#allocation45 + $0x58] sm:$0xff] }
 0x8fd   :  { %6031 = vmatpush3.bf16.msra.mxu0 %v6030_v22  ;;  %v3113_v22 = vld [vmem:[#allocation42 + $0xc0] sm:$0xff] }
 0x8fe   :  { %6065 = vmatprep.subr.bf16.mxu0 %v6064_v14  ;;  %v3114_v14 = vld [vmem:[#allocation42 + $0xc8] sm:$0xff] }
 0x8ff   :  { %v6080_v17 = vpack.c.bf16 %v3114_v14, %v3113_v22  ;;  %v3331_v14 = vld [vmem:[#allocation45 + $0x68] sm:$0xff] }
 0x9a5   :  { %v4457_v20 = vpop.f32.mrb[38].mxu0  ;;  %v5116_v21 = vpop.f32.mrb[44].mxu1 }
 0x9a6   :  { %v4458_v23 = vpop.f32.mrb[39].mxu0  ;;  %v2554_v49 = vpop.f32.mrb[45].mxu1 }
 0x9a7   :  { %v4459_v24 = vadd.f32 %v4458_v23, %v4457_v20  ;;  %v2555_v25 = vadd.f32 %v2554_v49, %v2470_v19  ;;  %v3115_v19 = vld [vmem:[#allocation42 + $0xd0] sm:$0xff]  ;;  %v3116_v20 = vld [vmem:[#allocation42 + $0xd8] sm:$0xff] }
 0x9a8   :  { %v6084_v23 = vpack.c.bf16 %v3116_v20, %v3115_v19  ;;  %v3099_v49 = vld [vmem:[#allocation42 + $0x50] sm:$0xff]  ;;  %v3333_v20 = vld [vmem:[#allocation45 + $0x78] sm:$0xff] }
 0x9a9   :  { %v2475_v29 = vadd.f32 %v4459_v24, %v3989_v18  ;;  %v2573_v30 = vmax.f32 %v2555_v25, 0.0  ;;  %v4460_v31 = vpop.f32.mrb[40].mxu0  ;;  %v5119_v32 = vpop.f32.mrb[46].mxu1  ;;  %v3100_v24 = vld [vmem:[#allocation42 + $0x58] sm:$0xff]  ;;  %v3117_v25 = vld [vmem:[#allocation42 + $0xe0] sm:$0xff] }
 0x9aa   :  { %v4461_v5 = vpop.f32.mrb[41].mxu0  ;;  %v2564_v15 = vpop.f32.mrb[47].mxu1 }
 0x9ab   :  { %v2560_v33 = vadd.f32 %v5116_v21, %v2475_v29  ;;  %v4462_v35 = vadd.f32 %v4461_v5, %v4460_v31  ;;  %2715 = vmatprep.mubr.f32.mxu0 %v2573_v30  ;;  %5152 = vmatprep.mubr.f32.mxu1 %v2573_v30  ;;  %v3118_v29 = vld [vmem:[#allocation42 + $0xe8] sm:$0xff]  ;;  %v6086_v30 = vpack.c.bf16 %v3100_v24, %v3099_v49 }
 0x9ac   :  { %2716 = vmatmul.mubr.f32.gmra.mrb[46].mxu0 %v7883_v36  ;;  %v6088_v31 = vpack.c.bf16 %v3118_v29, %v3117_v25  ;;  %v3102_v5 = vld [vmem:[#allocation42 + $0x68] sm:$0xff]  ;;  %v3990_v29 = vld [vmem:[#allocation37] ss:$0 sm:$0xff] }
 0x9ad   :  { %v2574_v13 = vmax.f32 %v2560_v33, 0.0  ;;  %v2480_v37 = vadd.f32 %v4462_v35, %v3989_v18  ;;  %v4463_v38 = vpop.f32.mrb[42].mxu0  ;;  %2720 = vmatprep.mubr.f32.mxu0 %v7883_v36  ;;  %v3103_v35 = vld [vmem:[#allocation42 + $0x70] sm:$0xff]  ;;  %v3122_v49 = vld [vmem:[#allocation42 + $0x108] sm:$0xff] }
 0x9ae   :  { %v4464_v40 = vpop.f32.mrb[43].mxu0 }
 0x9af   :  { %v2565_v52 = vadd.f32 %v2564_v15, %v2480_v37  ;;  %v4465_v45 = vadd.f32 %v4464_v40, %v4463_v38  ;;  %5153 = vmatmul.mubr.f32.vlgmr.msra.gmra.mrb[48].mxu1 %v2574_v13  ;;  %v3119_v15 = vld [vmem:[#allocation42 + $0xf0] sm:$0xff]  ;;  %v3104_v13 = vld [vmem:[#allocation42 + $0x78] sm:$0xff]  ;;  %v3318_v37 = vld [vmem:[#allocation45] sm:$0xff] }
 0x9b0   :  { %2721 = vmatmul.mubr.f32.gmra.mrb[48].mxu0 %v7883_v36  ;;  %6035 = vmatpush3.bf16.msra.mxu1 %v6032_v59  ;;  %v3097_v59 = vld [vmem:[#allocation42 + $0x40] sm:$0xff]  ;;  %v6092_v33 = vpack.c.bf16 %v3120_v28, %v3119_v15  ;;  %v3319_v38 = vld [vmem:[#allocation45 + $0x8] sm:$0xff] }
 0x9b1   :  { %v2575_v46 = vmax.f32 %v2565_v52, 0.0  ;;  %v2485_v47 = vadd.f32 %v4465_v45, %v3989_v18  ;;  %6037 = vmatprep.subr.bf16.mxu1 %v6036_v39  ;;  %v3098_v18 = vld [vmem:[#allocation42 + $0x48] sm:$0xff]  ;;  %v6128_v40 = vpack.c.bf16 %v3319_v38, %v3318_v37  ;;  %v6132_v52 = vpack.c.bf16 %v3321_v43, %v3320_v41 }
 0x9b2   :  { %v6082_v21 = vpack.c.bf16 %v3098_v18, %v3097_v59  ;;  %v3322_v45 = vld [vmem:[#allocation45 + $0x20] sm:$0xff]  ;;  %v2891_v59 = vld [vmem:[#allocation39 + $0x178] sm:$0xff] }
 0x9b3   :  { %v2570_v57 = vadd.f32 %v5119_v32, %v2485_v47  ;;  %2725 = vmatprep.mubr.f32.mxu0 %v2575_v46  ;;  %5155 = vmatprep.mubr.f32.mxu1 %v2575_v46  ;;  %v3101_v32 = vld [vmem:[#allocation42 + $0x60] sm:$0xff]  ;;  %v3323_v46 = vld [vmem:[#allocation45 + $0x28] sm:$0xff]  ;;  %v3332_v18 = vld [vmem:[#allocation45 + $0x70] sm:$0xff] }
 0x9b4   :  { %2726 = vmatmul.mubr.f32.gmra.mrb[50].mxu0 %v7883_v36  ;;  %6039 = vmatpush3.bf16.msra.mxu1 %v6036_v39  ;;  %v6090_v27 = vpack.c.bf16 %v3102_v5, %v3101_v32  ;;  %v6094_v39 = vpack.c.bf16 %v3104_v13, %v3103_v35  ;;  %v6136_v47 = vpack.c.bf16 %v3323_v46, %v3322_v45  ;;  %v3123_v45 = vld [vmem:[#allocation42 + $0x110] sm:$0xff]  ;;  %v3124_v46 = vld [vmem:[#allocation42 + $0x118] sm:$0xff] }
 0x9b5   :  { %v2576_v60 = vmax.f32 %v2570_v57, 0.0  ;;  %2963 = vmatprep.mubr.f32.mxu0 %v7883_v36  ;;  %6041 = vmatprep.subr.bf16.mxu1 %v6040_v48 }
 0x9b7   :  { %5156 = vmatmul.mubr.f32.gmra.mrb[50].mxu1 %v2576_v60  ;;  %v4518_v60 = vpop.f32.mrb[44].mxu0 }
 0x9b8   :  { %2964 = vmatmul.mubr.f32.vlgmr.msra.gmra.mrb[52].mxu0 %v7883_v36  ;;  %6043 = vmatpush3.bf16.msra.mxu1 %v6040_v48  ;;  %v2882_v48 = vld [vmem:[#allocation39 + $0x130] sm:$0xff]  ;;  %v4519_v0 = vpop.f32.mrb[45].mxu0 }
 0x9b9   :  { %6067 = vmatpush3.bf16.msra.mxu0 %v6066_v61  ;;  %2968 = vmatprep.mubr.f32.mxu0 %v7883_v36  ;;  %v6044_v57 = vpack.c.bf16 %v2883_v54, %v2882_v48  ;;  %v2884_v61 = vld [vmem:[#allocation39 + $0x140] sm:$0xff] }
 0x9ba   :  { %6069 = vmatprep.subr.bf16.mxu0 %v6068_v62  ;;  %v2885_v62 = vld [vmem:[#allocation39 + $0x148] sm:$0xff] }
 0x9bb   :  { %6045 = vmatprep.subr.bf16.mxu1 %v6044_v57  ;;  %v6048_v1 = vpack.c.bf16 %v2885_v62, %v2884_v61  ;;  %v6100_v61 = vpack.c.bf16 %v3124_v46, %v3123_v45 }
 0x9bc   :  { %2969 = vmatmul.mubr.f32.gmra.mrb[54].mxu0 %v7883_v36  ;;  %6047 = vmatpush3.bf16.msra.mxu1 %v6044_v57 }
 0x9bd   :  { %6071 = vmatpush3.bf16.msra.mxu0 %v6070_v3  ;;  %2973 = vmatprep.mubr.f32.mxu0 %v7883_v36  ;;  %v4520_v3 = vadd.f32 %v4519_v0, %v4518_v60  ;;  %v3126_v0 = vld [vmem:[#allocation42 + $0x128] sm:$0xff] }
 0x9be   :  { %6073 = vmatprep.subr.bf16.mxu0 %v6072_v4  ;;  %v6144_v4 = vpack.c.bf16 %v3327_v2, %v3326_v63  ;;  %6049 = vmatprep.subr.bf16.mxu1 %v6048_v1 }
 0x9bf   :  { %v2713_v5 = vadd.f32 %v4520_v3, %v3990_v29 }
 0x9c0   :  { %2974 = vmatmul.mubr.f32.gmra.mrb[56].mxu0 %v7883_v36  ;;  %6051 = vmatpush3.bf16.msra.mxu1 %v6048_v1 }
 0x9c1   :  { %6075 = vmatpush3.bf16.msra.mxu0 %v6074_v9  ;;  %2978 = vmatprep.mubr.f32.mxu0 %v7883_v36  ;;  %v6148_v9 = vpack.c.bf16 %v3329_v8, %v3328_v6  ;;  %v3127_v6 = vld [vmem:[#allocation42 + $0x130] sm:$0xff] }
 0x9c2   :  { %6077 = vmatprep.subr.bf16.mxu0 %v6076_v10  ;;  %v2888_v10 = vld [vmem:[#allocation39 + $0x160] sm:$0xff] }
 0x9c3   :  { %v6056_v22 = vpack.c.bf16 %v2889_v11, %v2888_v10 }
 0x9c4   :  { %2979 = vmatmul.mubr.f32.gmra.mrb[58].mxu0 %v7883_v36 }
 0x9c5   :  { %6079 = vmatpush3.bf16.msra.mxu0 %v6078_v16  ;;  %3208 = vmatprep.mubr.f32.mxu0 %v7883_v36  ;;  %v6152_v16 = vpack.c.bf16 %v3331_v14, %v3330_v12 }
 0x9c6   :  { %6081 = vmatprep.subr.bf16.mxu0 %v6080_v17  ;;  %v2890_v17 = vld [vmem:[#allocation39 + $0x170] sm:$0xff] }
 0x9c7   :  { %v6060_v19 = vpack.c.bf16 %v2891_v59, %v2890_v17  ;;  %v3130_v17 = vld [vmem:[#allocation42 + $0x148] sm:$0xff] }
 0x9c9   :  { %6083 = vmatpush3.bf16.msra.mxu0 %v6082_v21  ;;  %v6156_v21 = vpack.c.bf16 %v3333_v20, %v3332_v18 }
 0x9ca   :  { %6085 = vmatprep.subr.bf16.mxu0 %v6084_v23  ;;  %v3121_v23 = vld [vmem:[#allocation42 + $0x100] sm:$0xff] }
 0x9cb   :  { %v6096_v24 = vpack.c.bf16 %v3122_v49, %v3121_v23 }
 0x9cd   :  { %6087 = vmatpush3.bf16.msra.mxu0 %v6086_v30 }
 0x9ce   :  { %6089 = vmatprep.subr.bf16.mxu0 %v6088_v31 }
 0x9d1   :  { %6091 = vmatpush3.bf16.msra.mxu0 %v6090_v27 }
 0x9d2   :  { %6093 = vmatprep.subr.bf16.mxu0 %v6092_v33 }
 0x9d5   :  { %6095 = vmatpush3.bf16.msra.mxu0 %v6094_v39 }
 0x9d6   :  { %6129 = vmatprep.subr.bf16.mxu0 %v6128_v40 }
 0x9d8   :  { %3209 = vmatmul.mubr.f32.vlgmr.msra.gmra.mrb[60].mxu0 %v7883_v36 }
 0x9d9   :  { %6131 = vmatpush3.bf16.msra.mxu0 %v6128_v40  ;;  %3213 = vmatprep.mubr.f32.mxu0 %v7883_v36 }
 0x9da   :  { %6133 = vmatprep.subr.bf16.mxu0 %v6132_v52 }
 0x9dc   :  { %3214 = vmatmul.mubr.f32.gmra.mrb[62].mxu0 %v7883_v36 }
 0x9dd   :  { %6135 = vmatpush3.bf16.msra.mxu0 %v6132_v52  ;;  %3218 = vmatprep.mubr.f32.mxu0 %v7883_v36 }
 0x9de   :  { %6137 = vmatprep.subr.bf16.mxu0 %v6136_v47 }
 0x9e0   :  { %3219 = vmatmul.mubr.f32.gmra.mrb[64].mxu0 %v7883_v36 }
 0x9e1   :  { %6139 = vmatpush3.bf16.msra.mxu0 %v6136_v47  ;;  %3223 = vmatprep.mubr.f32.mxu0 %v7883_v36 }
 0x9e2   :  { %6141 = vmatprep.subr.bf16.mxu0 %v6140_v42 }
 0x9e4   :  { %3224 = vmatmul.mubr.f32.gmra.mrb[66].mxu0 %v7883_v36  ;;  %v2886_v36 = vld [vmem:[#allocation39 + $0x150] sm:$0xff] }
 0x9e5   :  { %6143 = vmatpush3.bf16.msra.mxu0 %v6140_v42  ;;  %v6052_v7 = vpack.c.bf16 %v2887_v26, %v2886_v36 }
 0x9e6   :  { %6145 = vmatprep.subr.bf16.mxu0 %v6144_v4 }
 0x9e7   :  { %6053 = vmatprep.subr.bf16.mxu1 %v6052_v7 }
 0x9e8   :  { %6055 = vmatpush3.bf16.msra.mxu1 %v6052_v7  ;;  %v3128_v7 = vld [vmem:[#allocation42 + $0x138] sm:$0xff] }
 0x9e9   :  { %6147 = vmatpush3.bf16.msra.mxu0 %v6144_v4  ;;  %6057 = vmatprep.subr.bf16.mxu1 %v6056_v22 }
 0x9ea   :  { %6149 = vmatprep.subr.bf16.mxu0 %v6148_v9 }
 0x9ec   :  { %6059 = vmatpush3.bf16.msra.mxu1 %v6056_v22  ;;  %v6108_v22 = vpack.c.bf16 %v3128_v7, %v3127_v6  ;;  %v3448_v7 = vld [vmem:[#allocation48 + $0x30] sm:$0xff] }
 0x9ed   :  { %6151 = vmatpush3.bf16.msra.mxu0 %v6148_v9  ;;  %6061 = vmatprep.subr.bf16.mxu1 %v6060_v19 }
 0x9ee   :  { %6153 = vmatprep.subr.bf16.mxu0 %v6152_v16 }
 0x9f0   :  { %6063 = vmatpush3.bf16.msra.mxu1 %v6060_v19 }
 0x9f1   :  { %6155 = vmatpush3.bf16.msra.mxu0 %v6152_v16  ;;  %6097 = vmatprep.subr.bf16.mxu1 %v6096_v24  ;;  %v3129_v16 = vld [vmem:[#allocation42 + $0x140] sm:$0xff] }
 0x9f2   :  { %6157 = vmatprep.subr.bf16.mxu0 %v6156_v21  ;;  %v6112_v56 = vpack.c.bf16 %v3130_v17, %v3129_v16  ;;  %v3452_v16 = vld [vmem:[#allocation48 + $0x50] sm:$0xff]  ;;  %v3453_v17 = vld [vmem:[#allocation48 + $0x58] sm:$0xff] }
 0x9f5   :  { %6159 = vmatpush3.bf16.msra.mxu0 %v6156_v21 }
 0xa7f   :  { %v4521_v25 = vpop.f32.mrb[46].mxu0 }
 0xa80   :  { %v4522_v30 = vpop.f32.mrb[47].mxu0 }
 0xa81   :  { %v4523_v31 = vadd.f32 %v4522_v30, %v4521_v25 }
 0xa82   :  { %v5154_v32 = vpop.f32.mrb[48].mxu1 }
 0xa83   :  { %v2718_v15 = vadd.f32 %v4523_v31, %v3990_v29  ;;  %v2797_v28 = vpop.f32.mrb[49].mxu1  ;;  %v4524_v27 = vpop.f32.mrb[48].mxu0 }
 0xa84   :  { %v2798_v33 = vadd.f32 %v2797_v28, %v2713_v5  ;;  %v4525_v35 = vpop.f32.mrb[49].mxu0  ;;  %v3132_v28 = vld [vmem:[#allocation42 + $0x158] sm:$0xff] }
 0xa85   :  { %v2803_v13 = vadd.f32 %v5154_v32, %v2718_v15  ;;  %v4526_v37 = vadd.f32 %v4525_v35, %v4524_v27  ;;  %v3131_v15 = vld [vmem:[#allocation42 + $0x150] sm:$0xff]  ;;  %v3134_v35 = vld [vmem:[#allocation42 + $0x168] sm:$0xff] }
 0xa86   :  { %v2816_v38 = vmax.f32 %v2798_v33, 0.0  ;;  %v6116_v27 = vpack.c.bf16 %v3132_v28, %v3131_v15  ;;  %v3133_v33 = vld [vmem:[#allocation42 + $0x160] sm:$0xff] }
 0xa87   :  { %v2817_v39 = vmax.f32 %v2803_v13, 0.0  ;;  %v4527_v40 = vpop.f32.mrb[50].mxu0  ;;  %v2723_v52 = vadd.f32 %v4526_v37, %v3990_v29  ;;  %v6120_v13 = vpack.c.bf16 %v3134_v35, %v3133_v33  ;;  %v3135_v37 = vld [vmem:[#allocation42 + $0x170] sm:$0xff]  ;;  %v3557_v28 = vld [vmem:[#allocation51 + $0x18] sm:$0xff]  ;;  %v3558_v33 = vld [vmem:[#allocation51 + $0x20] sm:$0xff] }
 0xa88   :  { %v2820_v41 = vadd.f32 %v2816_v38, %v7857_v51  ;;  %v4528_v43 = vpop.f32.mrb[51].mxu0  ;;  %v3125_v51 = vld [vmem:[#allocation42 + $0x120] sm:$0xff]  ;;  %v3136_v38 = vld [vmem:[#allocation42 + $0x178] sm:$0xff]  ;;  %v3559_v35 = vld [vmem:[#allocation51 + $0x28] sm:$0xff] }
 0xa89   :  { %v2821_v47 = vadd.f32 %v2817_v39, %v2331_v44  ;;  %v4529_v48 = vadd.f32 %v4528_v43, %v4527_v40  ;;  %v6104_v4 = vpack.c.bf16 %v3126_v0, %v3125_v51  ;;  %v6124_v39 = vpack.c.bf16 %v3136_v38, %v3135_v37  ;;  %v3442_v40 = vld [vmem:[#allocation48] sm:$0xff]  ;;  %v3560_v37 = vld [vmem:[#allocation51 + $0x30] sm:$0xff] }
 0xa8a   :  { %v2824_v54 = vmax.f32 %v2820_v41, 0.0  ;;  %v5157_v55 = vpop.f32.mrb[50].mxu1  ;;  %v3443_v41 = vld [vmem:[#allocation48 + $0x8] sm:$0xff]  ;;  %v3561_v38 = vld [vmem:[#allocation51 + $0x38] sm:$0xff] }
 0xa8b   :  { %v2825_v57 = vmax.f32 %v2821_v47, 0.0  ;;  %v2728_v58 = vadd.f32 %v4529_v48, %v3990_v29  ;;  %v2807_v42 = vpop.f32.mrb[51].mxu1  ;;  %v4582_v60 = vpop.f32.mrb[52].mxu0  ;;  %v6160_v43 = vpack.c.bf16 %v3443_v41, %v3442_v40  ;;  %v3562_v40 = vld [vmem:[#allocation51 + $0x40] sm:$0xff]  ;;  %v3563_v41 = vld [vmem:[#allocation51 + $0x48] sm:$0xff] }
 0xa8c   :  { %v2808_v62 = vadd.f32 %v2807_v42, %v2723_v52  ;;  %5190 = vmatprep.mubr.f32.mxu1 %v2824_v54  ;;  %5266 = vmatprep.mubr.f32.mxu0 %v2824_v54  ;;  %v4583_v63 = vpop.f32.mrb[53].mxu0  ;;  %v3991_v52 = vld [vmem:[#allocation40] ss:$0 sm:$0xff]  ;;  %v3444_v42 = vld [vmem:[#allocation48 + $0x10] sm:$0xff] }
 0xa8d   :  { %v2813_v1 = vadd.f32 %v5157_v55, %v2728_v58  ;;  %5191 = vmatmul.mubr.f32.vlgmr.msra.gmra.mrb[52].mxu1 %v2825_v57  ;;  %5267 = vmatmul.mubr.f32.vlgmr.msra.gmra.mrb[68].mxu0 %v2825_v57  ;;  %v7908_v2 = vadd.f32 %v4583_v63, %v4582_v60  ;;  %v3445_v60 = vld [vmem:[#allocation48 + $0x18] sm:$0xff] }
 0xa8e   :  { %v2818_v34 = vmax.f32 %v2808_v62, 0.0  ;;  %6099 = vmatpush3.bf16.msra.mxu1 %v6096_v24  ;;  %v6164_v51 = vpack.c.bf16 %v3445_v60, %v3444_v42  ;;  %v3993_v60 = vld [vmem:[#allocation46] ss:$0 sm:$0xff] }
 0xa8f   :  { %v2819_v44 = vmax.f32 %v2813_v1, 0.0  ;;  %v4585_v3 = vpop.f32.mrb[54].mxu0  ;;  %6101 = vmatprep.subr.bf16.mxu1 %v6100_v61  ;;  %v2966_v48 = vadd.f32 %v7908_v2, %v3991_v52  ;;  %v3446_v1 = vld [vmem:[#allocation48 + $0x20] sm:$0xff] }
 0xa90   :  { %v2822_v36 = vadd.f32 %v2818_v34, %v7867_v50  ;;  %v4586_v26 = vpop.f32.mrb[55].mxu0  ;;  %v3447_v34 = vld [vmem:[#allocation48 + $0x28] sm:$0xff] }
 0xa91   :  { %v2823_v8 = vadd.f32 %v2819_v44, %v2333_v53  ;;  %v4587_v9 = vadd.f32 %v4586_v26, %v4585_v3  ;;  %v6168_v26 = vpack.c.bf16 %v3447_v34, %v3446_v1 }
 0xa92   :  { %v2826_v10 = vmax.f32 %v2822_v36, 0.0  ;;  %6103 = vmatpush3.bf16.msra.mxu1 %v6100_v61 }
 0xa93   :  { %v2827_v11 = vmax.f32 %v2823_v8, 0.0  ;;  %v4588_v12 = vpop.f32.mrb[56].mxu0  ;;  %6105 = vmatprep.subr.bf16.mxu1 %v6104_v4  ;;  %v2971_v45 = vadd.f32 %v4587_v9, %v3991_v52  ;;  %v3449_v8 = vld [vmem:[#allocation48 + $0x38] sm:$0xff] }
 0xa94   :  { %5193 = vmatprep.mubr.f32.mxu1 %v2826_v10  ;;  %5269 = vmatprep.mubr.f32.mxu0 %v2826_v10  ;;  %v4589_v14 = vpop.f32.mrb[57].mxu0 }
 0xa95   :  { %5194 = vmatmul.mubr.f32.gmra.mrb[54].mxu1 %v2827_v11  ;;  %5270 = vmatmul.mubr.f32.gmra.mrb[70].mxu0 %v2827_v11  ;;  %v4590_v50 = vadd.f32 %v4589_v14, %v4588_v12  ;;  %v6172_v11 = vpack.c.bf16 %v3449_v8, %v3448_v7  ;;  %v3450_v12 = vld [vmem:[#allocation48 + $0x40] sm:$0xff] }
 0xa96   :  { %6107 = vmatpush3.bf16.msra.mxu1 %v6104_v4  ;;  %v3665_v7 = vld [vmem:[#allocation54 + $0x18] sm:$0xff] }
 0xa97   :  { %v4591_v59 = vpop.f32.mrb[58].mxu0  ;;  %6109 = vmatprep.subr.bf16.mxu1 %v6108_v22  ;;  %v2976_v0 = vadd.f32 %v4590_v50, %v3991_v52  ;;  %v6180_v50 = vpack.c.bf16 %v3453_v17, %v3452_v16 }
 0xa98   :  { %v4592_v53 = vpop.f32.mrb[59].mxu0 }
 0xa99   :  { %v4593_v18 = vadd.f32 %v4592_v53, %v4591_v59  ;;  %v3454_v59 = vld [vmem:[#allocation48 + $0x60] sm:$0xff] }
 0xa9a   :  { %6111 = vmatpush3.bf16.msra.mxu1 %v6108_v22  ;;  %v3451_v22 = vld [vmem:[#allocation48 + $0x48] sm:$0xff] }
 0xa9b   :  { %6113 = vmatprep.subr.bf16.mxu1 %v6112_v56  ;;  %v2981_v63 = vadd.f32 %v4593_v18, %v3991_v52  ;;  %v6176_v14 = vpack.c.bf16 %v3451_v22, %v3450_v12  ;;  %v3456_v18 = vld [vmem:[#allocation48 + $0x70] sm:$0xff] }
 0xa9c   :  { %v3564_v52 = vld [vmem:[#allocation51 + $0x50] sm:$0xff] }
 0xa9e   :  { %6115 = vmatpush3.bf16.msra.mxu1 %v6112_v56  ;;  %v3455_v56 = vld [vmem:[#allocation48 + $0x68] sm:$0xff] }
 0xa9f   :  { %6117 = vmatprep.subr.bf16.mxu1 %v6116_v27  ;;  %v6184_v53 = vpack.c.bf16 %v3455_v56, %v3454_v59 }
 0xaa2   :  { %6119 = vmatpush3.bf16.msra.mxu1 %v6116_v27 }
 0xaa3   :  { %6121 = vmatprep.subr.bf16.mxu1 %v6120_v13 }
 0xaa6   :  { %6123 = vmatpush3.bf16.msra.mxu1 %v6120_v13  ;;  %v6200_v13 = vpack.c.bf16 %v3559_v35, %v3558_v33  ;;  %v3677_v33 = vld [vmem:[#allocation54 + $0x78] sm:$0xff] }
 0xaa7   :  { %6125 = vmatprep.subr.bf16.mxu1 %v6124_v39 }
 0xaaa   :  { %6127 = vmatpush3.bf16.msra.mxu1 %v6124_v39  ;;  %v6204_v39 = vpack.c.bf16 %v3561_v38, %v3560_v37  ;;  %v3569_v37 = vld [vmem:[#allocation51 + $0x78] sm:$0xff] }
 0xaab   :  { %v4646_v19 = vpop.f32.mrb[60].mxu0  ;;  %6161 = vmatprep.subr.bf16.mxu1 %v6160_v43 }
 0xaac   :  { %v4647_v20 = vpop.f32.mrb[61].mxu0 }
 0xaad   :  { %v7913_v21 = vadd.f32 %v4647_v20, %v4646_v19  ;;  %v3457_v19 = vld [vmem:[#allocation48 + $0x78] sm:$0xff] }
 0xaae   :  { %v6188_v20 = vpack.c.bf16 %v3457_v19, %v3456_v18  ;;  %v3669_v18 = vld [vmem:[#allocation54 + $0x38] sm:$0xff] }
 0xaaf   :  { %v4649_v23 = vpop.f32.mrb[62].mxu0 }
 0xab0   :  { %v4650_v49 = vpop.f32.mrb[63].mxu0 }
 0xab1   :  { %v7915_v24 = vadd.f32 %v4650_v49, %v4649_v23  ;;  %v3662_v23 = vld [vmem:[#allocation54] sm:$0xff]  ;;  %v3663_v49 = vld [vmem:[#allocation54 + $0x8] sm:$0xff] }
 0xab3   :  { %v4652_v25 = vpop.f32.mrb[64].mxu0 }
 0xab4   :  { %v4653_v29 = vpop.f32.mrb[65].mxu0 }
 0xab5   :  { %v7917_v30 = vadd.f32 %v4653_v29, %v4652_v25  ;;  %v7930_v25 = vpack.c.bf16 %v3663_v49, %v3662_v23  ;;  %v3554_v29 = vld [vmem:[#allocation51] sm:$0xff]  ;;  %v3671_v49 = vld [vmem:[#allocation54 + $0x48] sm:$0xff] }
 0xab7   :  { %v4655_v31 = vpop.f32.mrb[66].mxu0 }
 0xab8   :  { %v4656_v32 = vpop.f32.mrb[67].mxu0 }
 0xab9   :  { %v7919_v5 = vadd.f32 %v4656_v32, %v4655_v31  ;;  %v3555_v31 = vld [vmem:[#allocation51 + $0x8] sm:$0xff]  ;;  %v3556_v32 = vld [vmem:[#allocation51 + $0x10] sm:$0xff] }
 0xaba   :  { %v6192_v15 = vpack.c.bf16 %v3555_v31, %v3554_v29  ;;  %v6196_v27 = vpack.c.bf16 %v3557_v28, %v3556_v32  ;;  %v3673_v29 = vld [vmem:[#allocation54 + $0x58] sm:$0xff]  ;;  %v3674_v32 = vld [vmem:[#allocation54 + $0x60] sm:$0xff] }
 0xabc   :  { %6193 = vmatprep.subr.bf16.mxu0 %v6192_v15 }
 0xabd   :  { %6195 = vmatpush3.bf16.msra.mxu0 %v6192_v15  ;;  %v3675_v15 = vld [vmem:[#allocation54 + $0x68] sm:$0xff] }
 0xabe   :  { %6197 = vmatprep.subr.bf16.mxu0 %v6196_v27  ;;  %v6248_v28 = vpack.c.bf16 %v3675_v15, %v3674_v32 }
 0xac1   :  { %6199 = vmatpush3.bf16.msra.mxu0 %v6196_v27  ;;  %v3676_v27 = vld [vmem:[#allocation54 + $0x70] sm:$0xff] }
 0xac2   :  { %6201 = vmatprep.subr.bf16.mxu0 %v6200_v13  ;;  %v6252_v35 = vpack.c.bf16 %v3677_v33, %v3676_v27 }
 0xac5   :  { %6203 = vmatpush3.bf16.msra.mxu0 %v6200_v13  ;;  %v3568_v13 = vld [vmem:[#allocation51 + $0x70] sm:$0xff] }
 0xac6   :  { %6205 = vmatprep.subr.bf16.mxu0 %v6204_v39  ;;  %v6220_v38 = vpack.c.bf16 %v3569_v37, %v3568_v13 }
 0xac9   :  { %6207 = vmatpush3.bf16.msra.mxu0 %v6204_v39  ;;  %v3774_v39 = vld [vmem:[#allocation57] sm:$0xff] }
 0xb60   :  { %v5192_v46 = vpop.f32.mrb[52].mxu1  ;;  %v7921_v47 = vpop.f32.mrb[68].mxu0 }
 0xb61   :  { %v3056_v54 = vadd.f32 %v5192_v46, %v2971_v45  ;;  %v3050_v55 = vpop.f32.mrb[53].mxu1  ;;  %v7924_v57 = vpop.f32.mrb[69].mxu0  ;;  %v3565_v45 = vld [vmem:[#allocation51 + $0x58] sm:$0xff]  ;;  %v3413_v1 = vadd.f32 %v7921_v47, %v3993_v60 }
 0xb62   :  { %v3051_v58 = vadd.f32 %v3050_v55, %v2966_v48  ;;  %v6212_v46 = vpack.c.bf16 %v3565_v45, %v3564_v52  ;;  %v3566_v48 = vld [vmem:[#allocation51 + $0x60] sm:$0xff] }
 0xb63   :  { %v3070_v61 = vmax.f32 %v3056_v54, 0.0  ;;  %v3567_v54 = vld [vmem:[#allocation51 + $0x68] sm:$0xff]  ;;  %v3777_v52 = vld [vmem:[#allocation57 + $0x18] sm:$0xff] }
 0xb64   :  { %v3069_v62 = vmax.f32 %v3051_v58, 0.0  ;;  %v6216_v55 = vpack.c.bf16 %v3567_v54, %v3566_v48  ;;  %v3992_v58 = vld [vmem:[#allocation43] ss:$0 sm:$0xff]  ;;  %v3779_v48 = vld [vmem:[#allocation57 + $0x28] sm:$0xff] }
 0xb65   :  { %3074 = vst [vmem:[#allocation3 + $0x28] sm:$0xff] %v3070_v61  ;;  %v3216_v42 = vadd.f32 %v7915_v24, %v3992_v58  ;;  %v3226_v24 = vadd.f32 %v7919_v5, %v3992_v58 }
 0xb66   :  { %3073 = vst [vmem:[#allocation3 + $0x20] sm:$0xff] %v3069_v62  ;;  %5228 = vmatprep.mubr.f32.mxu1 %v3069_v62  ;;  %v3211_v62 = vadd.f32 %v7913_v21, %v3992_v58  ;;  %v3221_v21 = vadd.f32 %v7917_v30, %v3992_v58  ;;  %v3781_v58 = vld [vmem:[#allocation57 + $0x38] sm:$0xff] }
 0xb67   :  { %5229 = vmatmul.mubr.f32.vlgmr.msra.gmra.mrb[56].mxu1 %v3070_v61 }
 0xb68   :  { %v5195_v44 = vpop.f32.mrb[54].mxu1  ;;  %v7926_v2 = vpop.f32.mrb[70].mxu0  ;;  %6163 = vmatpush3.bf16.msra.mxu1 %v6160_v43  ;;  %v6208_v43 = vpack.c.bf16 %v3563_v41, %v3562_v40  ;;  %v3775_v40 = vld [vmem:[#allocation57 + $0x8] sm:$0xff] }
 0xb69   :  { %v3066_v3 = vadd.f32 %v5195_v44, %v2981_v63  ;;  %v3060_v4 = vpop.f32.mrb[55].mxu1  ;;  %v7928_v36 = vpop.f32.mrb[71].mxu0  ;;  %6165 = vmatprep.subr.bf16.mxu1 %v6164_v51  ;;  %v3408_v44 = vadd.f32 %v3993_v60, %v7924_v57  ;;  %v3666_v57 = vld [vmem:[#allocation54 + $0x20] sm:$0xff]  ;;  %v3423_v16 = vadd.f32 %v7926_v2, %v3993_v60  ;;  %v6256_v41 = vpack.c.bf16 %v3775_v40, %v3774_v39 }
 0xb6a   :  { %v3061_v6 = vadd.f32 %v3060_v4, %v2976_v0  ;;  %6209 = vmatprep.subr.bf16.mxu0 %v6208_v43  ;;  %v3670_v2 = vld [vmem:[#allocation54 + $0x40] sm:$0xff] }
 0xb6b   :  { %v3072_v9 = vmax.f32 %v3066_v3, 0.0  ;;  %6211 = vmatpush3.bf16.msra.mxu0 %v6208_v43  ;;  %v3776_v43 = vld [vmem:[#allocation57 + $0x10] sm:$0xff] }
 0xb6c   :  { %v3071_v10 = vmax.f32 %v3061_v6, 0.0  ;;  %6167 = vmatpush3.bf16.msra.mxu1 %v6164_v51  ;;  %6213 = vmatprep.subr.bf16.mxu0 %v6212_v46  ;;  %v3664_v6 = vld [vmem:[#allocation54 + $0x10] sm:$0xff]  ;;  %v6260_v45 = vpack.c.bf16 %v3777_v52, %v3776_v43 }
 0xb6d   :  { %3076 = vst [vmem:[#allocation3 + $0x58] sm:$0xff] %v3072_v9  ;;  %6169 = vmatprep.subr.bf16.mxu1 %v6168_v26  ;;  %v6228_v22 = vpack.c.bf16 %v3665_v7, %v3664_v6  ;;  %v3994_v6 = vld [vmem:[#allocation49] ss:$0 sm:$0xff] }
 0xb6e   :  { %3075 = vst [vmem:[#allocation3 + $0x50] sm:$0xff] %v3071_v10  ;;  %5231 = vmatprep.mubr.f32.mxu1 %v3071_v10 }
 0xb6f   :  { %5232 = vmatmul.mubr.f32.gmra.mrb[58].mxu1 %v3072_v9  ;;  %6215 = vmatpush3.bf16.msra.mxu0 %v6212_v46  ;;  %v3778_v46 = vld [vmem:[#allocation57 + $0x20] sm:$0xff] }
 0xb70   :  { %6171 = vmatpush3.bf16.msra.mxu1 %v6168_v26  ;;  %6217 = vmatprep.subr.bf16.mxu0 %v6216_v55  ;;  %v6264_v54 = vpack.c.bf16 %v3779_v48, %v3778_v46  ;;  %v3995_v48 = vld [vmem:[#allocation52] ss:$0 sm:$0xff] }
 0xb71   :  { %6173 = vmatprep.subr.bf16.mxu1 %v6172_v11 }
 0xb73   :  { %6219 = vmatpush3.bf16.msra.mxu0 %v6216_v55  ;;  %v3780_v55 = vld [vmem:[#allocation57 + $0x30] sm:$0xff] }
 0xb74   :  { %6175 = vmatpush3.bf16.msra.mxu1 %v6172_v11  ;;  %6221 = vmatprep.subr.bf16.mxu0 %v6220_v38 }
 0xb75   :  { %6177 = vmatprep.subr.bf16.mxu1 %v6176_v14 }
 0xb77   :  { %6223 = vmatpush3.bf16.msra.mxu0 %v6220_v38 }
 0xb78   :  { %6179 = vmatpush3.bf16.msra.mxu1 %v6176_v14  ;;  %v3667_v14 = vld [vmem:[#allocation54 + $0x28] sm:$0xff]  ;;  %6257 = vmatprep.subr.bf16.mxu0 %v6256_v41 }
 0xb79   :  { %6181 = vmatprep.subr.bf16.mxu1 %v6180_v50  ;;  %v6232_v30 = vpack.c.bf16 %v3667_v14, %v3666_v57 }
 0xb7c   :  { %6183 = vmatpush3.bf16.msra.mxu1 %v6180_v50  ;;  %v3418_v50 = vadd.f32 %v3993_v60, %v7928_v36  ;;  %v6240_v36 = vpack.c.bf16 %v3671_v49, %v3670_v2  ;;  %v3782_v60 = vld [vmem:[#allocation57 + $0x40] sm:$0xff] }
 0xb7d   :  { %6185 = vmatprep.subr.bf16.mxu1 %v6184_v53 }
 0xb80   :  { %6187 = vmatpush3.bf16.msra.mxu1 %v6184_v53  ;;  %v3668_v53 = vld [vmem:[#allocation54 + $0x30] sm:$0xff] }
 0xb81   :  { %6189 = vmatprep.subr.bf16.mxu1 %v6188_v20  ;;  %v6236_v23 = vpack.c.bf16 %v3669_v18, %v3668_v53 }
 0xb84   :  { %6191 = vmatpush3.bf16.msra.mxu1 %v6188_v20 }
 0xb85   :  { %6225 = vmatprep.subr.bf16.mxu1 %v7930_v25 }
 0xc3a   :  { %v5230_v61 = vpop.f32.mrb[56].mxu1 }
 0xc3b   :  { %v3301_v63 = vadd.f32 %v5230_v61, %v3216_v42  ;;  %v3295_v51 = vpop.f32.mrb[57].mxu1  ;;  %v6268_v42 = vpack.c.bf16 %v3781_v58, %v3780_v55  ;;  %v3783_v61 = vld [vmem:[#allocation57 + $0x48] sm:$0xff]  ;;  %v3882_v55 = vld [vmem:[#allocation7] sm:$0xff] }
 0xc3c   :  { %v3296_v0 = vadd.f32 %v3295_v51, %v3211_v62  ;;  %v6272_v62 = vpack.c.bf16 %v3783_v61, %v3782_v60  ;;  %v3785_v51 = vld [vmem:[#allocation57 + $0x58] sm:$0xff] }
 0xc3d   :  { %v3315_v34 = vmax.f32 %v3301_v63, 0.0  ;;  %v3784_v63 = vld [vmem:[#allocation57 + $0x50] sm:$0xff] }
 0xc3e   :  { %v3314_v3 = vmax.f32 %v3296_v0, 0.0  ;;  %v6276_v0 = vpack.c.bf16 %v3785_v51, %v3784_v63  ;;  %v3885_v63 = vld [vmem:[#allocation7 + $0x18] sm:$0xff] }
 0xc3f   :  { %v3427_v4 = vadd.f32 %v3413_v1, %v3315_v34  ;;  %v3786_v1 = vld [vmem:[#allocation57 + $0x60] sm:$0xff]  ;;  %v3787_v34 = vld [vmem:[#allocation57 + $0x68] sm:$0xff] }
 0xc40   :  { %v3426_v26 = vadd.f32 %v3408_v44, %v3314_v3  ;;  %v6280_v44 = vpack.c.bf16 %v3787_v34, %v3786_v1  ;;  %v3788_v3 = vld [vmem:[#allocation57 + $0x70] sm:$0xff] }
 0xc41   :  { %v3431_v8 = vmax.f32 %v3427_v4, 0.0  ;;  %v3789_v4 = vld [vmem:[#allocation57 + $0x78] sm:$0xff] }
 0xc42   :  { %v3430_v9 = vmax.f32 %v3426_v26, 0.0  ;;  %v5233_v10 = vpop.f32.mrb[58].mxu1  ;;  %v6284_v26 = vpack.c.bf16 %v3789_v4, %v3788_v3 }
 0xc43   :  { %3435 = vst [vmem:[#allocation2 + $0x28] sm:$0xff] %v3431_v8  ;;  %v3311_v11 = vadd.f32 %v5233_v10, %v3226_v24  ;;  %v3305_v12 = vpop.f32.mrb[59].mxu1 }
 0xc44   :  { %3434 = vst [vmem:[#allocation2 + $0x20] sm:$0xff] %v3430_v9  ;;  %v3306_v47 = vadd.f32 %v3305_v12, %v3221_v21  ;;  %5304 = vmatprep.mubr.f32.mxu1 %v3430_v9 }
 0xc45   :  { %v3317_v17 = vmax.f32 %v3311_v11, 0.0  ;;  %5305 = vmatmul.mubr.f32.vlgmr.msra.gmra.mrb[60].mxu1 %v3431_v8 }
 0xc46   :  { %v3316_v5 = vmax.f32 %v3306_v47, 0.0  ;;  %6227 = vmatpush3.bf16.msra.mxu1 %v7930_v25  ;;  %v3672_v25 = vld [vmem:[#allocation54 + $0x50] sm:$0xff] }
 0xc47   :  { %v3429_v59 = vadd.f32 %v3423_v16, %v3317_v17  ;;  %6229 = vmatprep.subr.bf16.mxu1 %v6228_v22  ;;  %v6244_v31 = vpack.c.bf16 %v3673_v29, %v3672_v25  ;;  %v3996_v16 = vld [vmem:[#allocation55] ss:$0 sm:$0xff] }
 0xc48   :  { %v3428_v56 = vadd.f32 %v3418_v50, %v3316_v5 }
 0xc49   :  { %v3433_v19 = vmax.f32 %v3429_v59, 0.0 }
 0xc4a   :  { %v3432_v20 = vmax.f32 %v3428_v56, 0.0  ;;  %6231 = vmatpush3.bf16.msra.mxu1 %v6228_v22 }
 0xc4b   :  { %3437 = vst [vmem:[#allocation2 + $0x58] sm:$0xff] %v3433_v19  ;;  %6233 = vmatprep.subr.bf16.mxu1 %v6232_v30 }
 0xc4c   :  { %3436 = vst [vmem:[#allocation2 + $0x50] sm:$0xff] %v3432_v20  ;;  %5307 = vmatprep.mubr.f32.mxu1 %v3432_v20 }
 0xc4d   :  { %5308 = vmatmul.mubr.f32.gmra.mrb[62].mxu1 %v3433_v19 }
 0xc4e   :  { %6235 = vmatpush3.bf16.msra.mxu1 %v6232_v30  ;;  %5380 = vmatprep.mubr.f32.mxu1 %v3430_v9 }
 0xc4f   :  { %6237 = vmatprep.subr.bf16.mxu1 %v6236_v23 }
 0xc52   :  { %6239 = vmatpush3.bf16.msra.mxu1 %v6236_v23 }
 0xc53   :  { %6241 = vmatprep.subr.bf16.mxu1 %v6240_v36 }
 0xc56   :  { %6243 = vmatpush3.bf16.msra.mxu1 %v6240_v36 }
 0xc57   :  { %6245 = vmatprep.subr.bf16.mxu1 %v6244_v31 }
 0xc5a   :  { %6247 = vmatpush3.bf16.msra.mxu1 %v6244_v31  ;;  %v3997_v31 = vld [vmem:[#allocation58] ss:$0 sm:$0xff] }
 0xc5b   :  { %6249 = vmatprep.subr.bf16.mxu1 %v6248_v28 }
 0xc5e   :  { %6251 = vmatpush3.bf16.msra.mxu1 %v6248_v28 }
 0xc5f   :  { %6253 = vmatprep.subr.bf16.mxu1 %v6252_v35 }
 0xc62   :  { %6255 = vmatpush3.bf16.msra.mxu1 %v6252_v35 }
 0xc63   :  { %6288 = vmatprep.subr.bf16.mxu1 %v6256_v41 }
 0xc65   :  { %5381 = vmatmul.mubr.f32.vlgmr.msra.gmra.mrb[64].mxu1 %v3431_v8 }
 0xc66   :  { %5383 = vmatprep.mubr.f32.mxu1 %v3432_v20  ;;  %6296 = vmatpush3.bf16.msra.mxu1 %v6256_v41 }
 0xc67   :  { %6289 = vmatprep.subr.bf16.mxu1 %v6260_v45 }
 0xc69   :  { %5384 = vmatmul.mubr.f32.gmra.mrb[66].mxu1 %v3433_v19 }
 0xc6a   :  { %6297 = vmatpush3.bf16.msra.mxu1 %v6260_v45 }
 0xc6b   :  { %6290 = vmatprep.subr.bf16.mxu1 %v6264_v54 }
 0xc6e   :  { %6298 = vmatpush3.bf16.msra.mxu1 %v6264_v54 }
 0xc6f   :  { %6291 = vmatprep.subr.bf16.mxu1 %v6268_v42 }
 0xc72   :  { %6299 = vmatpush3.bf16.msra.mxu1 %v6268_v42 }
 0xc73   :  { %6292 = vmatprep.subr.bf16.mxu1 %v6272_v62 }
 0xc76   :  { %6300 = vmatpush3.bf16.msra.mxu1 %v6272_v62 }
 0xc77   :  { %6293 = vmatprep.subr.bf16.mxu1 %v6276_v0 }
 0xc7a   :  { %6301 = vmatpush3.bf16.msra.mxu1 %v6276_v0 }
 0xc7b   :  { %6294 = vmatprep.subr.bf16.mxu1 %v6280_v44 }
 0xc7e   :  { %6302 = vmatpush3.bf16.msra.mxu1 %v6280_v44 }
 0xc7f   :  { %6295 = vmatprep.subr.bf16.mxu1 %v6284_v26 }
 0xc82   :  { %6303 = vmatpush3.bf16.msra.mxu1 %v6284_v26 }
 0xd18   :  { %v5306_v7 = vpop.f32.mrb[60].mxu1 }
 0xd19   :  { %v3537_v8 = vadd.f32 %v5306_v7, %v3994_v6  ;;  %v3531_v24 = vpop.f32.mrb[61].mxu1 }
 0xd1a   :  { %v3532_v9 = vadd.f32 %v3994_v6, %v3531_v24 }
 0xd1b   :  { %v3551_v21 = vmax.f32 %v3537_v8, 0.0 }
 0xd1c   :  { %v3550_v10 = vmax.f32 %v3532_v9, 0.0 }
 0xd1e   :  { %5342 = vmatprep.mubr.f32.mxu0 %v3550_v10 }
 0xd1f   :  { %5343 = vmatmul.mubr.f32.vlgmr.msra.gmra.mrb[72].mxu0 %v3551_v21 }
 0xd20   :  { %6259 = vmatpush3.bf16.msra.mxu0 %v6256_v41  ;;  %v5309_v11 = vpop.f32.mrb[62].mxu1 }
 0xd21   :  { %v3547_v12 = vadd.f32 %v5309_v11, %v3994_v6  ;;  %v3541_v22 = vpop.f32.mrb[63].mxu1  ;;  %6261 = vmatprep.subr.bf16.mxu0 %v6260_v45 }
 0xd22   :  { %v3542_v47 = vadd.f32 %v3994_v6, %v3541_v22 }
 0xd23   :  { %v3553_v14 = vmax.f32 %v3547_v12, 0.0 }
 0xd24   :  { %v3552_v57 = vmax.f32 %v3542_v47, 0.0  ;;  %6263 = vmatpush3.bf16.msra.mxu0 %v6260_v45 }
 0xd25   :  { %6265 = vmatprep.subr.bf16.mxu0 %v6264_v54 }
 0xd26   :  { %5345 = vmatprep.mubr.f32.mxu0 %v3552_v57 }
 0xd27   :  { %5346 = vmatmul.mubr.f32.gmra.mrb[74].mxu0 %v3553_v14 }
 0xd28   :  { %6267 = vmatpush3.bf16.msra.mxu0 %v6264_v54  ;;  %v3883_v54 = vld [vmem:[#allocation7 + $0x8] sm:$0xff] }
 0xd29   :  { %6269 = vmatprep.subr.bf16.mxu0 %v6268_v42 }
 0xd2c   :  { %6271 = vmatpush3.bf16.msra.mxu0 %v6268_v42 }
 0xd2d   :  { %6273 = vmatprep.subr.bf16.mxu0 %v6272_v62 }
 0xd30   :  { %6275 = vmatpush3.bf16.msra.mxu0 %v6272_v62 }
 0xd31   :  { %6277 = vmatprep.subr.bf16.mxu0 %v6276_v0 }
 0xd34   :  { %6279 = vmatpush3.bf16.msra.mxu0 %v6276_v0  ;;  %v3884_v0 = vld [vmem:[#allocation7 + $0x10] sm:$0xff] }
 0xd35   :  { %6281 = vmatprep.subr.bf16.mxu0 %v6280_v44 }
 0xd38   :  { %v5382_v17 = vpop.f32.mrb[64].mxu1  ;;  %6283 = vmatpush3.bf16.msra.mxu0 %v6280_v44 }
 0xd39   :  { %v3757_v50 = vadd.f32 %v5382_v17, %v3996_v16  ;;  %v3751_v5 = vpop.f32.mrb[65].mxu1  ;;  %6285 = vmatprep.subr.bf16.mxu0 %v6284_v26 }
 0xd3a   :  { %v3752_v59 = vadd.f32 %v3996_v16, %v3751_v5 }
 0xd3b   :  { %v3771_v53 = vmax.f32 %v3757_v50, 0.0 }
 0xd3c   :  { %v3770_v30 = vmax.f32 %v3752_v59, 0.0  ;;  %v5385_v56 = vpop.f32.mrb[66].mxu1  ;;  %6287 = vmatpush3.bf16.msra.mxu0 %v6284_v26 }
 0xd3d   :  { %v3767_v18 = vadd.f32 %v5385_v56, %v3996_v16  ;;  %v3761_v19 = vpop.f32.mrb[67].mxu1 }
 0xd3e   :  { %v3762_v20 = vadd.f32 %v3996_v16, %v3761_v19  ;;  %5418 = vmatprep.mubr.f32.mxu0 %v3770_v30 }
 0xd3f   :  { %5419 = vmatmul.mubr.f32.vlgmr.msra.gmra.mrb[76].mxu0 %v3771_v53  ;;  %v3773_v2 = vmax.f32 %v3767_v18, 0.0 }
 0xd40   :  { %v3772_v23 = vmax.f32 %v3762_v20, 0.0 }
 0xd42   :  { %5421 = vmatprep.mubr.f32.mxu1 %v3772_v23 }
 0xd43   :  { %5422 = vmatmul.mubr.f32.vlgmr.msra.gmra.mrb[68].mxu1 %v3773_v2 }
 0xdf2   :  { %v5344_v49 = vpop.f32.mrb[72].mxu0 }
 0xdf3   :  { %v3643_v36 = vpop.f32.mrb[73].mxu0  ;;  %v3649_v60 = vadd.f32 %v5344_v49, %v3995_v48 }
 0xdf4   :  { %v3644_v62 = vadd.f32 %v3995_v48, %v3643_v36 }
 0xdfa   :  { %v5347_v25 = vpop.f32.mrb[74].mxu0 }
 0xdfb   :  { %v3653_v29 = vpop.f32.mrb[75].mxu0  ;;  %v3659_v4 = vadd.f32 %v5347_v25, %v3995_v48 }
 0xdfc   :  { %v3654_v6 = vadd.f32 %v3995_v48, %v3653_v29 }
 0xe12   :  { %v5420_v32 = vpop.f32.mrb[76].mxu0 }
 0xe13   :  { %v3869_v15 = vadd.f32 %v5420_v32, %v3997_v31  ;;  %v3863_v28 = vpop.f32.mrb[77].mxu0 }
 0xe14   :  { %v3864_v27 = vadd.f32 %v3997_v31, %v3863_v28 }
 0xe15   :  { %v3887_v33 = vmul.f32 0.5, %v3869_v15 }
 0xe16   :  { %v3886_v35 = vmul.f32 0.5, %v3864_v27  ;;  %v5423_v13 = vpop.f32.mrb[68].mxu1 }
 0xe17   :  { %v3892_v37 = vmul.f32 1.442695, %v3887_v33  ;;  %v3879_v38 = vadd.f32 %v5423_v13, %v3997_v31  ;;  %v3873_v39 = vpop.f32.mrb[69].mxu1 }
 0xe18   :  { %v3890_v40 = vmul.f32 1.442695, %v3886_v35  ;;  %v3874_v41 = vadd.f32 %v3997_v31, %v3873_v39 }
 0xe19   :  { %6380 = vpow2.f32 %v3892_v37  ;;  %v3889_v43 = vmul.f32 0.5, %v3879_v38 }
 0xe1a   :  { %6382 = vpow2.f32 %v3890_v40  ;;  %v3888_v52 = vmul.f32 0.5, %v3874_v41 }
 0xe1b   :  { %v3896_v45 = vmul.f32 1.442695, %v3889_v43 }
 0xe1c   :  { %v3894_v46 = vmul.f32 1.442695, %v3888_v52 }
 0xe1d   :  { %6384 = vpow2.f32 %v3896_v45 }
 0xe1e   :  { %6386 = vpow2.f32 %v3894_v46 }
 0xe23   :  { %v6381_v58 = vpop.eup %6380 }
 0xe24   :  { %v6383_v42 = vpop.eup %6382  ;;  %v3899_v61 = vmul.f32 %v6381_v58, %v3883_v54 }
 0xe25   :  { %v3898_v51 = vmul.f32 %v6383_v42, %v3882_v55 }
 0xe26   :  { %v3903_v1 = vadd.f32 %v3899_v61, %v3649_v60 }
 0xe27   :  { %v6385_v34 = vpop.eup %6384  ;;  %v3902_v44 = vadd.f32 %v3898_v51, %v3644_v62 }
 0xe28   :  { %v6387_v3 = vpop.eup %6386  ;;  %v3901_v26 = vmul.f32 %v6385_v34, %v3885_v63  ;;  %3907 = vst [vmem:[#allocation60 + $0x8] sm:$0xff] %v3903_v1 }
 0xe29   :  { %v3900_v7 = vmul.f32 %v6387_v3, %v3884_v0  ;;  %3906 = vst [vmem:[#allocation60] sm:$0xff] %v3902_v44 }
 0xe2a   :  { %v3905_v8 = vadd.f32 %v3901_v26, %v3659_v4 }
 0xe2b   :  { %v3904_v24 = vadd.f32 %v3900_v7, %v3654_v6 }
 0xe2c   :  { %3909 = vst [vmem:[#allocation60 + $0x18] sm:$0xff] %v3905_v8 }
 0xe2d   :  { %3908 = vst [vmem:[#allocation60 + $0x10] sm:$0xff] %v3904_v24 }
 0xe2e   :  { %7193 = shalt.err (!%p7190_p12)
}
 0xe2f   :  { %s7194_s21 = scalar_lea.hbm %s7508_s27, 512 }
 0xe30   :  { %p7195_p13 = scmp.ne.s32.totalorder %s7508_s27, %s7194_s21  ;;  %p7198_p0 = scmp.lt.u32.totalorder %s7194_s21, %s7508_s27 }
 0xe32   :  { %p7200_p1 = pnand %p7198_p0, %p7195_p13 }
 0xe34   :  { %7203 = shalt.err (!%p7200_p1)
}
 0xe35   :  { %3921 = dma.vmem_to_hbm [thread:$0]  %s3916_s12, 512, %s7508_s27, [#allocation6], %s7282_s11, %s7282_s11, %s7283_s15  }
 0xe36   :  { %7242 = dma.done.wait [#allocation6], 512  }
 0xe37   :  { %7243 = vsyncadd [#allocation6], 4294966784 }
 0xe38   :  { %3925 = vsyncpa [#allocation5], 1 }
 0xe39   :  { %3926 = vsyncpa [#allocation8], 1 }
 0xe3a   :  { %3927 = vsyncpa [#allocation11], 1 }
 0xe3b   :  { %3928 = vsyncpa [#allocation14], 1 }
 0xe3c   :  { %3929 = vsyncpa [#allocation17], 1 }
 0xe3d   :  { %3930 = vsyncpa [#allocation20], 1 }
 0xe3e   :  { %3931 = vsyncpa [#allocation23], 1 }
 0xe3f   :  { %3932 = vsyncpa [#allocation26], 1 }
 0xe40   :  { %3933 = vsyncpa [#allocation29], 1 }
 0xe41   :  { %3934 = vsyncpa [#allocation32], 1 }
 0xe42   :  { %3935 = vsyncpa [#allocation35], 1 }
 0xe43   :  { %3936 = vsyncpa [#allocation38], 1 }
 0xe44   :  { %3937 = vsyncpa [#allocation41], 1 }
 0xe45   :  { %3938 = vsyncpa [#allocation44], 1 }
 0xe46   :  { %3939 = vsyncpa [#allocation47], 1 }
 0xe47   :  { %3940 = vsyncpa [#allocation50], 1 }
 0xe48   :  { %3941 = vsyncpa [#allocation53], 1 }
 0xe49   :  { %3942 = vsyncpa [#allocation56], 1 }
 0xe4a   :  { %3943 = vsyncpa [#allocation59], 1 }
 0xe4b   :  { %3944 = vsyncpa [#allocation6], 1 }

</bundles_post_ra>
